<compile_context>
chip_gen: v5e
topology: v5e:2x2
jax: 0.10.0
libtpu: 0.0.40
codegen_flags: <defaults>
</compile_context>

<pallas_src>
import math

import jax
import jax.numpy as jnp
from jax import lax
from jax.experimental import pallas as pl
from jax.experimental.pallas import tpu as pltpu


def _round_up(x, m):
    return (x + m - 1) // m * m


def _vmem_budget_bytes():
    """~75% of physical VMEM for this generation; conservative fallback."""
    cap = 64 << 20
    try:
        info = pltpu.get_tpu_info()
        cap = int(getattr(info, "vmem_capacity_bytes", cap))
    except Exception:
        pass
    return int(0.75 * cap), cap


def repack_params(w_ih, w_hh, b_ih, b_hh, w_lin, b_lin, Hp, Op, cdt):
    """Per-gate lane padding + pre-transpose of the LSTM/Linear parameters.

    Pure XLA ops (pad/transpose/reshape): under jit with constant weights this
    folds away; for repeated inference calls cache the result and reuse it.
    Padded rows/cols are zero so they are numerically inert.
    """
    H = w_hh.shape[1]
    I = w_ih.shape[1]
    O = w_lin.shape[0]
    # (4H, I) -> (I, 4*Hp): per-gate transpose + lane pad.
    w4 = w_ih.reshape(4, H, I).transpose(0, 2, 1)            # (4, I, H)
    w4 = jnp.pad(w4, ((0, 0), (0, 0), (0, Hp - H)))          # (4, I, Hp)
    w_ih_t = w4.transpose(1, 0, 2).reshape(I, 4 * Hp).astype(cdt)
    # (4H, H) -> (Hp, 4*Hp)
    wh = w_hh.reshape(4, H, H).transpose(0, 2, 1)            # (4, Hin, Hout)
    wh = jnp.pad(wh, ((0, 0), (0, Hp - H), (0, Hp - H)))     # (4, Hp, Hp)
    w_hh_t = wh.transpose(1, 0, 2).reshape(Hp, 4 * Hp).astype(cdt)
    # Combined gate bias, gate-padded.
    b = (b_ih + b_hh).astype(jnp.float32).reshape(4, H)
    b_g = jnp.pad(b, ((0, 0), (0, Hp - H))).reshape(1, 4 * Hp)
    # Linear: padded rows/cols zero -> padded h lanes / output lanes inert.
    w_lin_t = jnp.zeros((Hp, Op), cdt).at[:H, :O].set(w_lin.T.astype(cdt))
    b_lin_p = jnp.zeros((1, Op), jnp.float32).at[0, :O].set(
        b_lin.astype(jnp.float32))
    return w_ih_t, w_hh_t, b_g, w_lin_t, b_lin_p


def lstm_linear_forward(x, w_ih, w_hh, b_ih, b_hh, w_lin, b_lin,
                        *, t_chunk=None, compute_dtype=jnp.bfloat16):
    """Fused single-layer LSTM + Linear forward.

    x:     (S, B, I)
    w_ih:  (4H, I), w_hh: (4H, H), b_ih/b_hh: (4H,)   (PyTorch gate order i,f,g,o)
    w_lin: (O, H), b_lin: (O,)
    returns (S, B, O) in x.dtype.

    t_chunk=None derives the chunk size from the per-generation VMEM budget.
    """
    S, B, I = x.shape
    H = w_hh.shape[1]
    O = w_lin.shape[0]
    out_dtype = jnp.dtype(x.dtype)
    cdt = jnp.dtype(compute_dtype)

    # Padded sizes: lane-align H and O (128); sublane-align B to the compute
    # dtype's sublane pack (8 for f32, 16 for bf16) so per-step row slices of
    # the compute-dtype gx scratch are tile-aligned.
    Hp = _round_up(H, 128)
    Op = _round_up(O, 128)
    sub = max(8, 32 // cdt.itemsize)
    Bp = _round_up(B, sub)

    # Narrow-output writeback when computing in a narrower dtype (wrapper casts
    # back); halves HBM writeback of the Op-padded output.
    k_out_dtype = cdt if cdt.itemsize < out_dtype.itemsize else out_dtype

    # ---- Chunk size from the per-generation VMEM budget ------------------------
    budget, vmem_cap = _vmem_budget_bytes()
    cdt_b = cdt.itemsize
    out_b = jnp.dtype(k_out_dtype).itemsize
    const_bytes = ((I * 4 * Hp + Hp * 4 * Hp + Hp * Op) * cdt_b   # weights (single-buffered)
                   + (4 * Hp + Op) * 4                            # biases
                   + 2 * Bp * Hp * 4)                             # h/c state
    per_step_bytes = Bp * (2 * I * cdt_b        # x block (double buffered)
                           + 2 * Op * out_b     # out block (double buffered)
                           + 4 * Hp * cdt_b     # gx scratch (compute dtype)
                           + Hp * 4)            # hbuf scratch (f32)
    tc_cap = 32 if vmem_cap <= (64 << 20) else 64
    tc_feasible = max(1, (budget - const_bytes - (4 << 20)) // per_step_bytes)
    tc = t_chunk if t_chunk is not None else tc_cap
    tc = int(max(1, min(tc, tc_feasible, S)))
    Sp = _round_up(S, tc)
    n_chunks = Sp // tc
    rows = tc * Bp                      # rows processed per grid step
    unroll = True if tc <= 8 else 8     # partial unroll: avoid vreg spill at big tc

    # ---- Parameter / input repack ----------------------------------------------
    w_ih_t, w_hh_t, b_g, w_lin_t, b_lin_p = repack_params(
        w_ih, w_hh, b_ih, b_hh, w_lin, b_lin, Hp, Op, cdt)
    x_p = jnp.zeros((Sp, Bp, I), cdt).at[:S, :B, :].set(x.astype(cdt))
    x2d = x_p.reshape(Sp * Bp, I)

    # ---- Kernel -----------------------------------------------------------------
    def kernel(x_ref, w_ih_ref, w_hh_ref, b_ref, w_lin_ref, b_lin_ref,
               out_ref, h_scr, c_scr, hbuf_scr, gx_scr):
        # Zero initial hidden/cell state on the first chunk (PyTorch default).
        @pl.when(pl.program_id(0) == 0)
        def _():
            h_scr[...] = jnp.zeros_like(h_scr)
            c_scr[...] = jnp.zeros_like(c_scr)

        # Phase 1 (parallel over the chunk): hoisted input projection + bias,
        # one wide MXU matmul; stored in compute dtype to halve scratch bytes.
        gx_scr[...] = (
            jnp.dot(x_ref[...], w_ih_ref[...],
                    preferred_element_type=jnp.float32) + b_ref[...]
        ).astype(gx_scr.dtype)

        # Phase 2: sequential recurrence over the chunk (partially unrolled).
        # TODO(synk): on v6e/v7x, keeping W_hh resident in the MXU weight regs
        # (pltpu.matmul_push_rhs once per chunk + matmul_acc_lhs/matmul_pop per
        # step; MRB in-place accumulation of gx on v7x) would remove per-step
        # RHS re-staging; kept on jnp.dot for portability.
        def step(t, carry):
            h, c = carry                                   # float32 (Bp, Hp)
            row = pl.multiple_of(t * Bp, Bp)               # tile-aligned offset
            gates = (gx_scr[pl.ds(row, Bp), :].astype(jnp.float32)
                     + jnp.dot(h.astype(cdt), w_hh_ref[...],
                               preferred_element_type=jnp.float32))
            # 128-lane-aligned gate slices (free views), PyTorch order i,f,g,o.
            i_g = jax.nn.sigmoid(gates[:, 0 * Hp:1 * Hp])
            f_g = jax.nn.sigmoid(gates[:, 1 * Hp:2 * Hp])
            g_g = jnp.tanh(gates[:, 2 * Hp:3 * Hp])
            o_g = jax.nn.sigmoid(gates[:, 3 * Hp:4 * Hp])
            c_new = f_g * c + i_g * g_g
            h_new = o_g * jnp.tanh(c_new)
            hbuf_scr[pl.ds(row, Bp), :] = h_new            # f32: unmasked aligned vst
            return h_new, c_new

        h_f, c_f = lax.fori_loop(0, tc, step, (h_scr[...], c_scr[...]),
                                 unroll=unroll)
        h_scr[...] = h_f
        c_scr[...] = c_f

        # Phase 3: batched Linear for the whole chunk; lane-dense (Op) store.
        out_ref[...] = (
            jnp.dot(hbuf_scr[...].astype(cdt), w_lin_ref[...],
                    preferred_element_type=jnp.float32) + b_lin_ref[...]
        ).astype(out_ref.dtype)

    # ---- Cost estimate -----------------------------------------------------------
    cost = pl.CostEstimate(
        flops=2 * Sp * Bp * (I * 4 * Hp + Hp * 4 * Hp + Hp * Op),
        transcendentals=5 * Sp * Bp * Hp,
        bytes_accessed=int(
            Sp * Bp * I * cdt_b + Sp * Bp * Op * out_b
            + (I * 4 * Hp + Hp * 4 * Hp + Hp * Op) * cdt_b
            + (4 * Hp + Op) * 4))

    vmem_limit = int(budget)

    def build(single_buffer_weights):
        def const_spec(shape):
            # Block index never changes -> single-buffer to save VMEM.
            if single_buffer_weights:
                return pl.BlockSpec(shape, lambda t: (0, 0),
                                    pipeline_mode=pl.Buffered(1))
            return pl.BlockSpec(shape, lambda t: (0, 0))

        return pl.pallas_call(
            kernel,
            out_shape=jax.ShapeDtypeStruct((Sp * Bp, Op), k_out_dtype),
            grid_spec=pltpu.PrefetchScalarGridSpec(
                num_scalar_prefetch=0,
                grid=(n_chunks,),
                in_specs=[
                    pl.BlockSpec((rows, I), lambda t: (t, 0)),     # x chunk
                    const_spec((I, 4 * Hp)),                       # W_ih^T (gate-padded)
                    const_spec((Hp, 4 * Hp)),                      # W_hh^T (gate-padded)
                    const_spec((1, 4 * Hp)),                       # b_ih + b_hh
                    const_spec((Hp, Op)),                          # W_lin^T
                    const_spec((1, Op)),                           # b_lin
                ],
                out_specs=pl.BlockSpec((rows, Op), lambda t: (t, 0)),
                scratch_shapes=[
                    pltpu.VMEM((Bp, Hp), jnp.float32),       # h state (persists)
                    pltpu.VMEM((Bp, Hp), jnp.float32),       # c state (persists)
                    pltpu.VMEM((rows, Hp), jnp.float32),     # chunk hidden buffer (f32)
                    pltpu.VMEM((rows, 4 * Hp), cdt),         # hoisted x-projection + bias
                ],
            ),
            # Time recurrence -> sequential grid axis.
            # TODO(synk): on v7x (2 TensorCores) add a leading "parallel"
            # batch-tile grid axis once B >= 16 to shard the recurrence.
            compiler_params=pltpu.CompilerParams(
                dimension_semantics=("arbitrary",),
                vmem_limit_bytes=vmem_limit),
            cost_estimate=cost,
        )

    args = (x2d, w_ih_t, w_hh_t, b_g, w_lin_t, b_lin_p)
    try:
        out2d = build(True)(*args)
    except Exception:
        # Fallback for jax builds that reject single-buffered pipeline_mode.
        out2d = build(False)(*args)

    out = out2d.reshape(Sp, Bp, Op)[:S, :B, :O]
    return out.astype(out_dtype)


def lstm_linear_reference(x, w_ih, w_hh, b_ih, b_hh, w_lin, b_lin):
    """Pure-JAX reference (lax.scan) mirroring PyTorch nn.LSTM + nn.Linear."""
    S, B, _ = x.shape
    H = w_hh.shape[1]
    b = b_ih + b_hh

    def step(carry, x_t):
        h, c = carry
        gates = x_t @ w_ih.T + h @ w_hh.T + b
        i_g = jax.nn.sigmoid(gates[:, 0 * H:1 * H])
        f_g = jax.nn.sigmoid(gates[:, 1 * H:2 * H])
        g_g = jnp.tanh(gates[:, 2 * H:3 * H])
        o_g = jax.nn.sigmoid(gates[:, 3 * H:4 * H])
        c_new = f_g * c + i_g * g_g
        h_new = o_g * jnp.tanh(c_new)
        return (h_new, c_new), h_new

    h0 = jnp.zeros((B, H), jnp.float32)
    c0 = jnp.zeros((B, H), jnp.float32)
    _, hs = lax.scan(step, (h0, c0), x)              # (S, B, H)
    y = hs.reshape(S * B, H) @ w_lin.T + b_lin
    return y.reshape(S, B, -1)


if __name__ == "__main__":
    # Small shapes consistent with the module's forward (seq, batch, features).
    SEQ, BATCH = 8, 2
    INPUT_SIZE, HIDDEN_SIZE, OUTPUT_SIZE = 16, 32, 4

    key = jax.random.PRNGKey(0)
    kx, k1, k2, k3, k4, k5, k6 = jax.random.split(key, 7)

    k_lstm = 1.0 / jnp.sqrt(jnp.float32(HIDDEN_SIZE))
    k_lin = 1.0 / jnp.sqrt(jnp.float32(HIDDEN_SIZE))

    x = jax.random.normal(kx, (SEQ, BATCH, INPUT_SIZE), jnp.float32)
    w_ih = jax.random.uniform(k1, (4 * HIDDEN_SIZE, INPUT_SIZE),
                              jnp.float32, -k_lstm, k_lstm)
    w_hh = jax.random.uniform(k2, (4 * HIDDEN_SIZE, HIDDEN_SIZE),
                              jnp.float32, -k_lstm, k_lstm)
    b_ih = jax.random.uniform(k3, (4 * HIDDEN_SIZE,), jnp.float32, -k_lstm, k_lstm)
    b_hh = jax.random.uniform(k4, (4 * HIDDEN_SIZE,), jnp.float32, -k_lstm, k_lstm)
    w_lin = jax.random.uniform(k5, (OUTPUT_SIZE, HIDDEN_SIZE),
                               jnp.float32, -k_lin, k_lin)
    b_lin = jax.random.uniform(k6, (OUTPUT_SIZE,), jnp.float32, -k_lin, k_lin)

    ref = lstm_linear_reference(x, w_ih, w_hh, b_ih, b_hh, w_lin, b_lin)

    # float32, explicit small chunk (2 grid steps -> exercises h/c carry across chunks)
    out_f32 = lstm_linear_forward(x, w_ih, w_hh, b_ih, b_hh, w_lin, b_lin,
                                  t_chunk=4, compute_dtype=jnp.float32)
    out_f32 = jax.block_until_ready(out_f32)
    assert out_f32.shape == (SEQ, BATCH, OUTPUT_SIZE)
    assert jnp.allclose(out_f32, ref, atol=3e-5, rtol=3e-5)

    # bfloat16, explicit small chunk (Bp=16 sublane alignment + cross-chunk carry)
    out_bf16 = lstm_linear_forward(x, w_ih, w_hh, b_ih, b_hh, w_lin, b_lin,
                                   t_chunk=4, compute_dtype=jnp.bfloat16)
    out_bf16 = jax.block_until_ready(out_bf16)
    assert out_bf16.shape == (SEQ, BATCH, OUTPUT_SIZE)
    assert jnp.allclose(out_bf16, ref, atol=3e-2, rtol=3e-2)

    # bfloat16, auto chunk size derived from the per-generation VMEM budget
    out_auto = lstm_linear_forward(x, w_ih, w_hh, b_ih, b_hh, w_lin, b_lin,
                                   compute_dtype=jnp.bfloat16)
    out_auto = jax.block_until_ready(out_auto)
    assert out_auto.shape == (SEQ, BATCH, OUTPUT_SIZE)
    assert jnp.allclose(out_auto, ref, atol=3e-2, rtol=3e-2)

    print("KERNEL_OK")
</pallas_src>

<mosaic_0001>
module attributes {stable_mosaic.version = 11 : i64} {
  func.func @kernel(%arg0: i32, %arg1: memref<32x16xf32, #tpu.memory_space<vmem>>, %arg2: memref<16x512xf32, #tpu.memory_space<vmem>>, %arg3: memref<128x512xf32, #tpu.memory_space<vmem>>, %arg4: memref<1x512xf32, #tpu.memory_space<vmem>>, %arg5: memref<128x128xf32, #tpu.memory_space<vmem>>, %arg6: memref<1x128xf32, #tpu.memory_space<vmem>>, %arg7: memref<32x128xf32, #tpu.memory_space<vmem>>, %arg8: memref<8x128xf32, #tpu.memory_space<vmem>>, %arg9: memref<8x128xf32, #tpu.memory_space<vmem>>, %arg10: memref<32x128xf32, #tpu.memory_space<vmem>>, %arg11: memref<32x512xf32, #tpu.memory_space<vmem>>) attributes {dimension_semantics = [#tpu.dimension_semantics<arbitrary>], iteration_bounds = array<i64: 2>, scalar_prefetch = 0 : i64, scratch_operands = 4 : i64, tpu.core_type = #tpu.core_type<tc>, window_params = [{transform_indices = @transform_0, window_bounds = array<i64: 32, 16>}, {pipeline_mode = #tpu.pipeline_mode<synchronous>, transform_indices = @transform_1, window_bounds = array<i64: 16, 512>}, {pipeline_mode = #tpu.pipeline_mode<synchronous>, transform_indices = @transform_2, window_bounds = array<i64: 128, 512>}, {pipeline_mode = #tpu.pipeline_mode<synchronous>, transform_indices = @transform_3, window_bounds = array<i64: 1, 512>}, {pipeline_mode = #tpu.pipeline_mode<synchronous>, transform_indices = @transform_4, window_bounds = array<i64: 128, 128>}, {pipeline_mode = #tpu.pipeline_mode<synchronous>, transform_indices = @transform_5, window_bounds = array<i64: 1, 128>}, {transform_indices = @transform_6, window_bounds = array<i64: 32, 128>}]} {
    %c0_i32 = arith.constant 0 : i32
    %0 = arith.cmpi eq, %arg0, %c0_i32 : i32
    %1 = arith.extui %0 : i1 to i32
    %c0_i32_0 = arith.constant 0 : i32
    %2 = arith.cmpi ne, %1, %c0_i32_0 : i32
    scf.if %2 {
      %cst_61 = arith.constant 0.000000e+00 : f32
      %157 = vector.broadcast %cst_61 : f32 to vector<8x128xf32>
      %c0_62 = arith.constant 0 : index
      %c0_63 = arith.constant 0 : index
      %158 = vector.load %arg8[%c0_62, %c0_63] : memref<8x128xf32, #tpu.memory_space<vmem>>, vector<8x128xf32>
      tpu.vector_store %arg8[%c0_62, %c0_63], %157 {strides = array<i32>} : memref<8x128xf32, #tpu.memory_space<vmem>>, vector<8x128xf32>,
      %cst_64 = arith.constant 0.000000e+00 : f32
      %159 = vector.broadcast %cst_64 : f32 to vector<8x128xf32>
      %c0_65 = arith.constant 0 : index
      %c0_66 = arith.constant 0 : index
      %160 = vector.load %arg9[%c0_65, %c0_66] : memref<8x128xf32, #tpu.memory_space<vmem>>, vector<8x128xf32>
      tpu.vector_store %arg9[%c0_65, %c0_66], %159 {strides = array<i32>} : memref<8x128xf32, #tpu.memory_space<vmem>>, vector<8x128xf32>,
    } else {
    }
    %c0 = arith.constant 0 : index
    %c0_1 = arith.constant 0 : index
    %3 = vector.load %arg1[%c0, %c0_1] : memref<32x16xf32, #tpu.memory_space<vmem>>, vector<32x16xf32>
    %c0_2 = arith.constant 0 : index
    %c0_3 = arith.constant 0 : index
    %4 = vector.load %arg2[%c0_2, %c0_3] : memref<16x512xf32, #tpu.memory_space<vmem>>, vector<16x512xf32>
    %cst = arith.constant dense<0.000000e+00> : vector<32x512xf32>
    %5 = tpu.matmul %3, %4, %cst {dimension_numbers = #tpu.dot_dimension_numbers<[1], [0], [0], [1], [0, 0, 1, 1], [], []>} : vector<32x16xf32>, vector<16x512xf32>, vector<32x512xf32> -> vector<32x512xf32>
    %c0_4 = arith.constant 0 : index
    %c0_5 = arith.constant 0 : index
    %6 = vector.load %arg4[%c0_4, %c0_5] : memref<1x512xf32, #tpu.memory_space<vmem>>, vector<1x512xf32>
    %7 = vector.broadcast %6 : vector<1x512xf32> to vector<32x512xf32>
    %8 = arith.addf %5, %7 : vector<32x512xf32>
    %c0_6 = arith.constant 0 : index
    %c0_7 = arith.constant 0 : index
    %9 = vector.load %arg11[%c0_6, %c0_7] : memref<32x512xf32, #tpu.memory_space<vmem>>, vector<32x512xf32>
    tpu.vector_store %arg11[%c0_6, %c0_7], %8 {strides = array<i32>} : memref<32x512xf32, #tpu.memory_space<vmem>>, vector<32x512xf32>,
    %c0_8 = arith.constant 0 : index
    %c0_9 = arith.constant 0 : index
    %10 = vector.load %arg8[%c0_8, %c0_9] : memref<8x128xf32, #tpu.memory_space<vmem>>, vector<8x128xf32>
    %c0_10 = arith.constant 0 : index
    %c0_11 = arith.constant 0 : index
    %11 = vector.load %arg9[%c0_10, %c0_11] : memref<8x128xf32, #tpu.memory_space<vmem>>, vector<8x128xf32>
    %c0_i32_12 = arith.constant 0 : i32
    %c8_i32 = arith.constant 8 : i32
    %12 = arith.muli %c0_i32_12, %c8_i32 : i32
    %13 = tpu.assume_multiple %12, 8 : i32
    %14 = arith.index_cast %13 : i32 to index
    %c0_13 = arith.constant 0 : index
    %15 = vector.load %arg11[%14, %c0_13] : memref<32x512xf32, #tpu.memory_space<vmem>>, vector<8x512xf32>
    %c0_14 = arith.constant 0 : index
    %c0_15 = arith.constant 0 : index
    %16 = vector.load %arg3[%c0_14, %c0_15] : memref<128x512xf32, #tpu.memory_space<vmem>>, vector<128x512xf32>
    %cst_16 = arith.constant dense<0.000000e+00> : vector<8x512xf32>
    %17 = tpu.matmul %10, %16, %cst_16 {dimension_numbers = #tpu.dot_dimension_numbers<[1], [0], [0], [1], [0, 0, 1, 1], [], []>} : vector<8x128xf32>, vector<128x512xf32>, vector<8x512xf32> -> vector<8x512xf32>
    %18 = arith.addf %15, %17 : vector<8x512xf32>
    %19 = vector.extract_strided_slice %18 {offsets = [0, 0], sizes = [8, 128], strides = [1, 1]} : vector<8x512xf32> to vector<8x128xf32>
    %20 = arith.negf %19 : vector<8x128xf32>
    %21 = math.exp %20 : vector<8x128xf32>
    %cst_17 = arith.constant 1.000000e+00 : f32
    %22 = vector.broadcast %cst_17 : f32 to vector<8x128xf32>
    %23 = arith.addf %22, %21 : vector<8x128xf32>
    %24 = arith.divf %22, %23 : vector<8x128xf32>
    %25 = vector.extract_strided_slice %18 {offsets = [0, 128], sizes = [8, 128], strides = [1, 1]} : vector<8x512xf32> to vector<8x128xf32>
    %26 = arith.negf %25 : vector<8x128xf32>
    %27 = math.exp %26 : vector<8x128xf32>
    %cst_18 = arith.constant 1.000000e+00 : f32
    %28 = vector.broadcast %cst_18 : f32 to vector<8x128xf32>
    %29 = arith.addf %28, %27 : vector<8x128xf32>
    %30 = arith.divf %28, %29 : vector<8x128xf32>
    %31 = vector.extract_strided_slice %18 {offsets = [0, 256], sizes = [8, 128], strides = [1, 1]} : vector<8x512xf32> to vector<8x128xf32>
    %32 = math.tanh %31 : vector<8x128xf32>
    %33 = vector.extract_strided_slice %18 {offsets = [0, 384], sizes = [8, 128], strides = [1, 1]} : vector<8x512xf32> to vector<8x128xf32>
    %34 = arith.negf %33 : vector<8x128xf32>
    %35 = math.exp %34 : vector<8x128xf32>
    %cst_19 = arith.constant 1.000000e+00 : f32
    %36 = vector.broadcast %cst_19 : f32 to vector<8x128xf32>
    %37 = arith.addf %36, %35 : vector<8x128xf32>
    %38 = arith.divf %36, %37 : vector<8x128xf32>
    %39 = arith.mulf %30, %11 : vector<8x128xf32>
    %40 = arith.mulf %24, %32 : vector<8x128xf32>
    %41 = arith.addf %39, %40 : vector<8x128xf32>
    %42 = math.tanh %41 : vector<8x128xf32>
    %43 = arith.mulf %38, %42 : vector<8x128xf32>
    %44 = arith.index_cast %13 : i32 to index
    %c0_20 = arith.constant 0 : index
    %45 = vector.load %arg10[%44, %c0_20] : memref<32x128xf32, #tpu.memory_space<vmem>>, vector<8x128xf32>
    tpu.vector_store %arg10[%44, %c0_20], %43 {strides = array<i32>} : memref<32x128xf32, #tpu.memory_space<vmem>>, vector<8x128xf32>,
    %c1_i32 = arith.constant 1 : i32
    %c8_i32_21 = arith.constant 8 : i32
    %46 = arith.muli %c1_i32, %c8_i32_21 : i32
    %47 = tpu.assume_multiple %46, 8 : i32
    %48 = arith.index_cast %47 : i32 to index
    %c0_22 = arith.constant 0 : index
    %49 = vector.load %arg11[%48, %c0_22] : memref<32x512xf32, #tpu.memory_space<vmem>>, vector<8x512xf32>
    %c0_23 = arith.constant 0 : index
    %c0_24 = arith.constant 0 : index
    %50 = vector.load %arg3[%c0_23, %c0_24] : memref<128x512xf32, #tpu.memory_space<vmem>>, vector<128x512xf32>
    %cst_25 = arith.constant dense<0.000000e+00> : vector<8x512xf32>
    %51 = tpu.matmul %43, %50, %cst_25 {dimension_numbers = #tpu.dot_dimension_numbers<[1], [0], [0], [1], [0, 0, 1, 1], [], []>} : vector<8x128xf32>, vector<128x512xf32>, vector<8x512xf32> -> vector<8x512xf32>
    %52 = arith.addf %49, %51 : vector<8x512xf32>
    %53 = vector.extract_strided_slice %52 {offsets = [0, 0], sizes = [8, 128], strides = [1, 1]} : vector<8x512xf32> to vector<8x128xf32>
    %54 = arith.negf %53 : vector<8x128xf32>
    %55 = math.exp %54 : vector<8x128xf32>
    %cst_26 = arith.constant 1.000000e+00 : f32
    %56 = vector.broadcast %cst_26 : f32 to vector<8x128xf32>
    %57 = arith.addf %56, %55 : vector<8x128xf32>
    %58 = arith.divf %56, %57 : vector<8x128xf32>
    %59 = vector.extract_strided_slice %52 {offsets = [0, 128], sizes = [8, 128], strides = [1, 1]} : vector<8x512xf32> to vector<8x128xf32>
    %60 = arith.negf %59 : vector<8x128xf32>
    %61 = math.exp %60 : vector<8x128xf32>
    %cst_27 = arith.constant 1.000000e+00 : f32
    %62 = vector.broadcast %cst_27 : f32 to vector<8x128xf32>
    %63 = arith.addf %62, %61 : vector<8x128xf32>
    %64 = arith.divf %62, %63 : vector<8x128xf32>
    %65 = vector.extract_strided_slice %52 {offsets = [0, 256], sizes = [8, 128], strides = [1, 1]} : vector<8x512xf32> to vector<8x128xf32>
    %66 = math.tanh %65 : vector<8x128xf32>
    %67 = vector.extract_strided_slice %52 {offsets = [0, 384], sizes = [8, 128], strides = [1, 1]} : vector<8x512xf32> to vector<8x128xf32>
    %68 = arith.negf %67 : vector<8x128xf32>
    %69 = math.exp %68 : vector<8x128xf32>
    %cst_28 = arith.constant 1.000000e+00 : f32
    %70 = vector.broadcast %cst_28 : f32 to vector<8x128xf32>
    %71 = arith.addf %70, %69 : vector<8x128xf32>
    %72 = arith.divf %70, %71 : vector<8x128xf32>
    %73 = arith.mulf %64, %41 : vector<8x128xf32>
    %74 = arith.mulf %58, %66 : vector<8x128xf32>
    %75 = arith.addf %73, %74 : vector<8x128xf32>
    %76 = math.tanh %75 : vector<8x128xf32>
    %77 = arith.mulf %72, %76 : vector<8x128xf32>
    %78 = arith.index_cast %47 : i32 to index
    %c0_29 = arith.constant 0 : index
    %79 = vector.load %arg10[%78, %c0_29] : memref<32x128xf32, #tpu.memory_space<vmem>>, vector<8x128xf32>
    tpu.vector_store %arg10[%78, %c0_29], %77 {strides = array<i32>} : memref<32x128xf32, #tpu.memory_space<vmem>>, vector<8x128xf32>,
    %c2_i32 = arith.constant 2 : i32
    %c8_i32_30 = arith.constant 8 : i32
    %80 = arith.muli %c2_i32, %c8_i32_30 : i32
    %81 = tpu.assume_multiple %80, 8 : i32
    %82 = arith.index_cast %81 : i32 to index
    %c0_31 = arith.constant 0 : index
    %83 = vector.load %arg11[%82, %c0_31] : memref<32x512xf32, #tpu.memory_space<vmem>>, vector<8x512xf32>
    %c0_32 = arith.constant 0 : index
    %c0_33 = arith.constant 0 : index
    %84 = vector.load %arg3[%c0_32, %c0_33] : memref<128x512xf32, #tpu.memory_space<vmem>>, vector<128x512xf32>
    %cst_34 = arith.constant dense<0.000000e+00> : vector<8x512xf32>
    %85 = tpu.matmul %77, %84, %cst_34 {dimension_numbers = #tpu.dot_dimension_numbers<[1], [0], [0], [1], [0, 0, 1, 1], [], []>} : vector<8x128xf32>, vector<128x512xf32>, vector<8x512xf32> -> vector<8x512xf32>
    %86 = arith.addf %83, %85 : vector<8x512xf32>
    %87 = vector.extract_strided_slice %86 {offsets = [0, 0], sizes = [8, 128], strides = [1, 1]} : vector<8x512xf32> to vector<8x128xf32>
    %88 = arith.negf %87 : vector<8x128xf32>
    %89 = math.exp %88 : vector<8x128xf32>
    %cst_35 = arith.constant 1.000000e+00 : f32
    %90 = vector.broadcast %cst_35 : f32 to vector<8x128xf32>
    %91 = arith.addf %90, %89 : vector<8x128xf32>
    %92 = arith.divf %90, %91 : vector<8x128xf32>
    %93 = vector.extract_strided_slice %86 {offsets = [0, 128], sizes = [8, 128], strides = [1, 1]} : vector<8x512xf32> to vector<8x128xf32>
    %94 = arith.negf %93 : vector<8x128xf32>
    %95 = math.exp %94 : vector<8x128xf32>
    %cst_36 = arith.constant 1.000000e+00 : f32
    %96 = vector.broadcast %cst_36 : f32 to vector<8x128xf32>
    %97 = arith.addf %96, %95 : vector<8x128xf32>
    %98 = arith.divf %96, %97 : vector<8x128xf32>
    %99 = vector.extract_strided_slice %86 {offsets = [0, 256], sizes = [8, 128], strides = [1, 1]} : vector<8x512xf32> to vector<8x128xf32>
    %100 = math.tanh %99 : vector<8x128xf32>
    %101 = vector.extract_strided_slice %86 {offsets = [0, 384], sizes = [8, 128], strides = [1, 1]} : vector<8x512xf32> to vector<8x128xf32>
    %102 = arith.negf %101 : vector<8x128xf32>
    %103 = math.exp %102 : vector<8x128xf32>
    %cst_37 = arith.constant 1.000000e+00 : f32
    %104 = vector.broadcast %cst_37 : f32 to vector<8x128xf32>
    %105 = arith.addf %104, %103 : vector<8x128xf32>
    %106 = arith.divf %104, %105 : vector<8x128xf32>
    %107 = arith.mulf %98, %75 : vector<8x128xf32>
    %108 = arith.mulf %92, %100 : vector<8x128xf32>
    %109 = arith.addf %107, %108 : vector<8x128xf32>
    %110 = math.tanh %109 : vector<8x128xf32>
    %111 = arith.mulf %106, %110 : vector<8x128xf32>
    %112 = arith.index_cast %81 : i32 to index
    %c0_38 = arith.constant 0 : index
    %113 = vector.load %arg10[%112, %c0_38] : memref<32x128xf32, #tpu.memory_space<vmem>>, vector<8x128xf32>
    tpu.vector_store %arg10[%112, %c0_38], %111 {strides = array<i32>} : memref<32x128xf32, #tpu.memory_space<vmem>>, vector<8x128xf32>,
    %c3_i32 = arith.constant 3 : i32
    %c8_i32_39 = arith.constant 8 : i32
    %114 = arith.muli %c3_i32, %c8_i32_39 : i32
    %115 = tpu.assume_multiple %114, 8 : i32
    %116 = arith.index_cast %115 : i32 to index
    %c0_40 = arith.constant 0 : index
    %117 = vector.load %arg11[%116, %c0_40] : memref<32x512xf32, #tpu.memory_space<vmem>>, vector<8x512xf32>
    %c0_41 = arith.constant 0 : index
    %c0_42 = arith.constant 0 : index
    %118 = vector.load %arg3[%c0_41, %c0_42] : memref<128x512xf32, #tpu.memory_space<vmem>>, vector<128x512xf32>
    %cst_43 = arith.constant dense<0.000000e+00> : vector<8x512xf32>
    %119 = tpu.matmul %111, %118, %cst_43 {dimension_numbers = #tpu.dot_dimension_numbers<[1], [0], [0], [1], [0, 0, 1, 1], [], []>} : vector<8x128xf32>, vector<128x512xf32>, vector<8x512xf32> -> vector<8x512xf32>
    %120 = arith.addf %117, %119 : vector<8x512xf32>
    %121 = vector.extract_strided_slice %120 {offsets = [0, 0], sizes = [8, 128], strides = [1, 1]} : vector<8x512xf32> to vector<8x128xf32>
    %122 = arith.negf %121 : vector<8x128xf32>
    %123 = math.exp %122 : vector<8x128xf32>
    %cst_44 = arith.constant 1.000000e+00 : f32
    %124 = vector.broadcast %cst_44 : f32 to vector<8x128xf32>
    %125 = arith.addf %124, %123 : vector<8x128xf32>
    %126 = arith.divf %124, %125 : vector<8x128xf32>
    %127 = vector.extract_strided_slice %120 {offsets = [0, 128], sizes = [8, 128], strides = [1, 1]} : vector<8x512xf32> to vector<8x128xf32>
    %128 = arith.negf %127 : vector<8x128xf32>
    %129 = math.exp %128 : vector<8x128xf32>
    %cst_45 = arith.constant 1.000000e+00 : f32
    %130 = vector.broadcast %cst_45 : f32 to vector<8x128xf32>
    %131 = arith.addf %130, %129 : vector<8x128xf32>
    %132 = arith.divf %130, %131 : vector<8x128xf32>
    %133 = vector.extract_strided_slice %120 {offsets = [0, 256], sizes = [8, 128], strides = [1, 1]} : vector<8x512xf32> to vector<8x128xf32>
    %134 = math.tanh %133 : vector<8x128xf32>
    %135 = vector.extract_strided_slice %120 {offsets = [0, 384], sizes = [8, 128], strides = [1, 1]} : vector<8x512xf32> to vector<8x128xf32>
    %136 = arith.negf %135 : vector<8x128xf32>
    %137 = math.exp %136 : vector<8x128xf32>
    %cst_46 = arith.constant 1.000000e+00 : f32
    %138 = vector.broadcast %cst_46 : f32 to vector<8x128xf32>
    %139 = arith.addf %138, %137 : vector<8x128xf32>
    %140 = arith.divf %138, %139 : vector<8x128xf32>
    %141 = arith.mulf %132, %109 : vector<8x128xf32>
    %142 = arith.mulf %126, %134 : vector<8x128xf32>
    %143 = arith.addf %141, %142 : vector<8x128xf32>
    %144 = math.tanh %143 : vector<8x128xf32>
    %145 = arith.mulf %140, %144 : vector<8x128xf32>
    %146 = arith.index_cast %115 : i32 to index
    %c0_47 = arith.constant 0 : index
    %147 = vector.load %arg10[%146, %c0_47] : memref<32x128xf32, #tpu.memory_space<vmem>>, vector<8x128xf32>
    tpu.vector_store %arg10[%146, %c0_47], %145 {strides = array<i32>} : memref<32x128xf32, #tpu.memory_space<vmem>>, vector<8x128xf32>,
    %c4_i32 = arith.constant 4 : i32
    %c0_48 = arith.constant 0 : index
    %c0_49 = arith.constant 0 : index
    %148 = vector.load %arg8[%c0_48, %c0_49] : memref<8x128xf32, #tpu.memory_space<vmem>>, vector<8x128xf32>
    tpu.vector_store %arg8[%c0_48, %c0_49], %145 {strides = array<i32>} : memref<8x128xf32, #tpu.memory_space<vmem>>, vector<8x128xf32>,
    %c0_50 = arith.constant 0 : index
    %c0_51 = arith.constant 0 : index
    %149 = vector.load %arg9[%c0_50, %c0_51] : memref<8x128xf32, #tpu.memory_space<vmem>>, vector<8x128xf32>
    tpu.vector_store %arg9[%c0_50, %c0_51], %143 {strides = array<i32>} : memref<8x128xf32, #tpu.memory_space<vmem>>, vector<8x128xf32>,
    %c0_52 = arith.constant 0 : index
    %c0_53 = arith.constant 0 : index
    %150 = vector.load %arg10[%c0_52, %c0_53] : memref<32x128xf32, #tpu.memory_space<vmem>>, vector<32x128xf32>
    %c0_54 = arith.constant 0 : index
    %c0_55 = arith.constant 0 : index
    %151 = vector.load %arg5[%c0_54, %c0_55] : memref<128x128xf32, #tpu.memory_space<vmem>>, vector<128x128xf32>
    %cst_56 = arith.constant dense<0.000000e+00> : vector<32x128xf32>
    %152 = tpu.matmul %150, %151, %cst_56 {dimension_numbers = #tpu.dot_dimension_numbers<[1], [0], [0], [1], [0, 0, 1, 1], [], []>} : vector<32x128xf32>, vector<128x128xf32>, vector<32x128xf32> -> vector<32x128xf32>
    %c0_57 = arith.constant 0 : index
    %c0_58 = arith.constant 0 : index
    %153 = vector.load %arg6[%c0_57, %c0_58] : memref<1x128xf32, #tpu.memory_space<vmem>>, vector<1x128xf32>
    %154 = vector.broadcast %153 : vector<1x128xf32> to vector<32x128xf32>
    %155 = arith.addf %152, %154 : vector<32x128xf32>
    %c0_59 = arith.constant 0 : index
    %c0_60 = arith.constant 0 : index
    %156 = vector.load %arg7[%c0_59, %c0_60] : memref<32x128xf32, #tpu.memory_space<vmem>>, vector<32x128xf32>
    tpu.vector_store %arg7[%c0_59, %c0_60], %155 {strides = array<i32>} : memref<32x128xf32, #tpu.memory_space<vmem>>, vector<32x128xf32>,
    return
  }
  func.func @transform_0(%arg0: i32) -> (i32, i32) {
    %c0_i32 = arith.constant 0 : i32
    %c0_i32_0 = arith.constant 0 : i32
    return %arg0, %c0_i32 : i32, i32
  }
  func.func @transform_1(%arg0: i32) -> (i32, i32) {
    %c0_i32 = arith.constant 0 : i32
    %c0_i32_0 = arith.constant 0 : i32
    %c0_i32_1 = arith.constant 0 : i32
    return %c0_i32, %c0_i32_0 : i32, i32
  }
  func.func @transform_2(%arg0: i32) -> (i32, i32) {
    %c0_i32 = arith.constant 0 : i32
    %c0_i32_0 = arith.constant 0 : i32
    %c0_i32_1 = arith.constant 0 : i32
    return %c0_i32, %c0_i32_0 : i32, i32
  }
  func.func @transform_3(%arg0: i32) -> (i32, i32) {
    %c0_i32 = arith.constant 0 : i32
    %c0_i32_0 = arith.constant 0 : i32
    %c0_i32_1 = arith.constant 0 : i32
    return %c0_i32, %c0_i32_0 : i32, i32
  }
  func.func @transform_4(%arg0: i32) -> (i32, i32) {
    %c0_i32 = arith.constant 0 : i32
    %c0_i32_0 = arith.constant 0 : i32
    %c0_i32_1 = arith.constant 0 : i32
    return %c0_i32, %c0_i32_0 : i32, i32
  }
  func.func @transform_5(%arg0: i32) -> (i32, i32) {
    %c0_i32 = arith.constant 0 : i32
    %c0_i32_0 = arith.constant 0 : i32
    %c0_i32_1 = arith.constant 0 : i32
    return %c0_i32, %c0_i32_0 : i32, i32
  }
  func.func @transform_6(%arg0: i32) -> (i32, i32) {
    %c0_i32 = arith.constant 0 : i32
    %c0_i32_0 = arith.constant 0 : i32
    return %arg0, %c0_i32 : i32, i32
  }
}

module attributes {stable_mosaic.version = 11 : i64} {
  func.func @kernel(%arg0: i32, %arg1: memref<32x16xf32, #tpu.memory_space<vmem>>, %arg2: memref<16x512xf32, #tpu.memory_space<vmem>>, %arg3: memref<128x512xf32, #tpu.memory_space<vmem>>, %arg4: memref<1x512xf32, #tpu.memory_space<vmem>>, %arg5: memref<128x128xf32, #tpu.memory_space<vmem>>, %arg6: memref<1x128xf32, #tpu.memory_space<vmem>>, %arg7: memref<32x128xf32, #tpu.memory_space<vmem>>, %arg8: memref<8x128xf32, #tpu.memory_space<vmem>>, %arg9: memref<8x128xf32, #tpu.memory_space<vmem>>, %arg10: memref<32x128xf32, #tpu.memory_space<vmem>>, %arg11: memref<32x512xf32, #tpu.memory_space<vmem>>) attributes {dimension_semantics = [#tpu.dimension_semantics<arbitrary>], iteration_bounds = array<i64: 2>, scalar_prefetch = 0 : i64, scratch_operands = 4 : i64, tpu.core_type = #tpu.core_type<tc>, window_params = [{transform_indices = @transform_0, window_bounds = array<i64: 32, 16>}, {pipeline_mode = #tpu.pipeline_mode<synchronous>, transform_indices = @transform_1, window_bounds = array<i64: 16, 512>}, {pipeline_mode = #tpu.pipeline_mode<synchronous>, transform_indices = @transform_2, window_bounds = array<i64: 128, 512>}, {pipeline_mode = #tpu.pipeline_mode<synchronous>, transform_indices = @transform_3, window_bounds = array<i64: 1, 512>}, {pipeline_mode = #tpu.pipeline_mode<synchronous>, transform_indices = @transform_4, window_bounds = array<i64: 128, 128>}, {pipeline_mode = #tpu.pipeline_mode<synchronous>, transform_indices = @transform_5, window_bounds = array<i64: 1, 128>}, {transform_indices = @transform_6, window_bounds = array<i64: 32, 128>}]} {
    %c0_i32 = arith.constant 0 : i32
    %0 = arith.cmpi eq, %arg0, %c0_i32 : i32
    %1 = arith.extui %0 : i1 to i32
    %c0_i32_0 = arith.constant 0 : i32
    %2 = arith.cmpi ne, %1, %c0_i32_0 : i32
    scf.if %2 {
      %cst_61 = arith.constant 0.000000e+00 : f32
      %157 = vector.broadcast %cst_61 : f32 to vector<8x128xf32>
      %c0_62 = arith.constant 0 : index
      %c0_63 = arith.constant 0 : index
      %158 = vector.load %arg8[%c0_62, %c0_63] : memref<8x128xf32, #tpu.memory_space<vmem>>, vector<8x128xf32>
      tpu.vector_store %arg8[%c0_62, %c0_63], %157 {strides = array<i32>} : memref<8x128xf32, #tpu.memory_space<vmem>>, vector<8x128xf32>,
      %cst_64 = arith.constant 0.000000e+00 : f32
      %159 = vector.broadcast %cst_64 : f32 to vector<8x128xf32>
      %c0_65 = arith.constant 0 : index
      %c0_66 = arith.constant 0 : index
      %160 = vector.load %arg9[%c0_65, %c0_66] : memref<8x128xf32, #tpu.memory_space<vmem>>, vector<8x128xf32>
      tpu.vector_store %arg9[%c0_65, %c0_66], %159 {strides = array<i32>} : memref<8x128xf32, #tpu.memory_space<vmem>>, vector<8x128xf32>,
    } else {
    }
    %c0 = arith.constant 0 : index
    %c0_1 = arith.constant 0 : index
    %3 = vector.load %arg1[%c0, %c0_1] : memref<32x16xf32, #tpu.memory_space<vmem>>, vector<32x16xf32>
    %c0_2 = arith.constant 0 : index
    %c0_3 = arith.constant 0 : index
    %4 = vector.load %arg2[%c0_2, %c0_3] : memref<16x512xf32, #tpu.memory_space<vmem>>, vector<16x512xf32>
    %cst = arith.constant dense<0.000000e+00> : vector<32x512xf32>
    %5 = tpu.matmul %3, %4, %cst {dimension_numbers = #tpu.dot_dimension_numbers<[1], [0], [0], [1], [0, 0, 1, 1], [], []>} : vector<32x16xf32>, vector<16x512xf32>, vector<32x512xf32> -> vector<32x512xf32>
    %c0_4 = arith.constant 0 : index
    %c0_5 = arith.constant 0 : index
    %6 = vector.load %arg4[%c0_4, %c0_5] : memref<1x512xf32, #tpu.memory_space<vmem>>, vector<1x512xf32>
    %7 = vector.broadcast %6 : vector<1x512xf32> to vector<32x512xf32>
    %8 = arith.addf %5, %7 : vector<32x512xf32>
    %c0_6 = arith.constant 0 : index
    %c0_7 = arith.constant 0 : index
    %9 = vector.load %arg11[%c0_6, %c0_7] : memref<32x512xf32, #tpu.memory_space<vmem>>, vector<32x512xf32>
    tpu.vector_store %arg11[%c0_6, %c0_7], %8 {strides = array<i32>} : memref<32x512xf32, #tpu.memory_space<vmem>>, vector<32x512xf32>,
    %c0_8 = arith.constant 0 : index
    %c0_9 = arith.constant 0 : index
    %10 = vector.load %arg8[%c0_8, %c0_9] : memref<8x128xf32, #tpu.memory_space<vmem>>, vector<8x128xf32>
    %c0_10 = arith.constant 0 : index
    %c0_11 = arith.constant 0 : index
    %11 = vector.load %arg9[%c0_10, %c0_11] : memref<8x128xf32, #tpu.memory_space<vmem>>, vector<8x128xf32>
    %c0_i32_12 = arith.constant 0 : i32
    %c8_i32 = arith.constant 8 : i32
    %12 = arith.muli %c0_i32_12, %c8_i32 : i32
    %13 = tpu.assume_multiple %12, 8 : i32
    %14 = arith.index_cast %13 : i32 to index
    %c0_13 = arith.constant 0 : index
    %15 = vector.load %arg11[%14, %c0_13] : memref<32x512xf32, #tpu.memory_space<vmem>>, vector<8x512xf32>
    %c0_14 = arith.constant 0 : index
    %c0_15 = arith.constant 0 : index
    %16 = vector.load %arg3[%c0_14, %c0_15] : memref<128x512xf32, #tpu.memory_space<vmem>>, vector<128x512xf32>
    %cst_16 = arith.constant dense<0.000000e+00> : vector<8x512xf32>
    %17 = tpu.matmul %10, %16, %cst_16 {dimension_numbers = #tpu.dot_dimension_numbers<[1], [0], [0], [1], [0, 0, 1, 1], [], []>} : vector<8x128xf32>, vector<128x512xf32>, vector<8x512xf32> -> vector<8x512xf32>
    %18 = arith.addf %15, %17 : vector<8x512xf32>
    %19 = vector.extract_strided_slice %18 {offsets = [0, 0], sizes = [8, 128], strides = [1, 1]} : vector<8x512xf32> to vector<8x128xf32>
    %20 = arith.negf %19 : vector<8x128xf32>
    %21 = math.exp %20 : vector<8x128xf32>
    %cst_17 = arith.constant 1.000000e+00 : f32
    %22 = vector.broadcast %cst_17 : f32 to vector<8x128xf32>
    %23 = arith.addf %22, %21 : vector<8x128xf32>
    %24 = arith.divf %22, %23 : vector<8x128xf32>
    %25 = vector.extract_strided_slice %18 {offsets = [0, 128], sizes = [8, 128], strides = [1, 1]} : vector<8x512xf32> to vector<8x128xf32>
    %26 = arith.negf %25 : vector<8x128xf32>
    %27 = math.exp %26 : vector<8x128xf32>
    %cst_18 = arith.constant 1.000000e+00 : f32
    %28 = vector.broadcast %cst_18 : f32 to vector<8x128xf32>
    %29 = arith.addf %28, %27 : vector<8x128xf32>
    %30 = arith.divf %28, %29 : vector<8x128xf32>
    %31 = vector.extract_strided_slice %18 {offsets = [0, 256], sizes = [8, 128], strides = [1, 1]} : vector<8x512xf32> to vector<8x128xf32>
    %32 = math.tanh %31 : vector<8x128xf32>
    %33 = vector.extract_strided_slice %18 {offsets = [0, 384], sizes = [8, 128], strides = [1, 1]} : vector<8x512xf32> to vector<8x128xf32>
    %34 = arith.negf %33 : vector<8x128xf32>
    %35 = math.exp %34 : vector<8x128xf32>
    %cst_19 = arith.constant 1.000000e+00 : f32
    %36 = vector.broadcast %cst_19 : f32 to vector<8x128xf32>
    %37 = arith.addf %36, %35 : vector<8x128xf32>
    %38 = arith.divf %36, %37 : vector<8x128xf32>
    %39 = arith.mulf %30, %11 : vector<8x128xf32>
    %40 = arith.mulf %24, %32 : vector<8x128xf32>
    %41 = arith.addf %39, %40 : vector<8x128xf32>
    %42 = math.tanh %41 : vector<8x128xf32>
    %43 = arith.mulf %38, %42 : vector<8x128xf32>
    %44 = arith.index_cast %13 : i32 to index
    %c0_20 = arith.constant 0 : index
    %45 = vector.load %arg10[%44, %c0_20] : memref<32x128xf32, #tpu.memory_space<vmem>>, vector<8x128xf32>
    tpu.vector_store %arg10[%44, %c0_20], %43 {strides = array<i32>} : memref<32x128xf32, #tpu.memory_space<vmem>>, vector<8x128xf32>,
    %c1_i32 = arith.constant 1 : i32
    %c8_i32_21 = arith.constant 8 : i32
    %46 = arith.muli %c1_i32, %c8_i32_21 : i32
    %47 = tpu.assume_multiple %46, 8 : i32
    %48 = arith.index_cast %47 : i32 to index
    %c0_22 = arith.constant 0 : index
    %49 = vector.load %arg11[%48, %c0_22] : memref<32x512xf32, #tpu.memory_space<vmem>>, vector<8x512xf32>
    %c0_23 = arith.constant 0 : index
    %c0_24 = arith.constant 0 : index
    %50 = vector.load %arg3[%c0_23, %c0_24] : memref<128x512xf32, #tpu.memory_space<vmem>>, vector<128x512xf32>
    %cst_25 = arith.constant dense<0.000000e+00> : vector<8x512xf32>
    %51 = tpu.matmul %43, %50, %cst_25 {dimension_numbers = #tpu.dot_dimension_numbers<[1], [0], [0], [1], [0, 0, 1, 1], [], []>} : vector<8x128xf32>, vector<128x512xf32>, vector<8x512xf32> -> vector<8x512xf32>
    %52 = arith.addf %49, %51 : vector<8x512xf32>
    %53 = vector.extract_strided_slice %52 {offsets = [0, 0], sizes = [8, 128], strides = [1, 1]} : vector<8x512xf32> to vector<8x128xf32>
    %54 = arith.negf %53 : vector<8x128xf32>
    %55 = math.exp %54 : vector<8x128xf32>
    %cst_26 = arith.constant 1.000000e+00 : f32
    %56 = vector.broadcast %cst_26 : f32 to vector<8x128xf32>
    %57 = arith.addf %56, %55 : vector<8x128xf32>
    %58 = arith.divf %56, %57 : vector<8x128xf32>
    %59 = vector.extract_strided_slice %52 {offsets = [0, 128], sizes = [8, 128], strides = [1, 1]} : vector<8x512xf32> to vector<8x128xf32>
    %60 = arith.negf %59 : vector<8x128xf32>
    %61 = math.exp %60 : vector<8x128xf32>
    %cst_27 = arith.constant 1.000000e+00 : f32
    %62 = vector.broadcast %cst_27 : f32 to vector<8x128xf32>
    %63 = arith.addf %62, %61 : vector<8x128xf32>
    %64 = arith.divf %62, %63 : vector<8x128xf32>
    %65 = vector.extract_strided_slice %52 {offsets = [0, 256], sizes = [8, 128], strides = [1, 1]} : vector<8x512xf32> to vector<8x128xf32>
    %66 = math.tanh %65 : vector<8x128xf32>
    %67 = vector.extract_strided_slice %52 {offsets = [0, 384], sizes = [8, 128], strides = [1, 1]} : vector<8x512xf32> to vector<8x128xf32>
    %68 = arith.negf %67 : vector<8x128xf32>
    %69 = math.exp %68 : vector<8x128xf32>
    %cst_28 = arith.constant 1.000000e+00 : f32
    %70 = vector.broadcast %cst_28 : f32 to vector<8x128xf32>
    %71 = arith.addf %70, %69 : vector<8x128xf32>
    %72 = arith.divf %70, %71 : vector<8x128xf32>
    %73 = arith.mulf %64, %41 : vector<8x128xf32>
    %74 = arith.mulf %58, %66 : vector<8x128xf32>
    %75 = arith.addf %73, %74 : vector<8x128xf32>
    %76 = math.tanh %75 : vector<8x128xf32>
    %77 = arith.mulf %72, %76 : vector<8x128xf32>
    %78 = arith.index_cast %47 : i32 to index
    %c0_29 = arith.constant 0 : index
    %79 = vector.load %arg10[%78, %c0_29] : memref<32x128xf32, #tpu.memory_space<vmem>>, vector<8x128xf32>
    tpu.vector_store %arg10[%78, %c0_29], %77 {strides = array<i32>} : memref<32x128xf32, #tpu.memory_space<vmem>>, vector<8x128xf32>,
    %c2_i32 = arith.constant 2 : i32
    %c8_i32_30 = arith.constant 8 : i32
    %80 = arith.muli %c2_i32, %c8_i32_30 : i32
    %81 = tpu.assume_multiple %80, 8 : i32
    %82 = arith.index_cast %81 : i32 to index
    %c0_31 = arith.constant 0 : index
    %83 = vector.load %arg11[%82, %c0_31] : memref<32x512xf32, #tpu.memory_space<vmem>>, vector<8x512xf32>
    %c0_32 = arith.constant 0 : index
    %c0_33 = arith.constant 0 : index
    %84 = vector.load %arg3[%c0_32, %c0_33] : memref<128x512xf32, #tpu.memory_space<vmem>>, vector<128x512xf32>
    %cst_34 = arith.constant dense<0.000000e+00> : vector<8x512xf32>
    %85 = tpu.matmul %77, %84, %cst_34 {dimension_numbers = #tpu.dot_dimension_numbers<[1], [0], [0], [1], [0, 0, 1, 1], [], []>} : vector<8x128xf32>, vector<128x512xf32>, vector<8x512xf32> -> vector<8x512xf32>
    %86 = arith.addf %83, %85 : vector<8x512xf32>
    %87 = vector.extract_strided_slice %86 {offsets = [0, 0], sizes = [8, 128], strides = [1, 1]} : vector<8x512xf32> to vector<8x128xf32>
    %88 = arith.negf %87 : vector<8x128xf32>
    %89 = math.exp %88 : vector<8x128xf32>
    %cst_35 = arith.constant 1.000000e+00 : f32
    %90 = vector.broadcast %cst_35 : f32 to vector<8x128xf32>
    %91 = arith.addf %90, %89 : vector<8x128xf32>
    %92 = arith.divf %90, %91 : vector<8x128xf32>
    %93 = vector.extract_strided_slice %86 {offsets = [0, 128], sizes = [8, 128], strides = [1, 1]} : vector<8x512xf32> to vector<8x128xf32>
    %94 = arith.negf %93 : vector<8x128xf32>
    %95 = math.exp %94 : vector<8x128xf32>
    %cst_36 = arith.constant 1.000000e+00 : f32
    %96 = vector.broadcast %cst_36 : f32 to vector<8x128xf32>
    %97 = arith.addf %96, %95 : vector<8x128xf32>
    %98 = arith.divf %96, %97 : vector<8x128xf32>
    %99 = vector.extract_strided_slice %86 {offsets = [0, 256], sizes = [8, 128], strides = [1, 1]} : vector<8x512xf32> to vector<8x128xf32>
    %100 = math.tanh %99 : vector<8x128xf32>
    %101 = vector.extract_strided_slice %86 {offsets = [0, 384], sizes = [8, 128], strides = [1, 1]} : vector<8x512xf32> to vector<8x128xf32>
    %102 = arith.negf %101 : vector<8x128xf32>
    %103 = math.exp %102 : vector<8x128xf32>
    %cst_37 = arith.constant 1.000000e+00 : f32
    %104 = vector.broadcast %cst_37 : f32 to vector<8x128xf32>
    %105 = arith.addf %104, %103 : vector<8x128xf32>
    %106 = arith.divf %104, %105 : vector<8x128xf32>
    %107 = arith.mulf %98, %75 : vector<8x128xf32>
    %108 = arith.mulf %92, %100 : vector<8x128xf32>
    %109 = arith.addf %107, %108 : vector<8x128xf32>
    %110 = math.tanh %109 : vector<8x128xf32>
    %111 = arith.mulf %106, %110 : vector<8x128xf32>
    %112 = arith.index_cast %81 : i32 to index
    %c0_38 = arith.constant 0 : index
    %113 = vector.load %arg10[%112, %c0_38] : memref<32x128xf32, #tpu.memory_space<vmem>>, vector<8x128xf32>
    tpu.vector_store %arg10[%112, %c0_38], %111 {strides = array<i32>} : memref<32x128xf32, #tpu.memory_space<vmem>>, vector<8x128xf32>,
    %c3_i32 = arith.constant 3 : i32
    %c8_i32_39 = arith.constant 8 : i32
    %114 = arith.muli %c3_i32, %c8_i32_39 : i32
    %115 = tpu.assume_multiple %114, 8 : i32
    %116 = arith.index_cast %115 : i32 to index
    %c0_40 = arith.constant 0 : index
    %117 = vector.load %arg11[%116, %c0_40] : memref<32x512xf32, #tpu.memory_space<vmem>>, vector<8x512xf32>
    %c0_41 = arith.constant 0 : index
    %c0_42 = arith.constant 0 : index
    %118 = vector.load %arg3[%c0_41, %c0_42] : memref<128x512xf32, #tpu.memory_space<vmem>>, vector<128x512xf32>
    %cst_43 = arith.constant dense<0.000000e+00> : vector<8x512xf32>
    %119 = tpu.matmul %111, %118, %cst_43 {dimension_numbers = #tpu.dot_dimension_numbers<[1], [0], [0], [1], [0, 0, 1, 1], [], []>} : vector<8x128xf32>, vector<128x512xf32>, vector<8x512xf32> -> vector<8x512xf32>
    %120 = arith.addf %117, %119 : vector<8x512xf32>
    %121 = vector.extract_strided_slice %120 {offsets = [0, 0], sizes = [8, 128], strides = [1, 1]} : vector<8x512xf32> to vector<8x128xf32>
    %122 = arith.negf %121 : vector<8x128xf32>
    %123 = math.exp %122 : vector<8x128xf32>
    %cst_44 = arith.constant 1.000000e+00 : f32
    %124 = vector.broadcast %cst_44 : f32 to vector<8x128xf32>
    %125 = arith.addf %124, %123 : vector<8x128xf32>
    %126 = arith.divf %124, %125 : vector<8x128xf32>
    %127 = vector.extract_strided_slice %120 {offsets = [0, 128], sizes = [8, 128], strides = [1, 1]} : vector<8x512xf32> to vector<8x128xf32>
    %128 = arith.negf %127 : vector<8x128xf32>
    %129 = math.exp %128 : vector<8x128xf32>
    %cst_45 = arith.constant 1.000000e+00 : f32
    %130 = vector.broadcast %cst_45 : f32 to vector<8x128xf32>
    %131 = arith.addf %130, %129 : vector<8x128xf32>
    %132 = arith.divf %130, %131 : vector<8x128xf32>
    %133 = vector.extract_strided_slice %120 {offsets = [0, 256], sizes = [8, 128], strides = [1, 1]} : vector<8x512xf32> to vector<8x128xf32>
    %134 = math.tanh %133 : vector<8x128xf32>
    %135 = vector.extract_strided_slice %120 {offsets = [0, 384], sizes = [8, 128], strides = [1, 1]} : vector<8x512xf32> to vector<8x128xf32>
    %136 = arith.negf %135 : vector<8x128xf32>
    %137 = math.exp %136 : vector<8x128xf32>
    %cst_46 = arith.constant 1.000000e+00 : f32
    %138 = vector.broadcast %cst_46 : f32 to vector<8x128xf32>
    %139 = arith.addf %138, %137 : vector<8x128xf32>
    %140 = arith.divf %138, %139 : vector<8x128xf32>
    %141 = arith.mulf %132, %109 : vector<8x128xf32>
    %142 = arith.mulf %126, %134 : vector<8x128xf32>
    %143 = arith.addf %141, %142 : vector<8x128xf32>
    %144 = math.tanh %143 : vector<8x128xf32>
    %145 = arith.mulf %140, %144 : vector<8x128xf32>
    %146 = arith.index_cast %115 : i32 to index
    %c0_47 = arith.constant 0 : index
    %147 = vector.load %arg10[%146, %c0_47] : memref<32x128xf32, #tpu.memory_space<vmem>>, vector<8x128xf32>
    tpu.vector_store %arg10[%146, %c0_47], %145 {strides = array<i32>} : memref<32x128xf32, #tpu.memory_space<vmem>>, vector<8x128xf32>,
    %c4_i32 = arith.constant 4 : i32
    %c0_48 = arith.constant 0 : index
    %c0_49 = arith.constant 0 : index
    %148 = vector.load %arg8[%c0_48, %c0_49] : memref<8x128xf32, #tpu.memory_space<vmem>>, vector<8x128xf32>
    tpu.vector_store %arg8[%c0_48, %c0_49], %145 {strides = array<i32>} : memref<8x128xf32, #tpu.memory_space<vmem>>, vector<8x128xf32>,
    %c0_50 = arith.constant 0 : index
    %c0_51 = arith.constant 0 : index
    %149 = vector.load %arg9[%c0_50, %c0_51] : memref<8x128xf32, #tpu.memory_space<vmem>>, vector<8x128xf32>
    tpu.vector_store %arg9[%c0_50, %c0_51], %143 {strides = array<i32>} : memref<8x128xf32, #tpu.memory_space<vmem>>, vector<8x128xf32>,
    %c0_52 = arith.constant 0 : index
    %c0_53 = arith.constant 0 : index
    %150 = vector.load %arg10[%c0_52, %c0_53] : memref<32x128xf32, #tpu.memory_space<vmem>>, vector<32x128xf32>
    %c0_54 = arith.constant 0 : index
    %c0_55 = arith.constant 0 : index
    %151 = vector.load %arg5[%c0_54, %c0_55] : memref<128x128xf32, #tpu.memory_space<vmem>>, vector<128x128xf32>
    %cst_56 = arith.constant dense<0.000000e+00> : vector<32x128xf32>
    %152 = tpu.matmul %150, %151, %cst_56 {dimension_numbers = #tpu.dot_dimension_numbers<[1], [0], [0], [1], [0, 0, 1, 1], [], []>} : vector<32x128xf32>, vector<128x128xf32>, vector<32x128xf32> -> vector<32x128xf32>
    %c0_57 = arith.constant 0 : index
    %c0_58 = arith.constant 0 : index
    %153 = vector.load %arg6[%c0_57, %c0_58] : memref<1x128xf32, #tpu.memory_space<vmem>>, vector<1x128xf32>
    %154 = vector.broadcast %153 : vector<1x128xf32> to vector<32x128xf32>
    %155 = arith.addf %152, %154 : vector<32x128xf32>
    %c0_59 = arith.constant 0 : index
    %c0_60 = arith.constant 0 : index
    %156 = vector.load %arg7[%c0_59, %c0_60] : memref<32x128xf32, #tpu.memory_space<vmem>>, vector<32x128xf32>
    tpu.vector_store %arg7[%c0_59, %c0_60], %155 {strides = array<i32>} : memref<32x128xf32, #tpu.memory_space<vmem>>, vector<32x128xf32>,
    return
  }
  func.func @transform_0(%arg0: i32) -> (i32, i32) {
    %c0_i32 = arith.constant 0 : i32
    %c0_i32_0 = arith.constant 0 : i32
    return %arg0, %c0_i32 : i32, i32
  }
  func.func @transform_1(%arg0: i32) -> (i32, i32) {
    %c0_i32 = arith.constant 0 : i32
    %c0_i32_0 = arith.constant 0 : i32
    %c0_i32_1 = arith.constant 0 : i32
    return %c0_i32, %c0_i32_0 : i32, i32
  }
  func.func @transform_2(%arg0: i32) -> (i32, i32) {
    %c0_i32 = arith.constant 0 : i32
    %c0_i32_0 = arith.constant 0 : i32
    %c0_i32_1 = arith.constant 0 : i32
    return %c0_i32, %c0_i32_0 : i32, i32
  }
  func.func @transform_3(%arg0: i32) -> (i32, i32) {
    %c0_i32 = arith.constant 0 : i32
    %c0_i32_0 = arith.constant 0 : i32
    %c0_i32_1 = arith.constant 0 : i32
    return %c0_i32, %c0_i32_0 : i32, i32
  }
  func.func @transform_4(%arg0: i32) -> (i32, i32) {
    %c0_i32 = arith.constant 0 : i32
    %c0_i32_0 = arith.constant 0 : i32
    %c0_i32_1 = arith.constant 0 : i32
    return %c0_i32, %c0_i32_0 : i32, i32
  }
  func.func @transform_5(%arg0: i32) -> (i32, i32) {
    %c0_i32 = arith.constant 0 : i32
    %c0_i32_0 = arith.constant 0 : i32
    %c0_i32_1 = arith.constant 0 : i32
    return %c0_i32, %c0_i32_0 : i32, i32
  }
  func.func @transform_6(%arg0: i32) -> (i32, i32) {
    %c0_i32 = arith.constant 0 : i32
    %c0_i32_0 = arith.constant 0 : i32
    return %arg0, %c0_i32 : i32, i32
  }
}

</mosaic_0001>

<bundles_post_ra>
// kernel: tpu_custom_call.1
= control target key start
LH: loop header
LB: loop body
LE: loop exit
PB: predicated region body
PF: predicated region fallthrough
CT: control target
= control target key end

     0   :  { %11 = vsyncpa [#allocation7], 0  ;;  %s2453_s0 = inlined_call_operand.vmem [shape: f32[64,16], index: 0, kind: input, shape index: {}]   ;;  %s2454_s1 = inlined_call_operand.vmem [shape: f32[16,512], index: 1, kind: input, shape index: {}]   ;;  %s2455_s2 = inlined_call_operand.hbm [shape: f32[128,512], index: 2, kind: input, shape index: {}]   ;;  %s2456_s3 = inlined_call_operand.vmem [shape: f32[1,512], index: 3, kind: input, shape index: {}]   ;;  %s2457_s4 = inlined_call_operand.hbm [shape: f32[128,128], index: 4, kind: input, shape index: {}]   ;;  %s2458_s5 = inlined_call_operand.vmem [shape: f32[1,128], index: 5, kind: input, shape index: {}]   ;;  %s2459_s6 = inlined_call_operand.hbm [shape: f32[64,128], index: 6, kind: output, shape index: {}]  }
   0x1   :  { %12 = vsyncpa [#allocation10], 0 }
   0x2   :  { %13 = vsyncpa [#allocation8], 0 }
   0x3   :  { %15 = vsyncpa [#allocation8 + $0x1], 0  ;;  %s1857_s21 = smov 0   ;;  %s1859_s22 = smov 0  }
   0x4   :  { %s1861_s23 = smov 0   ;;  %s1863_s24 = smov 0  }
   0x5 LB: > { %s1878_s25 = sadd.s32 4294967295, %s1811_s24   ;;  %s1503_s26 = sadd.s32 4294967294, %s1811_s24   ;;  %s1811_s24 = sphi %s1863_s24, %s2472_s24   ;;  %s1807_s23 = sphi %s1861_s23, %s2471_s23   ;;  %s1803_s22 = sphi %s1859_s22, %s2470_s22   ;;  %s1799_s21 = sphi %s1857_s21, %s2469_s21  }
   0x6   : > { %s1882_s27 = sadd.s32 1, %s1811_s24   ;;  %s159_s28 = sadd.s32 1, %s1807_s23 }
   0x7   : > { %s156_s29 = ssub.s32 %s1811_s24, %s1882_s27  ;;  %p169_p0 = scmp.ne.s32.totalorder %s1807_s23, %s1803_s22 }
   0x8   : > { %p157_p1 = scmp.eq.s32.totalorder %s156_s29, 0  ;;  %p170_p2 = scmp.eq.s32.totalorder %s1878_s25, 1 }
   0x9   : > { %p175_p3 = scmp.ne.s32.totalorder %s1803_s22, %s1799_s21  ;;  %p176_p4 = scmp.eq.s32.totalorder %s1503_s26, 1 }
   0xa   : > { %s1893_s30 = scalar_select %p157_p1, %s1807_s23, %s159_s28  }
   0xb   : > { %p1895_p5 = por %p170_p2, %p169_p0  ;;  %p1899_p6 = por %p176_p4, %p175_p3 }
   0xc   : > { %p1504_p7 = scmp.ge.s32.totalorder %s1811_s24, 1  ;;  %p183_p8 = scmp.lt.s32.totalorder %s1811_s24, 3 }
   0xd   : > { %p1505_p9 = scmp.ne.s32.totalorder %s1878_s25, 0  ;;  %p1570_p10 = scmp.eq.s32.totalorder %s1878_s25, 0 }
   0xe   : > { %p1907_p11 = pnand %p1504_p7, %p183_p8  ;;  %s197_s12 = sshll.u32 %s2455_s2, 4  ;;  %s198_s12 = int_to_ptr.hbm [resolvable:$true] %s197_s12 }
   0xf   : > { %s1813_s13 = smov [#allocation6]   ;;  %s214_s17 = sshll.u32 %s2457_s4, 4  ;;  %s215_s17 = int_to_ptr.hbm [resolvable:$true] %s214_s17 }
  0x10   : > { %p1559_p12 = pneg %p1907_p11  ;;  %s199_s14 = sshll.u32 %s1813_s13, 4  ;;  %s200_s14 = int_to_ptr.vmem [resolvable:$true] %s199_s14 }
  0x11   : > { %s1814_s18 = smov 512   ;;  %s1815_s19 = smov 32  }
  0x12   : > { %p1560_p13 = pnand %p1570_p10, %p1559_p12  ;;  %s1816_s20 = smov [#allocation9]  }
  0x13   : > { %s216_s26 = sshll.u32 %s1816_s20, 4  ;;  %s1817_s28 = smov 128   ;;  %s217_s26 = int_to_ptr.vmem [resolvable:$true] %s216_s26 }
  0x14   : > { %1562 = dma.hbm_to_vmem [thread:$0]  (!%p1560_p13), %s198_s12, 8192, %s200_s14, [#allocation7], %s1814_s18, %s1814_s18, %s1815_s19  }
  0x15   : > { %s1818_s29 = smov 8   ;;  %244 = sbr.rel (%p1907_p11) target bundleno = 918 (0x396), region = 44 }
  0x16   : > { %1565 = dma.hbm_to_vmem [thread:$0]  (!%p1560_p13), %s215_s17, 2048, %s217_s26, [#allocation10], %s1817_s28, %s1817_s28, %s1818_s29  }
  0x1a   : > { %1786 = dma.done.wait (%p1570_p10), [#allocation7], 8192  }
  0x1b   : > { %1788 = vsyncadd (%p1570_p10), [#allocation7], 4294959104 }
  0x1c   : > { %1790 = dma.done.wait (%p1570_p10), [#allocation10], 2048  }
  0x1d   : > { %1792 = vsyncadd (%p1570_p10), [#allocation10], 4294965248  ;;  %s277_s10 = sand.u32 1, %s1803_s22   ;;  %s1512_s11 = sshll.u32 %s1878_s25, 2 }
  0x1e   : > { %s1511_s9 = sshll.u32 %s277_s10, 5  ;;  %p281_p0 = scmp.lt.s32.totalorder %s1512_s11, 7 }
  0x1f   : > { %s1940_s16 = scalar_lea.vmem [#allocation11], %s1511_s9  ;;  %290 = sbr.rel (%p1505_p9) target bundleno = 39 (0x27), region = 56 }
  0x20   : > { %s2474_s11 = smov (!%p281_p0, %s1512_s11), 7 }
  0x21   : > { %s1513_s12 = sshll.u32 %s2474_s11, 3 }
  0x22   : > { %s1938_s15 = scalar_lea.vmem %s2453_s0, %s1513_s12 }
  0x24   : > { %v1819_v0 = vmov 0.0  }
  0x25   : > { %291 = vst [vmem:[#allocation2] sm:$0xff] %v1819_v0 }
  0x26   : > { %292 = vst [vmem:[#allocation3] sm:$0xff] %v1819_v0 }
  0x27 PF: > { %v302_v1 = vld [vmem:[%s2454_s1 + $0x28] sm:$0xff]  ;;  %v304_v2 = vld [vmem:[%s2454_s1 + $0x38] sm:$0xff]  ;;  %v1957_v5 = vld [vmem:[%s1938_s15] sm:$0xff]  ;;  %vm315_vm0 = vcmask 130048   ;;  %s1548_s11 = sshll.u32 %s1878_s25, 5  ;;  %s1413_s14 = sshll.u32 %s1940_s16, 4  ;;  %s1414_s14 = int_to_ptr.vmem [resolvable:$true] %s1413_s14 }
  0x28   : > { %v298_v3 = vld [vmem:[%s2454_s1 + $0x8] sm:$0xff]  ;;  %371 = vmatpush.msra.mxu1 %v302_v1  ;;  %429 = vmatpush.msra.mxu3 %v304_v2  ;;  %v300_v4 = vld [vmem:[%s2454_s1 + $0x18] sm:$0xff]  ;;  %v1959_v6 = vld [vmem:[#allocation6 + $0x1e0] sm:$0xff]  ;;  %s1412_s13 = scalar_lea.hbm %s2459_s6, %s1548_s11  ;;  %s1401_s18 = scalar_lea.sflag [#allocation8], %s277_s10 }
  0x29   : > { %v1961_v7 = vld [vmem:[#allocation6 + $0x1f8] sm:$0xff]  ;;  %v1967_v8 = vld [vmem:[#allocation6 + $0x1c0] sm:$0xff]  ;;  %v2010_v21 = vld [vmem:[#allocation6 + $0x1f0] sm:$0xff]  ;;  %s1415_s17 = sshll.u32 %s1412_s13, 4  ;;  %s1761_s26 = scalar_lea.hbm %s2459_s6, 64  ;;  %s1416_s17 = int_to_ptr.hbm [resolvable:$true] %s1415_s17 }
  0x2a   : > { %372 = vmatpush.msra.mxu1 %v298_v3  ;;  %430 = vmatpush.msra.mxu3 %v300_v4  ;;  %v1969_v9 = vld [vmem:[#allocation6 + $0x1d8] sm:$0xff]  ;;  %v1973_v10 = vld [vmem:[#allocation6 + $0x1a0] sm:$0xff]  ;;  %v301_v24 = vld [vmem:[%s2454_s1 + $0x20] sm:$0xff]  ;;  %s1755_s19 = sshra.s32 %s1416_s17, 4  ;;  %s1756_s19 = int_to_ptr.hbm [resolvable:$true] %s1755_s19 }
  0x2b   : > { %1519 = vmatmul.msk.f32.vlgmr.msra.gmra.mxu1 %vm315_vm0, %v1957_v5  ;;  %1527 = vmatmul.msk.f32.vlgmr.msra.gmra.mxu3 %vm315_vm0, %v1957_v5  ;;  %v1975_v11 = vld [vmem:[#allocation6 + $0x1b8] sm:$0xff]  ;;  %v303_v12 = vld [vmem:[%s2454_s1 + $0x30] sm:$0xff]  ;;  %v2023_v25 = vld [vmem:[#allocation6 + $0x1d0] sm:$0xff]  ;;  %s1757_s20 = scalar_lea.hbm %s1756_s19, 32  ;;  %p1762_p4 = scmp.lt.s32.totalorder %s1756_s19, %s2459_s6 }
  0x2c   : > { %533 = vmatpush.msrb.mxu1 %v1959_v6  ;;  %593 = vmatpush.msrb.mxu3 %v1961_v7  ;;  %v299_v13 = vld [vmem:[%s2454_s1 + $0x10] sm:$0xff]  ;;  %v1987_v15 = vld [vmem:[#allocation6 + $0x198] sm:$0xff]  ;;  %v297_v26 = vld [vmem:[%s2454_s1] sm:$0xff]  ;;  %p1758_p1 = scmp.ne.s32.totalorder %s1756_s19, %s1757_s20  ;;  %p1763_p7 = scmp.lt.s32.totalorder %s1761_s26, %s1757_s20 }
  0x2d   : > { %v1985_v14 = vld [vmem:[#allocation6 + $0x180] sm:$0xff]  ;;  %400 = vmatpush.msra.mxu2 %v303_v12  ;;  %v1992_v16 = vld [vmem:[%s1938_s15 + $0x8] sm:$0xff]  ;;  %342 = vmatpush.msra.mxu0 %v301_v24  ;;  %v2045_v32 = vld [vmem:[#allocation6 + $0x1b0] sm:$0xff] }
  0x2e   : > { %534 = vmatpush.msrb.mxu1 %v1967_v8  ;;  %594 = vmatpush.msrb.mxu3 %v1969_v9  ;;  %v1994_v17 = vld [vmem:[#allocation6 + $0x160] sm:$0xff]  ;;  %v1996_v18 = vld [vmem:[#allocation6 + $0x178] sm:$0xff]  ;;  %v2057_v35 = vld [vmem:[#allocation6 + $0x190] sm:$0xff]  ;;  %p1759_p2 = pnand %p1758_p1, %p1895_p5  ;;  %p1764_p8 = por %p1763_p7, %p1762_p4 }
  0x2f   : > { %401 = vmatpush.msra.mxu2 %v299_v13  ;;  %v2004_v19 = vld [vmem:[#allocation6 + $0x140] sm:$0xff]  ;;  %v2006_v20 = vld [vmem:[#allocation6 + $0x158] sm:$0xff]  ;;  %343 = vmatpush.msra.mxu0 %v297_v26  ;;  %v2077_v40 = vld [vmem:[%s1938_s15 + $0x18] sm:$0xff] }
  0x30   : > { %535 = vmatpush.msrb.mxu1 %v1973_v10  ;;  %595 = vmatpush.msrb.mxu3 %v1975_v11  ;;  %v2012_v22 = vld [vmem:[#allocation6 + $0x120] sm:$0xff]  ;;  %v2014_v23 = vld [vmem:[#allocation6 + $0x138] sm:$0xff]  ;;  %v2083_v42 = vld [vmem:[#allocation6 + $0x170] sm:$0xff]  ;;  %p1760_p3 = pneg %p1759_p2 }
  0x31   : > { %1523 = vmatmul.msk.f32.vlgmr.msra.gmra.mxu2 %vm315_vm0, %v1957_v5  ;;  %v2028_v27 = vld [vmem:[#allocation6 + $0x100] sm:$0xff]  ;;  %v2030_v28 = vld [vmem:[#allocation6 + $0x118] sm:$0xff]  ;;  %1515 = vmatmul.msk.f32.vlgmr.msra.gmra.mxu0 %vm315_vm0, %v1957_v5  ;;  %v2096_v45 = vld [vmem:[#allocation6 + $0x150] sm:$0xff] }
  0x32   : > { %536 = vmatpush.msrb.mxu1 %v1985_v14  ;;  %596 = vmatpush.msrb.mxu3 %v1987_v15  ;;  %v2036_v29 = vld [vmem:[%s1938_s15 + $0x10] sm:$0xff]  ;;  %v2040_v31 = vld [vmem:[#allocation6 + $0xf8] sm:$0xff]  ;;  %v2105_v48 = vld [vmem:[#allocation6 + $0x130] sm:$0xff]  ;;  %p1765_p9 = pnand %p1764_p8, %p1760_p3 }
  0x33   : > { %1520 = vmatmul.msk.f32.gmra.mxu1 %vm315_vm0, %v1992_v16  ;;  %1528 = vmatmul.msk.f32.gmra.mxu3 %vm315_vm0, %v1992_v16  ;;  %v2038_v30 = vld [vmem:[#allocation6 + $0xe0] sm:$0xff]  ;;  %2465 = vst [vmem:[#allocation15_spill] sm:$0xff] %v2040_v31  ;;  %v2053_v34 = vld [vmem:[#allocation6 + $0xd8] sm:$0xff]  ;;  %v2115_v51 = vld [vmem:[#allocation6 + $0x110] sm:$0xff] }
  0x34   : > { %537 = vmatpush.msrb.mxu1 %v1994_v17  ;;  %597 = vmatpush.msrb.mxu3 %v1996_v18  ;;  %v2051_v33 = vld [vmem:[#allocation6 + $0xc0] sm:$0xff]  ;;  %2466 = vst [vmem:[#allocation16_spill] sm:$0xff] %v2053_v34  ;;  %v2062_v37 = vld [vmem:[#allocation6 + $0xb8] sm:$0xff]  ;;  %v2120_v52 = vld [vmem:[#allocation6 + $0x1e8] sm:$0xff] }
  0x35   : > { %573 = vmatpush.msrb.mxu2 %v2010_v21  ;;  %v2059_v36 = vld [vmem:[#allocation6 + $0xa0] sm:$0xff]  ;;  %v2071_v39 = vld [vmem:[#allocation6 + $0x98] sm:$0xff]  ;;  %752 = vmatpush.msrb.mxu0 %v1959_v6  ;;  %v2127_v54 = vld [vmem:[#allocation2] sm:$0xff] }
  0x36   : > { %538 = vmatpush.msrb.mxu1 %v2004_v19  ;;  %598 = vmatpush.msrb.mxu3 %v2006_v20  ;;  %v2068_v38 = vld [vmem:[#allocation6 + $0x80] sm:$0xff]  ;;  %v2088_v43 = vld [vmem:[#allocation6 + $0x78] sm:$0xff]  ;;  %v2129_v55 = vld [vmem:[#allocation6 + $0xf0] sm:$0xff] }
  0x37   : > { %574 = vmatpush.msrb.mxu2 %v2023_v25  ;;  %v2081_v41 = vld [vmem:[#allocation6 + $0x60] sm:$0xff]  ;;  %753 = vmatpush.msrb.mxu0 %v1967_v8  ;;  %v2100_v46 = vld [vmem:[#allocation6 + $0x58] sm:$0xff]  ;;  %v2133_v56 = vld [vmem:[#allocation6 + $0x1c8] sm:$0xff] }
  0x38   : > { %539 = vmatpush.msrb.mxu1 %v2012_v22  ;;  %599 = vmatpush.msrb.mxu3 %v2014_v23  ;;  %v2094_v44 = vld [vmem:[#allocation6 + $0x40] sm:$0xff]  ;;  %v2110_v49 = vld [vmem:[#allocation6 + $0x38] sm:$0xff]  ;;  %v2137_v57 = vld [vmem:[#allocation6 + $0xd0] sm:$0xff] }
  0x39   : > { %575 = vmatpush.msrb.mxu2 %v2045_v32  ;;  %v2103_v47 = vld [vmem:[#allocation6 + $0x20] sm:$0xff]  ;;  %754 = vmatpush.msrb.mxu0 %v1973_v10  ;;  %v2122_v53 = vld [vmem:[#allocation6 + $0x18] sm:$0xff]  ;;  %v2141_v58 = vld [vmem:[#allocation6 + $0x1a8] sm:$0xff] }
  0x3a   : > { %540 = vmatpush.msrb.mxu1 %v2028_v27  ;;  %600 = vmatpush.msrb.mxu3 %v2030_v28  ;;  %v2113_v50 = vld [vmem:[#allocation6] sm:$0xff]  ;;  %v2145_v59 = vld [vmem:[#allocation6 + $0xb0] sm:$0xff]  ;;  %v2148_v60 = vld [vmem:[#allocation6 + $0x188] sm:$0xff] }
  0x3b   : > { %1521 = vmatmul.msk.f32.gmra.mxu1 %vm315_vm0, %v2036_v29  ;;  %1529 = vmatmul.msk.f32.gmra.mxu3 %vm315_vm0, %v2036_v29  ;;  %v2152_v61 = vld [vmem:[#allocation6 + $0x90] sm:$0xff]  ;;  %v2157_v62 = vld [vmem:[#allocation6 + $0x168] sm:$0xff] }
  0x3c   : > { %541 = vmatpush.msrb.mxu1 %v2038_v30  ;;  %601 = vmatpush.msrb.mxu3 %v2040_v31  ;;  %v2163_v63 = vld [vmem:[#allocation6 + $0x70] sm:$0xff]  ;;  %v2166_v0 = vld [vmem:[#allocation6 + $0x148] sm:$0xff] }
  0x3d   : > { %576 = vmatpush.msrb.mxu2 %v2057_v35  ;;  %755 = vmatpush.msrb.mxu0 %v1985_v14  ;;  %v2170_v1 = vld [vmem:[#allocation6 + $0x50] sm:$0xff]  ;;  %v2174_v2 = vld [vmem:[#allocation6 + $0x128] sm:$0xff] }
  0x3e   : > { %542 = vmatpush.msrb.mxu1 %v2051_v33  ;;  %602 = vmatpush.msrb.mxu3 %v2053_v34  ;;  %v2178_v3 = vld [vmem:[#allocation6 + $0x30] sm:$0xff]  ;;  %v2182_v4 = vld [vmem:[#allocation6 + $0x108] sm:$0xff] }
  0x3f   : > { %1524 = vmatmul.msk.f32.gmra.mxu2 %vm315_vm0, %v1992_v16  ;;  %1516 = vmatmul.msk.f32.gmra.mxu0 %vm315_vm0, %v1992_v16  ;;  %v2186_v5 = vld [vmem:[#allocation6 + $0x10] sm:$0xff]  ;;  %v2190_v12 = vld [vmem:[#allocation6 + $0xe8] sm:$0xff] }
  0x40   : > { %543 = vmatpush.msrb.mxu1 %v2059_v36  ;;  %603 = vmatpush.msrb.mxu3 %v2062_v37  ;;  %v2196_v13 = vld [vmem:[#allocation6 + $0xc8] sm:$0xff] }
  0x41   : > { %577 = vmatpush.msrb.mxu2 %v2083_v42  ;;  %756 = vmatpush.msrb.mxu0 %v1994_v17  ;;  %v2201_v16 = vld [vmem:[#allocation6 + $0xa8] sm:$0xff] }
  0x42   : > { %544 = vmatpush.msrb.mxu1 %v2068_v38  ;;  %604 = vmatpush.msrb.mxu3 %v2071_v39  ;;  %v2208_v24 = vld [vmem:[#allocation6 + $0x88] sm:$0xff] }
  0x43   : > { %1522 = vmatmul.msk.f32.gmra.mxu1 %vm315_vm0, %v2077_v40  ;;  %1530 = vmatmul.msk.f32.gmra.mxu3 %vm315_vm0, %v2077_v40  ;;  %v2214_v26 = vld [vmem:[#allocation6 + $0x68] sm:$0xff] }
  0x44   : > { %545 = vmatpush.msrb.mxu1 %v2081_v41  ;;  %605 = vmatpush.msrb.mxu3 %v2088_v43 }
  0x45   : > { %578 = vmatpush.msrb.mxu2 %v2096_v45  ;;  %757 = vmatpush.msrb.mxu0 %v2004_v19 }
  0x46   : > { %546 = vmatpush.msrb.mxu1 %v2094_v44  ;;  %606 = vmatpush.msrb.mxu3 %v2100_v46 }
  0x47   : > { %579 = vmatpush.msrb.mxu2 %v2105_v48  ;;  %758 = vmatpush.msrb.mxu0 %v2012_v22 }
  0x48   : > { %547 = vmatpush.msrb.mxu1 %v2103_v47  ;;  %607 = vmatpush.msrb.mxu3 %v2110_v49 }
  0x49   : > { %1525 = vmatmul.msk.f32.gmra.mxu2 %vm315_vm0, %v2036_v29  ;;  %759 = vmatpush.msrb.mxu0 %v2028_v27 }
  0x4a   : > { %548 = vmatpush.msrb.mxu1 %v2113_v50  ;;  %580 = vmatpush.msrb.mxu2 %v2115_v51 }
  0x4b   : > { %608 = vmatpush.msrb.mxu3 %v2122_v53  ;;  %549 = vmatmul.f32.vlgmr.msrb.gmra.mxu1 %v2127_v54 }
  0x4c   : > { %553 = vmatpush.msra.mxu1 %v2120_v52  ;;  %581 = vmatpush.msrb.mxu2 %v2129_v55 }
  0x4d   : > { %609 = vmatmul.f32.vlgmr.msrb.gmra.mxu3 %v2127_v54  ;;  %1517 = vmatmul.msk.f32.gmra.mxu0 %vm315_vm0, %v2036_v29  ;;  %v2220_v29 = vld [vmem:[#allocation6 + $0x48] sm:$0xff] }
  0x4e   : > { %554 = vmatpush.msra.mxu1 %v2133_v56  ;;  %582 = vmatpush.msrb.mxu2 %v2137_v57 }
  0x4f   : > { %812 = vmatpush.msra.mxu3 %v1961_v7  ;;  %760 = vmatpush.msrb.mxu0 %v2038_v30 }
  0x50   : > { %555 = vmatpush.msra.mxu1 %v2141_v58  ;;  %583 = vmatpush.msrb.mxu2 %v2145_v59 }
  0x51   : > { %813 = vmatpush.msra.mxu3 %v1969_v9  ;;  %1526 = vmatmul.msk.f32.gmra.mxu2 %vm315_vm0, %v2077_v40 }
  0x52   : > { %556 = vmatpush.msra.mxu1 %v2148_v60  ;;  %584 = vmatpush.msrb.mxu2 %v2152_v61 }
  0x53   : > { %814 = vmatpush.msra.mxu3 %v1975_v11  ;;  %761 = vmatpush.msrb.mxu0 %v2051_v33 }
  0x54   : > { %557 = vmatpush.msra.mxu1 %v2157_v62  ;;  %585 = vmatpush.msrb.mxu2 %v2163_v63 }
  0x55   : > { %815 = vmatpush.msra.mxu3 %v1987_v15  ;;  %762 = vmatpush.msrb.mxu0 %v2059_v36 }
  0x56   : > { %558 = vmatpush.msra.mxu1 %v2166_v0  ;;  %586 = vmatpush.msrb.mxu2 %v2170_v1 }
  0x57   : > { %816 = vmatpush.msra.mxu3 %v1996_v18  ;;  %763 = vmatpush.msrb.mxu0 %v2068_v38 }
  0x58   : > { %559 = vmatpush.msra.mxu1 %v2174_v2  ;;  %587 = vmatpush.msrb.mxu2 %v2178_v3 }
  0x59   : > { %817 = vmatpush.msra.mxu3 %v2006_v20  ;;  %1518 = vmatmul.msk.f32.gmra.mxu0 %vm315_vm0, %v2077_v40 }
  0x5a   : > { %560 = vmatpush.msra.mxu1 %v2182_v4  ;;  %588 = vmatpush.msrb.mxu2 %v2186_v5 }
  0x5b   : > { %818 = vmatpush.msra.mxu3 %v2014_v23  ;;  %589 = vmatmul.f32.vlgmr.msrb.gmra.mxu2 %v2127_v54 }
  0x5c   : > { %561 = vmatpush.msra.mxu1 %v2190_v12  ;;  %792 = vmatpush.msra.mxu2 %v2010_v21 }
  0x5d   : > { %819 = vmatpush.msra.mxu3 %v2030_v28  ;;  %764 = vmatpush.msrb.mxu0 %v2081_v41 }
  0x5e   : > { %562 = vmatpush.msra.mxu1 %v2196_v13  ;;  %793 = vmatpush.msra.mxu2 %v2023_v25 }
  0x5f   : > { %820 = vmatpush.msra.mxu3 %v2040_v31  ;;  %v2226_v31 = vld [vmem:[#allocation6 + $0x28] sm:$0xff]  ;;  %765 = vmatpush.msrb.mxu0 %v2094_v44 }
  0x60   : > { %563 = vmatpush.msra.mxu1 %v2201_v16  ;;  %794 = vmatpush.msra.mxu2 %v2045_v32 }
  0x61   : > { %821 = vmatpush.msra.mxu3 %v2053_v34  ;;  %v2232_v34 = vld [vmem:[#allocation6 + $0x8] sm:$0xff]  ;;  %766 = vmatpush.msrb.mxu0 %v2103_v47 }
  0x62   : > { %564 = vmatpush.msra.mxu1 %v2208_v24  ;;  %795 = vmatpush.msra.mxu2 %v2057_v35 }
  0x63   : > { %822 = vmatpush.msra.mxu3 %v2062_v37  ;;  %767 = vmatpush.msrb.mxu0 %v2113_v50 }
  0x64   : > { %565 = vmatpush.msra.mxu1 %v2214_v26  ;;  %796 = vmatpush.msra.mxu2 %v2083_v42 }
  0x65   : > { %823 = vmatpush.msra.mxu3 %v2071_v39  ;;  %972 = vmatpush.msra.mxu0 %v1959_v6  ;;  %v2467_v6 = vld [vmem:[#allocation15_spill] sm:$0xff] }
  0x66   : > { %566 = vmatpush.msra.mxu1 %v2220_v29  ;;  %797 = vmatpush.msra.mxu2 %v2096_v45 }
  0x67   : > { %824 = vmatpush.msra.mxu3 %v2088_v43  ;;  %973 = vmatpush.msra.mxu0 %v1967_v8 }
  0x68   : > { %567 = vmatpush.msra.mxu1 %v2226_v31  ;;  %798 = vmatpush.msra.mxu2 %v2105_v48 }
  0x69   : > { %825 = vmatpush.msra.mxu3 %v2100_v46  ;;  %974 = vmatpush.msra.mxu0 %v1973_v10 }
  0x6a   : > { %568 = vmatpush.msra.mxu1 %v2232_v34  ;;  %799 = vmatpush.msra.mxu2 %v2115_v51 }
  0x6b   : > { %569 = vmatmul.f32.vlgmr.msra.gmra.mxu1 %v2127_v54  ;;  %826 = vmatpush.msra.mxu3 %v2110_v49 }
  0x6c   : > { %772 = vmatpush.msrb.mxu1 %v2120_v52  ;;  %800 = vmatpush.msra.mxu2 %v2129_v55 }
  0x6d   : > { %827 = vmatpush.msra.mxu3 %v2122_v53  ;;  %975 = vmatpush.msra.mxu0 %v1985_v14 }
  0x6e   : > { %773 = vmatpush.msrb.mxu1 %v2133_v56  ;;  %801 = vmatpush.msra.mxu2 %v2137_v57 }
  0x6f   : > { %1032 = vmatpush.msrb.mxu3 %v1961_v7  ;;  %976 = vmatpush.msra.mxu0 %v1994_v17  ;;  %v2468_v7 = vld [vmem:[#allocation16_spill] sm:$0xff] }
  0x70   : > { %774 = vmatpush.msrb.mxu1 %v2141_v58  ;;  %802 = vmatpush.msra.mxu2 %v2145_v59 }
  0x71   : > { %1033 = vmatpush.msrb.mxu3 %v1969_v9  ;;  %977 = vmatpush.msra.mxu0 %v2004_v19  ;;  %v305_v9 = vld [vmem:[%s2456_s3] sm:$0xf] }
  0x72   : > { %775 = vmatpush.msrb.mxu1 %v2148_v60  ;;  %803 = vmatpush.msra.mxu2 %v2152_v61  ;;  %v310_v17 = vperm.slane %v305_v9, 3 }
  0x73   : > { %1034 = vmatpush.msrb.mxu3 %v1975_v11  ;;  %978 = vmatpush.msra.mxu0 %v2012_v22  ;;  %v308_v11 = vperm.slane %v305_v9, 1 }
  0x74   : > { %776 = vmatpush.msrb.mxu1 %v2157_v62  ;;  %804 = vmatpush.msra.mxu2 %v2163_v63 }
  0x75   : > { %1035 = vmatpush.msrb.mxu3 %v1987_v15  ;;  %979 = vmatpush.msra.mxu0 %v2028_v27 }
  0x76   : > { %777 = vmatpush.msrb.mxu1 %v2166_v0  ;;  %805 = vmatpush.msra.mxu2 %v2170_v1 }
  0x77   : > { %1036 = vmatpush.msrb.mxu3 %v1996_v18  ;;  %980 = vmatpush.msra.mxu0 %v2038_v30  ;;  %v309_v30 = vperm.slane %v305_v9, 2 }
  0x78   : > { %778 = vmatpush.msrb.mxu1 %v2174_v2  ;;  %806 = vmatpush.msra.mxu2 %v2178_v3 }
  0x79   : > { %1037 = vmatpush.msrb.mxu3 %v2006_v20  ;;  %981 = vmatpush.msra.mxu0 %v2051_v33 }
  0x7a   : > { %779 = vmatpush.msrb.mxu1 %v2182_v4  ;;  %807 = vmatpush.msra.mxu2 %v2186_v5 }
  0x7b   : > { %1038 = vmatpush.msrb.mxu3 %v2014_v23  ;;  %982 = vmatpush.msra.mxu0 %v2059_v36 }
  0x7c   : > { %780 = vmatpush.msrb.mxu1 %v2190_v12  ;;  %1012 = vmatpush.msrb.mxu2 %v2010_v21 }
  0x7d   : > { %1039 = vmatpush.msrb.mxu3 %v2030_v28  ;;  %983 = vmatpush.msra.mxu0 %v2068_v38 }
  0x7e   : > { %781 = vmatpush.msrb.mxu1 %v2196_v13  ;;  %1013 = vmatpush.msrb.mxu2 %v2023_v25 }
  0x7f   : > { %1040 = vmatpush.msrb.mxu3 %v2467_v6  ;;  %984 = vmatpush.msra.mxu0 %v2081_v41 }
  0x80   : > { %782 = vmatpush.msrb.mxu1 %v2201_v16  ;;  %1014 = vmatpush.msrb.mxu2 %v2045_v32 }
  0x81   : > { %1041 = vmatpush.msrb.mxu3 %v2468_v7  ;;  %985 = vmatpush.msra.mxu0 %v2094_v44 }
  0x82   : > { %783 = vmatpush.msrb.mxu1 %v2208_v24  ;;  %1015 = vmatpush.msrb.mxu2 %v2057_v35  ;;  %v2355_v35 = vperm.slane %v305_v9, 0 }
  0x83   : > { %1042 = vmatpush.msrb.mxu3 %v2062_v37  ;;  %986 = vmatpush.msra.mxu0 %v2103_v47 }
  0x84   : > { %784 = vmatpush.msrb.mxu1 %v2214_v26  ;;  %1016 = vmatpush.msrb.mxu2 %v2083_v42 }
  0x85   : > { %1043 = vmatpush.msrb.mxu3 %v2071_v39  ;;  %987 = vmatpush.msra.mxu0 %v2113_v50 }
  0x86   : > { %785 = vmatpush.msrb.mxu1 %v2220_v29  ;;  %1017 = vmatpush.msrb.mxu2 %v2096_v45 }
  0x87   : > { %1044 = vmatpush.msrb.mxu3 %v2088_v43 }
  0x88   : > { %786 = vmatpush.msrb.mxu1 %v2226_v31  ;;  %1018 = vmatpush.msrb.mxu2 %v2105_v48 }
  0x89   : > { %1045 = vmatpush.msrb.mxu3 %v2100_v46 }
  0x8a   : > { %787 = vmatpush.msrb.mxu1 %v2232_v34  ;;  %1019 = vmatpush.msrb.mxu2 %v2115_v51 }
  0x8b   : > { %1046 = vmatpush.msrb.mxu3 %v2110_v49 }
  0x8c   : > { %992 = vmatpush.msra.mxu1 %v2120_v52  ;;  %1020 = vmatpush.msrb.mxu2 %v2129_v55 }
  0x8d   : > { %1047 = vmatpush.msrb.mxu3 %v2122_v53 }
  0x8e   : > { %993 = vmatpush.msra.mxu1 %v2133_v56  ;;  %1021 = vmatpush.msrb.mxu2 %v2137_v57 }
  0x90   : > { %994 = vmatpush.msra.mxu1 %v2141_v58  ;;  %1022 = vmatpush.msrb.mxu2 %v2145_v59 }
  0x92   : > { %995 = vmatpush.msra.mxu1 %v2148_v60  ;;  %1023 = vmatpush.msrb.mxu2 %v2152_v61 }
  0x94   : > { %996 = vmatpush.msra.mxu1 %v2157_v62  ;;  %1024 = vmatpush.msrb.mxu2 %v2163_v63 }
  0x96   : > { %997 = vmatpush.msra.mxu1 %v2166_v0  ;;  %1025 = vmatpush.msrb.mxu2 %v2170_v1 }
  0x98   : > { %998 = vmatpush.msra.mxu1 %v2174_v2  ;;  %1026 = vmatpush.msrb.mxu2 %v2178_v3 }
  0x9a   : > { %999 = vmatpush.msra.mxu1 %v2182_v4  ;;  %1027 = vmatpush.msrb.mxu2 %v2186_v5 }
  0x9c   : > { %1000 = vmatpush.msra.mxu1 %v2190_v12 }
  0x9e   : > { %1001 = vmatpush.msra.mxu1 %v2196_v13 }
  0xa0   : > { %1002 = vmatpush.msra.mxu1 %v2201_v16 }
  0xa2   : > { %1003 = vmatpush.msra.mxu1 %v2208_v24 }
  0xa4   : > { %1004 = vmatpush.msra.mxu1 %v2214_v26 }
  0xa6   : > { %1005 = vmatpush.msra.mxu1 %v2220_v29 }
  0xa8   : > { %1006 = vmatpush.msra.mxu1 %v2226_v31  ;;  %v374_v8 = vpop.f32.mrf.mxu1 }
  0xa9   : > { %v375_v51 = vadd.f32 %v374_v8, %v308_v11 }
  0xaa   : > { %1007 = vmatpush.msra.mxu1 %v2232_v34 }
  0xae   : > { %v432_v10 = vpop.f32.mrf.mxu3  ;;  %v345_v36 = vpop.f32.mrf.mxu0 }
  0xaf   : > { %v346_v39 = vadd.f32 %v345_v36, %v2355_v35  ;;  %v433_v45 = vadd.f32 %v432_v10, %v310_v17 }
  0xb0   : > { %v377_v14 = vpop.f32.mrf.mxu1 }
  0xb1   : > { %v2341_v15 = vadd.f32 %v377_v14, %v308_v11 }
  0xb4   : > { %v403_v22 = vpop.f32.mrf.mxu2 }
  0xb5   : > { %v404_v62 = vadd.f32 %v403_v22, %v309_v30 }
  0xb6   : > { %v435_v18 = vpop.f32.mrf.mxu3 }
  0xb7   : > { %v2343_v19 = vadd.f32 %v435_v18, %v310_v17 }
  0xb8   : > { %v380_v20 = vpop.f32.mrf.mxu1 }
  0xb9   : > { %v2345_v21 = vadd.f32 %v380_v20, %v308_v11 }
  0xbe   : > { %v438_v23 = vpop.f32.mrf.mxu3 }
  0xbf   : > { %v2347_v25 = vadd.f32 %v438_v23, %v310_v17 }
  0xc0   : > { %v383_v27 = vpop.f32.mrf.mxu1 }
  0xc1   : > { %v2349_v28 = vadd.f32 %v383_v27, %v308_v11 }
  0xc2   : > { %v406_v31 = vpop.f32.mrf.mxu2 }
  0xc3   : > { %v2351_v32 = vadd.f32 %v406_v31, %v309_v30 }
  0xc6   : > { %v441_v33 = vpop.f32.mrf.mxu3 }
  0xc7   : > { %v2353_v34 = vadd.f32 %v441_v33, %v310_v17  ;;  %v461_v17 = vld [vmem:[#allocation3] sm:$0xff] }
  0xc8   : > { %v550_v40 = vpop.f32.mrf.mxu1 }
  0xc9   : > { %v613_v41 = vadd.f32 %v550_v40, %v346_v39 }
  0xcb   : > { %v1531_v44 = vmul.f32 -1.442695, %v613_v41 }
  0xcc   : > { %v409_v37 = vpop.f32.mrf.mxu2 }
  0xcd   : > { %v2357_v38 = vadd.f32 %v409_v37, %v309_v30  ;;  %1617 = vpow2.f32 %v1531_v44 }
  0xd0   : > { %v610_v46 = vpop.f32.mrf.mxu3 }
  0xd1   : > { %v616_v47 = vadd.f32 %v610_v46, %v433_v45  ;;  %v348_v45 = vpop.f32.mrf.mxu0 }
  0xd3   : > { %v1618_v48 = vpop.eup %1617  ;;  %v1533_v49 = vmul.f32 -1.442695, %v616_v47 }
  0xd4   : > { %v412_v42 = vpop.f32.mrf.mxu2  ;;  %v620_v50 = vadd.f32 1.0, %v1618_v48  ;;  %v349_v48 = vadd.f32 %v348_v45, %v2355_v35 }
  0xd5   : > { %v2360_v43 = vadd.f32 %v412_v42, %v309_v30  ;;  %1619 = vpow2.f32 %v1533_v49 }
  0xd6   : > { %1621 = vrcp.f32 %v620_v50  ;;  %vm626_vm1 = vweird.f32 %v620_v50  ;;  %v630_v4 = vand.u32 2147483647, %v620_v50  ;;  %v632_v5 = vand.u32 2147483648, %v620_v50 }
  0xd8   : > { %vm631_vm4 = vcmp.eq.f32.partialorder %v630_v4, 8.507059e+37  ;;  %v633_v26 = vor.u32 1.1754944e-38, %v632_v5  ;;  %v1172_v5 = vld [vmem:[#allocation6 + $0x160] sm:$0xff] }
  0xd9   : > { %v2371_v46 = vpop.f32.mrf.mxu0 }
  0xdb   : > { %v1620_v55 = vpop.eup %1619 }
  0xdc   : > { %v1622_v56 = vpop.eup %1621  ;;  %v659_v58 = vadd.f32 1.0, %v1620_v55 }
  0xdd   : > { %v622_v57 = vmul.f32 %v1622_v56, %v620_v50  ;;  %vm627_vm2 = vweird.f32 %v1622_v56 }
  0xde   : > { %v590_v63 = vpop.f32.mrf.mxu2  ;;  %vm628_vm3 = vmor %vm626_vm1, %vm627_vm2  ;;  %v671_v36 = vand.u32 2147483648, %v659_v58  ;;  %vm665_vm10 = vweird.f32 %v659_v58  ;;  %v669_v37 = vand.u32 2147483647, %v659_v58 }
  0xdf   : > { %v623_v61 = vsub.f32 1.0, %v622_v57  ;;  %v615_v1 = vadd.f32 %v590_v63, %v404_v62  ;;  %v1188_v62 = vld [vmem:[#allocation6 + $0x1e0] sm:$0xff] }
  0xe0   : > { %v672_v40 = vor.u32 1.1754944e-38, %v671_v36  ;;  %vm670_vm12 = vcmp.eq.f32.partialorder %v669_v37, 8.507059e+37  ;;  %v1184_v63 = vld [vmem:[#allocation6 + $0x1c0] sm:$0xff] }
  0xe1   : > { %v624_v0 = vmul.f32 %v1622_v56, %v623_v61  ;;  %v2373_v47 = vpop.f32.mrf.mxu0 }
  0xe3   : > { %v625_v12 = vadd.f32 %v1622_v56, %v624_v0  ;;  %v1180_v0 = vld [vmem:[#allocation6 + $0x1a0] sm:$0xff] }
  0xe5   : > { %v629_v6 = vsel %vm628_vm3, %v1622_v56, %v625_v12 }
  0xe6   : > { %v634_v14 = vsel %vm631_vm4, %v633_v26, %v629_v6 }
  0xe8   : > { %v570_v52 = vpop.f32.mrf.mxu1 }
  0xe9   : > { %v614_v53 = vadd.f32 %v570_v52, %v375_v51 }
  0xeb   : > { %v1532_v54 = vmul.f32 -1.442695, %v614_v53 }
  0xed   : > { %1623 = vpow2.f32 %v1532_v54 }
  0xee   : > { %1625 = vrcp.f32 %v659_v58 }
  0xf3   : > { %v1624_v59 = vpop.eup %1623 }
  0xf4   : > { %v639_v60 = vadd.f32 1.0, %v1624_v59  ;;  %v1626_v2 = vpop.eup %1625 }
  0xf5   : > { %v661_v16 = vmul.f32 %v1626_v2, %v659_v58  ;;  %vm666_vm9 = vweird.f32 %v1626_v2 }
  0xf6   : > { %1627 = vrcp.f32 %v639_v60  ;;  %v651_v29 = vand.u32 2147483648, %v639_v60  ;;  %v649_v8 = vand.u32 2147483647, %v639_v60  ;;  %vm645_vm6 = vweird.f32 %v639_v60  ;;  %vm667_vm11 = vmor %vm665_vm10, %vm666_vm9 }
  0xf7   : > { %1629 = vtanh.f32 %v615_v1  ;;  %v662_v9 = vsub.f32 1.0, %v661_v16 }
  0xf8   : > { %v652_v18 = vor.u32 1.1754944e-38, %v651_v29  ;;  %vm650_vm8 = vcmp.eq.f32.partialorder %v649_v8, 8.507059e+37 }
  0xf9   : > { %v663_v22 = vmul.f32 %v1626_v2, %v662_v9 }
  0xfb   : > { %v664_v33 = vadd.f32 %v1626_v2, %v663_v22 }
  0xfc   : > { %v1628_v3 = vpop.eup %1627 }
  0xfd   : > { %v641_v13 = vmul.f32 %v1628_v3, %v639_v60  ;;  %vm646_vm5 = vweird.f32 %v1628_v3  ;;  %v1630_v11 = vpop.eup %1629  ;;  %v668_v39 = vsel %vm667_vm11, %v1626_v2, %v664_v33  ;;  %v1176_v2 = vld [vmem:[#allocation6 + $0x180] sm:$0xff] }
  0xfe   : > { %vm647_vm7 = vmor %vm645_vm6, %vm646_vm5  ;;  %v676_v27 = vmul.f32 %v1630_v11, %v634_v14  ;;  %v673_v42 = vsel %vm670_vm12, %v672_v40, %v668_v39 }
  0xff   : > { %v642_v24 = vsub.f32 1.0, %v641_v13 }
 0x101   : > { %v643_v7 = vmul.f32 %v1628_v3, %v642_v24 }
 0x103   : > { %v644_v10 = vadd.f32 %v1628_v3, %v643_v7 }
 0x105   : > { %v648_v20 = vsel %vm647_vm7, %v1628_v3, %v644_v10 }
 0x106   : > { %v653_v23 = vsel %vm650_vm8, %v652_v18, %v648_v20 }
 0x107   : > { %v675_v30 = vmul.f32 %v653_v23, %v461_v17 }
 0x109   : > { %v2362_v31 = vadd.f32 %v676_v27, %v675_v30 }
 0x10b   : > { %1631 = vtanh.f32 %v2362_v31 }
 0x111   : > { %v1632_v41 = vpop.eup %1631 }
 0x112   : > { %v2365_v44 = vmul.f32 %v1632_v41, %v673_v42 }
 0x114   : > { %768 = vmatmul.f32.vlgmr.msrb.gmra.mxu0 %v2365_v44  ;;  %788 = vmatmul.f32.vlgmr.msrb.gmra.mxu1 %v2365_v44 }
 0x115   : > { %808 = vmatmul.f32.vlgmr.msra.gmra.mxu2 %v2365_v44  ;;  %828 = vmatmul.f32.vlgmr.msra.gmra.mxu3 %v2365_v44 }
 0x116   : > { %1192 = vmatpush.msrb.mxu0 %v1188_v62  ;;  %v1191_v62 = vld [vmem:[#allocation6 + $0x1f8] sm:$0xff] }
 0x117   : > { %1252 = vmatpush.msra.mxu3 %v1191_v62  ;;  %v1142_v62 = vld [vmem:[#allocation6 + $0x70] sm:$0xff] }
 0x118   : > { %1193 = vmatpush.msrb.mxu0 %v1184_v63  ;;  %v1140_v63 = vld [vmem:[#allocation6 + $0x60] sm:$0xff] }
 0x11a   : > { %1194 = vmatpush.msrb.mxu0 %v1180_v0  ;;  %v1185_v0 = vld [vmem:[#allocation6 + $0x1c8] sm:$0xff] }
 0x11c   : > { %1195 = vmatpush.msrb.mxu0 %v1176_v2  ;;  %v1136_v2 = vld [vmem:[#allocation6 + $0x40] sm:$0xff] }
 0x11e   : > { %1196 = vmatpush.msrb.mxu0 %v1172_v5  ;;  %v1132_v5 = vld [vmem:[#allocation6 + $0x20] sm:$0xff] }
 0x191   : > { %v769_v49 = vpop.f32.mrf.mxu0  ;;  %v789_v50 = vpop.f32.mrf.mxu1 }
 0x192   : > { %v832_v51 = vadd.f32 %v769_v49, %v349_v48  ;;  %v833_v52 = vadd.f32 %v789_v50, %v2341_v15 }
 0x194   : > { %v1534_v53 = vmul.f32 -1.442695, %v832_v51  ;;  %v1535_v54 = vmul.f32 -1.442695, %v833_v52 }
 0x196   : > { %1633 = vpow2.f32 %v1534_v53 }
 0x197   : > { %1635 = vpow2.f32 %v1535_v54  ;;  %v1164_v54 = vld [vmem:[#allocation6 + $0x120] sm:$0xff] }
 0x198   : > { %v829_v55 = vpop.f32.mrf.mxu3  ;;  %v809_v15 = vpop.f32.mrf.mxu2 }
 0x199   : > { %v835_v56 = vadd.f32 %v829_v55, %v2343_v19  ;;  %v834_v19 = vadd.f32 %v809_v15, %v2351_v32  ;;  %v1160_v55 = vld [vmem:[#allocation6 + $0x100] sm:$0xff]  ;;  %v1186_v15 = vld [vmem:[#allocation6 + $0x1d0] sm:$0xff] }
 0x19b   : > { %v1536_v57 = vmul.f32 -1.442695, %v835_v56  ;;  %v1156_v56 = vld [vmem:[#allocation6 + $0xe0] sm:$0xff] }
 0x19c   : > { %v1634_v58 = vpop.eup %1633 }
 0x19d   : > { %v1636_v59 = vpop.eup %1635  ;;  %v839_v60 = vadd.f32 1.0, %v1634_v58  ;;  %1637 = vpow2.f32 %v1536_v57  ;;  %v1152_v57 = vld [vmem:[#allocation6 + $0xc0] sm:$0xff] }
 0x19e   : > { %v858_v61 = vadd.f32 1.0, %v1636_v59  ;;  %v1148_v58 = vld [vmem:[#allocation6 + $0xa0] sm:$0xff] }
 0x19f   : > { %1639 = vrcp.f32 %v839_v60  ;;  %v851_v29 = vand.u32 2147483648, %v839_v60  ;;  %v849_v8 = vand.u32 2147483647, %v839_v60  ;;  %vm845_vm15 = vweird.f32 %v839_v60  ;;  %v1144_v59 = vld [vmem:[#allocation6 + $0x80] sm:$0xff] }
 0x1a0   : > { %1641 = vrcp.f32 %v858_v61  ;;  %v870_v6 = vand.u32 2147483648, %v858_v61  ;;  %v868_v10 = vand.u32 2147483647, %v858_v61  ;;  %vm864_vm0 = vweird.f32 %v858_v61 }
 0x1a1   : > { %v852_v14 = vor.u32 1.1754944e-38, %v851_v29  ;;  %vm850_vm3 = vcmp.eq.f32.partialorder %v849_v8, 8.507059e+37  ;;  %v1174_v29 = vld [vmem:[#allocation6 + $0x170] sm:$0xff]  ;;  %v1169_v8 = vld [vmem:[#allocation6 + $0x148] sm:$0xff] }
 0x1a2   : > { %v871_v20 = vor.u32 1.1754944e-38, %v870_v6  ;;  %vm869_vm4 = vcmp.eq.f32.partialorder %v868_v10, 8.507059e+37  ;;  %v1175_v6 = vld [vmem:[#allocation6 + $0x178] sm:$0xff] }
 0x1a3   : > { %v1638_v1 = vpop.eup %1637  ;;  %v1171_v10 = vld [vmem:[#allocation6 + $0x158] sm:$0xff] }
 0x1a4   : > { %v878_v3 = vadd.f32 1.0, %v1638_v1  ;;  %v1187_v1 = vld [vmem:[#allocation6 + $0x1d8] sm:$0xff] }
 0x1a5   : > { %v1640_v4 = vpop.eup %1639  ;;  %1253 = vmatpush.msra.mxu3 %v1187_v1 }
 0x1a6   : > { %v1642_v12 = vpop.eup %1641  ;;  %v841_v13 = vmul.f32 %v1640_v4, %v839_v60  ;;  %1643 = vrcp.f32 %v878_v3  ;;  %vm846_vm13 = vweird.f32 %v1640_v4  ;;  %v890_v45 = vand.u32 2147483648, %v878_v3  ;;  %v1189_v60 = vld [vmem:[#allocation6 + $0x1e8] sm:$0xff] }
 0x1a7   : > { %v860_v16 = vmul.f32 %v1642_v12, %v858_v61  ;;  %1645 = vtanh.f32 %v834_v19  ;;  %vm865_vm14 = vweird.f32 %v1642_v12  ;;  %vm847_vm1 = vmor %vm845_vm15, %vm846_vm13  ;;  %vm884_vm6 = vweird.f32 %v878_v3  ;;  %v1190_v61 = vld [vmem:[#allocation6 + $0x1f0] sm:$0xff]  ;;  %1212 = vmatpush.msrb.mxu1 %v1189_v60  ;;  %v1183_v19 = vld [vmem:[#allocation6 + $0x1b8] sm:$0xff] }
 0x1a8   : > { %v842_v24 = vsub.f32 1.0, %v841_v13  ;;  %vm866_vm2 = vmor %vm864_vm0, %vm865_vm14  ;;  %v888_v48 = vand.u32 2147483647, %v878_v3  ;;  %v891_v50 = vor.u32 1.1754944e-38, %v890_v45  ;;  %1232 = vmatpush.msra.mxu2 %v1190_v61  ;;  %1254 = vmatpush.msra.mxu3 %v1183_v19  ;;  %v1178_v13 = vld [vmem:[#allocation6 + $0x190] sm:$0xff]  ;;  %v1153_v45 = vld [vmem:[#allocation6 + $0xc8] sm:$0xff] }
 0x1a9   : > { %v861_v26 = vsub.f32 1.0, %v860_v16  ;;  %1213 = vmatpush.msrb.mxu1 %v1185_v0  ;;  %v1179_v16 = vld [vmem:[#allocation6 + $0x198] sm:$0xff]  ;;  %v1141_v61 = vld [vmem:[#allocation6 + $0x68] sm:$0xff] }
 0x1aa   : > { %v843_v7 = vmul.f32 %v1640_v4, %v842_v24  ;;  %vm889_vm8 = vcmp.eq.f32.partialorder %v888_v48, 8.507059e+37  ;;  %1233 = vmatpush.msra.mxu2 %v1186_v15  ;;  %v1128_v24 = vld [vmem:[#allocation6] sm:$0xff]  ;;  %1255 = vmatpush.msra.mxu3 %v1179_v16  ;;  %v1154_v48 = vld [vmem:[#allocation6 + $0xd0] sm:$0xff]  ;;  %v1147_v60 = vld [vmem:[#allocation6 + $0x98] sm:$0xff] }
 0x1ab   : > { %v862_v9 = vmul.f32 %v1642_v12, %v861_v26  ;;  %v1173_v26 = vld [vmem:[#allocation6 + $0x168] sm:$0xff]  ;;  %v1354_v0 = vld [vmem:[#allocation9 + $0x38] sm:$0xff] }
 0x1ac   : > { %v1644_v11 = vpop.eup %1643  ;;  %v844_v32 = vadd.f32 %v1640_v4, %v843_v7  ;;  %v1362_v7 = vld [vmem:[#allocation9 + $0x78] sm:$0xff]  ;;  %1256 = vmatpush.msra.mxu3 %v1175_v6  ;;  %v1137_v15 = vld [vmem:[#allocation6 + $0x48] sm:$0xff] }
 0x1ad   : > { %v863_v17 = vadd.f32 %v1642_v12, %v862_v9  ;;  %v880_v18 = vmul.f32 %v1644_v11, %v878_v3  ;;  %v1646_v23 = vpop.eup %1645  ;;  %vm885_vm5 = vweird.f32 %v1644_v11  ;;  %v1181_v3 = vld [vmem:[#allocation6 + $0x1a8] sm:$0xff]  ;;  %v1170_v9 = vld [vmem:[#allocation6 + $0x150] sm:$0xff] }
 0x1ae   : > { %v848_v22 = vsel %vm847_vm1, %v1640_v4, %v844_v32  ;;  %vm886_vm7 = vmor %vm884_vm6, %vm885_vm5  ;;  %v1182_v4 = vld [vmem:[#allocation6 + $0x1b0] sm:$0xff]  ;;  %1214 = vmatpush.msrb.mxu1 %v1181_v3  ;;  %1257 = vmatpush.msra.mxu3 %v1171_v10  ;;  %v1165_v32 = vld [vmem:[#allocation6 + $0x128] sm:$0xff] }
 0x1af   : > { %v853_v27 = vsel %vm850_vm3, %v852_v14, %v848_v22  ;;  %v867_v30 = vsel %vm866_vm2, %v1642_v12, %v863_v17  ;;  %v881_v33 = vsub.f32 1.0, %v880_v18  ;;  %1234 = vmatpush.msra.mxu2 %v1182_v4  ;;  %v1177_v12 = vld [vmem:[#allocation6 + $0x188] sm:$0xff]  ;;  %v1166_v14 = vld [vmem:[#allocation6 + $0x130] sm:$0xff]  ;;  %v1167_v17 = vld [vmem:[#allocation6 + $0x138] sm:$0xff] }
 0x1b0   : > { %v872_v36 = vsel %vm869_vm4, %v871_v20, %v867_v30  ;;  %v895_v37 = vmul.f32 %v1646_v23, %v853_v27  ;;  %1215 = vmatpush.msrb.mxu1 %v1177_v12  ;;  %v1360_v18 = vld [vmem:[#allocation9 + $0x68] sm:$0xff]  ;;  %1258 = vmatpush.msra.mxu3 %v1167_v17  ;;  %v1162_v22 = vld [vmem:[#allocation6 + $0x110] sm:$0xff]  ;;  %v1163_v23 = vld [vmem:[#allocation6 + $0x118] sm:$0xff] }
 0x1b1   : > { %v894_v39 = vmul.f32 %v872_v36, %v2362_v31  ;;  %v882_v40 = vmul.f32 %v1644_v11, %v881_v33  ;;  %v1168_v31 = vld [vmem:[#allocation6 + $0x140] sm:$0xff]  ;;  %1235 = vmatpush.msra.mxu2 %v1178_v13  ;;  %v1161_v20 = vld [vmem:[#allocation6 + $0x108] sm:$0xff]  ;;  %v1158_v33 = vld [vmem:[#allocation6 + $0xf0] sm:$0xff] }
 0x1b2   : > { %1197 = vmatpush.msrb.mxu0 %v1168_v31  ;;  %1216 = vmatpush.msrb.mxu1 %v1173_v26  ;;  %v1359_v27 = vld [vmem:[#allocation9 + $0x60] sm:$0xff]  ;;  %v1157_v30 = vld [vmem:[#allocation6 + $0xe8] sm:$0xff]  ;;  %v1159_v36 = vld [vmem:[#allocation6 + $0xf8] sm:$0xff] }
 0x1b3   : > { %v2380_v41 = vadd.f32 %v895_v37, %v894_v39  ;;  %v883_v42 = vadd.f32 %v1644_v11, %v882_v40  ;;  %1236 = vmatpush.msra.mxu2 %v1174_v29  ;;  %1259 = vmatpush.msra.mxu3 %v1163_v23  ;;  %v352_v37 = vadd.f32 %v2371_v46, %v2355_v35  ;;  %v1358_v39 = vld [vmem:[#allocation9 + $0x58] sm:$0xff]  ;;  %v1149_v31 = vld [vmem:[#allocation6 + $0xa8] sm:$0xff]  ;;  %v1150_v46 = vld [vmem:[#allocation6 + $0xb0] sm:$0xff] }
 0x1b4   : > { %1198 = vmatpush.msrb.mxu0 %v1164_v54  ;;  %1217 = vmatpush.msrb.mxu1 %v1169_v8  ;;  %v1151_v54 = vld [vmem:[#allocation6 + $0xb8] sm:$0xff]  ;;  %v1353_v4 = vld [vmem:[#allocation9 + $0x30] sm:$0xff]  ;;  %v1352_v16 = vld [vmem:[#allocation9 + $0x28] sm:$0xff] }
 0x1b5   : > { %1647 = vtanh.f32 %v2380_v41  ;;  %v887_v49 = vsel %vm886_vm7, %v1644_v11, %v883_v42  ;;  %1237 = vmatpush.msra.mxu2 %v1170_v9  ;;  %v1361_v11 = vld [vmem:[#allocation9 + $0x70] sm:$0xff]  ;;  %1260 = vmatpush.msra.mxu3 %v1159_v36  ;;  %v1139_v3 = vld [vmem:[#allocation6 + $0x58] sm:$0xff]  ;;  %v1129_v26 = vld [vmem:[#allocation6 + $0x8] sm:$0xff] }
 0x1b6   : > { %v892_v52 = vsel %vm889_vm8, %v891_v50, %v887_v49  ;;  %1199 = vmatpush.msrb.mxu0 %v1160_v55  ;;  %1218 = vmatpush.msrb.mxu1 %v1165_v32  ;;  %v1155_v49 = vld [vmem:[#allocation6 + $0xd8] sm:$0xff]  ;;  %v1134_v12 = vld [vmem:[#allocation6 + $0x30] sm:$0xff]  ;;  %v1351_v8 = vld [vmem:[#allocation9 + $0x20] sm:$0xff] }
 0x1b7   : > { %1238 = vmatpush.msra.mxu2 %v1166_v14  ;;  %1261 = vmatpush.msra.mxu3 %v1155_v49  ;;  %v1135_v13 = vld [vmem:[#allocation6 + $0x38] sm:$0xff]  ;;  %v1130_v29 = vld [vmem:[#allocation6 + $0x10] sm:$0xff]  ;;  %v1348_v17 = vld [vmem:[#allocation9 + $0x8] sm:$0xff] }
 0x1b8   : > { %1200 = vmatpush.msrb.mxu0 %v1156_v56  ;;  %1219 = vmatpush.msrb.mxu1 %v1161_v20  ;;  %v1349_v32 = vld [vmem:[#allocation9 + $0x10] sm:$0xff] }
 0x1b9   : > { %1239 = vmatpush.msra.mxu2 %v1162_v22  ;;  %1262 = vmatpush.msra.mxu3 %v1151_v54  ;;  %v1347_v22 = vld [vmem:[#allocation9] sm:$0xff] }
 0x1ba   : > { %1201 = vmatpush.msrb.mxu0 %v1152_v57  ;;  %1220 = vmatpush.msrb.mxu1 %v1157_v30  ;;  %v1356_v57 = vld [vmem:[#allocation9 + $0x48] sm:$0xff] }
 0x1bb   : > { %v1648_v51 = vpop.eup %1647  ;;  %1240 = vmatpush.msra.mxu2 %v1158_v33  ;;  %1263 = vmatpush.msra.mxu3 %v1147_v60 }
 0x1bc   : > { %v2383_v53 = vmul.f32 %v1648_v51, %v892_v52  ;;  %1202 = vmatpush.msrb.mxu0 %v1148_v58  ;;  %1221 = vmatpush.msrb.mxu1 %v1153_v45  ;;  %v1357_v52 = vld [vmem:[#allocation9 + $0x50] sm:$0xff]  ;;  %v1145_v58 = vld [vmem:[#allocation6 + $0x88] sm:$0xff] }
 0x1bd   : > { %1241 = vmatpush.msra.mxu2 %v1154_v48 }
 0x1be   : > { %988 = vmatmul.f32.vlgmr.msra.gmra.mxu0 %v2383_v53  ;;  %1008 = vmatmul.f32.vlgmr.msra.gmra.mxu1 %v2383_v53 }
 0x1bf   : > { %1028 = vmatmul.f32.vlgmr.msrb.gmra.mxu2 %v2383_v53  ;;  %1048 = vmatmul.f32.vlgmr.msrb.gmra.mxu3 %v2383_v53 }
 0x1c0   : > { %1203 = vmatpush.msrb.mxu0 %v1144_v59  ;;  %1222 = vmatpush.msrb.mxu1 %v1149_v31  ;;  %v1146_v59 = vld [vmem:[#allocation6 + $0x90] sm:$0xff] }
 0x1c1   : > { %1242 = vmatpush.msra.mxu2 %v1150_v46 }
 0x1c2   : > { %1204 = vmatpush.msrb.mxu0 %v1140_v63  ;;  %1223 = vmatpush.msrb.mxu1 %v1145_v58  ;;  %v1143_v63 = vld [vmem:[#allocation6 + $0x78] sm:$0xff] }
 0x1c3   : > { %1243 = vmatpush.msra.mxu2 %v1146_v59  ;;  %1264 = vmatpush.msra.mxu3 %v1143_v63 }
 0x1c4   : > { %1205 = vmatpush.msrb.mxu0 %v1136_v2  ;;  %1224 = vmatpush.msrb.mxu1 %v1141_v61  ;;  %v1138_v2 = vld [vmem:[#allocation6 + $0x50] sm:$0xff] }
 0x1c5   : > { %1244 = vmatpush.msra.mxu2 %v1142_v62  ;;  %1265 = vmatpush.msra.mxu3 %v1139_v3 }
 0x1c6   : > { %1206 = vmatpush.msrb.mxu0 %v1132_v5  ;;  %v1133_v5 = vld [vmem:[#allocation6 + $0x28] sm:$0xff]  ;;  %1225 = vmatpush.msrb.mxu1 %v1137_v15 }
 0x1c7   : > { %1245 = vmatpush.msra.mxu2 %v1138_v2  ;;  %1266 = vmatpush.msra.mxu3 %v1135_v13 }
 0x1c8   : > { %1207 = vmatpush.msrb.mxu0 %v1128_v24  ;;  %1226 = vmatpush.msrb.mxu1 %v1133_v5 }
 0x1c9   : > { %1246 = vmatpush.msra.mxu2 %v1134_v12 }
 0x1ca   : > { %1367 = vmatpush.msra.mxu0 %v1362_v7  ;;  %v1131_v7 = vld [vmem:[#allocation6 + $0x18] sm:$0xff]  ;;  %1227 = vmatpush.msrb.mxu1 %v1129_v26 }
 0x1cb   : > { %1247 = vmatpush.msra.mxu2 %v1130_v29  ;;  %1267 = vmatpush.msra.mxu3 %v1131_v7 }
 0x1cc   : > { %1368 = vmatpush.msra.mxu0 %v1361_v11  ;;  %v1350_v11 = vld [vmem:[#allocation9 + $0x18] sm:$0xff] }
 0x1ce   : > { %1369 = vmatpush.msra.mxu0 %v1360_v18 }
 0x1d0   : > { %1370 = vmatpush.msra.mxu0 %v1359_v27 }
 0x1d2   : > { %1371 = vmatpush.msra.mxu0 %v1358_v39 }
 0x1d4   : > { %1372 = vmatpush.msra.mxu0 %v1357_v52 }
 0x1d6   : > { %1373 = vmatpush.msra.mxu0 %v1356_v57 }
 0x23b   : > { %v989_v40 = vpop.f32.mrf.mxu0  ;;  %v1009_v42 = vpop.f32.mrf.mxu1 }
 0x23c   : > { %v1052_v50 = vadd.f32 %v989_v40, %v352_v37  ;;  %v1053_v51 = vadd.f32 %v1009_v42, %v2345_v21  ;;  %v1355_v21 = vld [vmem:[#allocation9 + $0x40] sm:$0xff] }
 0x23d   : > { %1374 = vmatpush.msra.mxu0 %v1355_v21 }
 0x23e   : > { %v1537_v55 = vmul.f32 -1.442695, %v1052_v50  ;;  %v1538_v56 = vmul.f32 -1.442695, %v1053_v51 }
 0x23f   : > { %1375 = vmatpush.msra.mxu0 %v1354_v0 }
 0x240   : > { %1649 = vpow2.f32 %v1537_v55 }
 0x241   : > { %1651 = vpow2.f32 %v1538_v56  ;;  %1376 = vmatpush.msra.mxu0 %v1353_v4 }
 0x242   : > { %v1049_v1 = vpop.f32.mrf.mxu3  ;;  %v1029_v14 = vpop.f32.mrf.mxu2 }
 0x243   : > { %v1055_v19 = vadd.f32 %v1049_v1, %v2347_v25  ;;  %1377 = vmatpush.msra.mxu0 %v1352_v16  ;;  %v1054_v27 = vadd.f32 %v1029_v14, %v2357_v38 }
 0x245   : > { %v1539_v24 = vmul.f32 -1.442695, %v1055_v19  ;;  %1378 = vmatpush.msra.mxu0 %v1351_v8 }
 0x246   : > { %v1650_v6 = vpop.eup %1649 }
 0x247   : > { %v1652_v9 = vpop.eup %1651  ;;  %v1059_v25 = vadd.f32 1.0, %v1650_v6  ;;  %1653 = vpow2.f32 %v1539_v24  ;;  %1379 = vmatpush.msra.mxu0 %v1350_v11  ;;  %v2406_v6 = vld [vmem:[%s2458_s5] ss:$0 sm:$0xff] }
 0x248   : > { %v1078_v10 = vadd.f32 1.0, %v1652_v9 }
 0x249   : > { %1655 = vrcp.f32 %v1059_v25  ;;  %1380 = vmatpush.msra.mxu0 %v1349_v32  ;;  %v1071_v40 = vand.u32 2147483648, %v1059_v25  ;;  %v1069_v48 = vand.u32 2147483647, %v1059_v25  ;;  %vm1065_vm11 = vweird.f32 %v1059_v25 }
 0x24a   : > { %1657 = vrcp.f32 %v1078_v10  ;;  %v1090_v42 = vand.u32 2147483648, %v1078_v10  ;;  %v1088_v50 = vand.u32 2147483647, %v1078_v10  ;;  %vm1084_vm12 = vweird.f32 %v1078_v10 }
 0x24b   : > { %1381 = vmatpush.msra.mxu0 %v1348_v17  ;;  %v1072_v38 = vor.u32 1.1754944e-38, %v1071_v40  ;;  %vm1070_vm15 = vcmp.eq.f32.partialorder %v1069_v48, 8.507059e+37 }
 0x24c   : > { %v1091_v54 = vor.u32 1.1754944e-38, %v1090_v42  ;;  %vm1089_vm0 = vcmp.eq.f32.partialorder %v1088_v50, 8.507059e+37 }
 0x24d   : > { %v1654_v18 = vpop.eup %1653  ;;  %1382 = vmatpush.msra.mxu0 %v1347_v22 }
 0x24e   : > { %v1098_v20 = vadd.f32 1.0, %v1654_v18 }
 0x24f   : > { %v1656_v23 = vpop.eup %1655 }
 0x250   : > { %v1658_v30 = vpop.eup %1657  ;;  %v1061_v33 = vmul.f32 %v1656_v23, %v1059_v25  ;;  %1659 = vrcp.f32 %v1098_v20  ;;  %vm1066_vm9 = vweird.f32 %v1656_v23  ;;  %v1110_v15 = vand.u32 2147483648, %v1098_v20 }
 0x251   : > { %v1080_v36 = vmul.f32 %v1658_v30, %v1078_v10  ;;  %1661 = vtanh.f32 %v1054_v27  ;;  %vm1085_vm10 = vweird.f32 %v1658_v30  ;;  %vm1067_vm13 = vmor %vm1065_vm11, %vm1066_vm9  ;;  %vm1104_vm2 = vweird.f32 %v1098_v20 }
 0x252   : > { %v1062_v37 = vsub.f32 1.0, %v1061_v33  ;;  %vm1086_vm14 = vmor %vm1084_vm12, %vm1085_vm10  ;;  %v1108_v1 = vand.u32 2147483647, %v1098_v20  ;;  %v1111_v3 = vor.u32 1.1754944e-38, %v1110_v15 }
 0x253   : > { %v1081_v39 = vsub.f32 1.0, %v1080_v36 }
 0x254   : > { %v1063_v45 = vmul.f32 %v1656_v23, %v1062_v37  ;;  %vm1109_vm4 = vcmp.eq.f32.partialorder %v1108_v1, 8.507059e+37 }
 0x255   : > { %v1082_v49 = vmul.f32 %v1658_v30, %v1081_v39 }
 0x256   : > { %v1660_v51 = vpop.eup %1659  ;;  %v1064_v52 = vadd.f32 %v1656_v23, %v1063_v45 }
 0x257   : > { %v1083_v31 = vadd.f32 %v1658_v30, %v1082_v49  ;;  %v1100_v46 = vmul.f32 %v1660_v51, %v1098_v20  ;;  %v1662_v56 = vpop.eup %1661  ;;  %vm1105_vm1 = vweird.f32 %v1660_v51 }
 0x258   : > { %v1068_v55 = vsel %vm1067_vm13, %v1656_v23, %v1064_v52  ;;  %vm1106_vm3 = vmor %vm1104_vm2, %vm1105_vm1 }
 0x259   : > { %v1073_v57 = vsel %vm1070_vm15, %v1072_v38, %v1068_v55  ;;  %v1087_v58 = vsel %vm1086_vm14, %v1658_v30, %v1083_v31  ;;  %v1101_v59 = vsub.f32 1.0, %v1100_v46 }
 0x25a   : > { %v1092_v60 = vsel %vm1089_vm0, %v1091_v54, %v1087_v58  ;;  %v1115_v21 = vmul.f32 %v1662_v56, %v1073_v57 }
 0x25b   : > { %v1114_v61 = vmul.f32 %v1092_v60, %v2380_v41  ;;  %v1102_v62 = vmul.f32 %v1660_v51, %v1101_v59  ;;  %v355_v41 = vadd.f32 %v2373_v47, %v2355_v35 }
 0x25d   : > { %v2395_v63 = vadd.f32 %v1115_v21, %v1114_v61  ;;  %v1103_v0 = vadd.f32 %v1660_v51, %v1102_v62 }
 0x25f   : > { %1663 = vtanh.f32 %v2395_v63  ;;  %v1107_v2 = vsel %vm1106_vm3, %v1660_v51, %v1103_v0 }
 0x260   : > { %v1112_v19 = vsel %vm1109_vm4, %v1111_v3, %v1107_v2 }
 0x265   : > { %v1664_v4 = vpop.eup %1663 }
 0x266   : > { %v1118_v5 = vmul.f32 %v1664_v4, %v1112_v19 }
 0x268   : > { %1208 = vmatmul.f32.vlgmr.msrb.gmra.mxu0 %v1118_v5  ;;  %1228 = vmatmul.f32.vlgmr.msrb.gmra.mxu1 %v1118_v5 }
 0x269   : > { %1248 = vmatmul.f32.vlgmr.msra.gmra.mxu2 %v1118_v5  ;;  %1268 = vmatmul.f32.vlgmr.msra.gmra.mxu3 %v1118_v5 }
 0x270   : > { %1383 = vmatmul.f32.vlgmr.msra.gmra.mxu0 %v2365_v44 }
 0x278   : > { %1386 = vmatmul.f32.gmra.mxu0 %v2383_v53 }
 0x280   : > { %1389 = vmatmul.f32.gmra.mxu0 %v1118_v5 }
 0x2e5   : > { %v1209_v12 = vpop.f32.mrf.mxu0  ;;  %v1229_v13 = vpop.f32.mrf.mxu1 }
 0x2e6   : > { %v1272_v16 = vadd.f32 %v1209_v12, %v355_v41  ;;  %v1273_v24 = vadd.f32 %v1229_v13, %v2349_v28 }
 0x2e8   : > { %v1540_v26 = vmul.f32 -1.442695, %v1272_v16  ;;  %v1541_v29 = vmul.f32 -1.442695, %v1273_v24 }
 0x2ea   : > { %1665 = vpow2.f32 %v1540_v26 }
 0x2eb   : > { %1667 = vpow2.f32 %v1541_v29 }
 0x2ec   : > { %v1269_v44 = vpop.f32.mrf.mxu3  ;;  %v1249_v11 = vpop.f32.mrf.mxu2 }
 0x2ed   : > { %v1275_v53 = vadd.f32 %v1269_v44, %v2353_v34  ;;  %v1384_v7 = vpop.f32.mrf.mxu0  ;;  %v1274_v18 = vadd.f32 %v1249_v11, %v2360_v43 }
 0x2ee   : > { %v1385_v35 = vadd.f32 %v2406_v6, %v1384_v7 }
 0x2ef   : > { %v1542_v47 = vmul.f32 -1.442695, %v1275_v53 }
 0x2f0   : > { %v1666_v8 = vpop.eup %1665  ;;  %1396 = vst [vmem:[%s1940_s16] sm:$0xff] %v1385_v35 }
 0x2f1   : > { %v1668_v28 = vpop.eup %1667  ;;  %v1279_v9 = vadd.f32 1.0, %v1666_v8  ;;  %1669 = vpow2.f32 %v1542_v47 }
 0x2f2   : > { %v1298_v25 = vadd.f32 1.0, %v1668_v28 }
 0x2f3   : > { %1671 = vrcp.f32 %v1279_v9  ;;  %v1289_v33 = vand.u32 2147483647, %v1279_v9  ;;  %v1291_v36 = vand.u32 2147483648, %v1279_v9  ;;  %vm1285_vm7 = vweird.f32 %v1279_v9 }
 0x2f4   : > { %1673 = vrcp.f32 %v1298_v25  ;;  %v1310_v39 = vand.u32 2147483648, %v1298_v25  ;;  %v1308_v48 = vand.u32 2147483647, %v1298_v25  ;;  %vm1304_vm8 = vweird.f32 %v1298_v25 }
 0x2f5   : > { %v1387_v10 = vpop.f32.mrf.mxu0  ;;  %v1292_v50 = vor.u32 1.1754944e-38, %v1291_v36  ;;  %vm1290_vm11 = vcmp.eq.f32.partialorder %v1289_v33, 8.507059e+37 }
 0x2f6   : > { %v1388_v32 = vadd.f32 %v2406_v6, %v1387_v10  ;;  %v1311_v38 = vor.u32 1.1754944e-38, %v1310_v39  ;;  %vm1309_vm12 = vcmp.eq.f32.partialorder %v1308_v48, 8.507059e+37 }
 0x2f7   : > { %v1670_v14 = vpop.eup %1669 }
 0x2f8   : > { %v1318_v17 = vadd.f32 1.0, %v1670_v14  ;;  %1397 = vst [vmem:[%s1940_s16 + $0x8] sm:$0xff] %v1388_v32 }
 0x2f9   : > { %v1672_v34 = vpop.eup %1671 }
 0x2fa   : > { %v1674_v20 = vpop.eup %1673  ;;  %v1281_v22 = vmul.f32 %v1672_v34, %v1279_v9  ;;  %1675 = vrcp.f32 %v1318_v17  ;;  %vm1286_vm5 = vweird.f32 %v1672_v34  ;;  %v1330_v62 = vand.u32 2147483648, %v1318_v17 }
 0x2fb   : > { %v1300_v23 = vmul.f32 %v1674_v20, %v1298_v25  ;;  %1677 = vtanh.f32 %v1274_v18  ;;  %vm1305_vm6 = vweird.f32 %v1674_v20  ;;  %vm1287_vm9 = vmor %vm1285_vm7, %vm1286_vm5  ;;  %vm1324_vm14 = vweird.f32 %v1318_v17 }
 0x2fc   : > { %v1282_v27 = vsub.f32 1.0, %v1281_v22  ;;  %vm1306_vm10 = vmor %vm1304_vm8, %vm1305_vm6  ;;  %v1328_v0 = vand.u32 2147483647, %v1318_v17  ;;  %v1331_v1 = vor.u32 1.1754944e-38, %v1330_v62 }
 0x2fd   : > { %v1301_v30 = vsub.f32 1.0, %v1300_v23  ;;  %v1390_v37 = vpop.f32.mrf.mxu0 }
 0x2fe   : > { %v1283_v40 = vmul.f32 %v1672_v34, %v1282_v27  ;;  %v1391_v42 = vadd.f32 %v2406_v6, %v1390_v37  ;;  %vm1329_vm0 = vcmp.eq.f32.partialorder %v1328_v0, 8.507059e+37 }
 0x2ff   : > { %v1302_v45 = vmul.f32 %v1674_v20, %v1301_v30 }
 0x300   : > { %v1676_v43 = vpop.eup %1675  ;;  %v1284_v49 = vadd.f32 %v1672_v34, %v1283_v40  ;;  %1398 = vst [vmem:[%s1940_s16 + $0x10] sm:$0xff] %v1391_v42 }
 0x301   : > { %v1303_v51 = vadd.f32 %v1674_v20, %v1302_v45  ;;  %v1320_v52 = vmul.f32 %v1676_v43, %v1318_v17  ;;  %v1678_v46 = vpop.eup %1677  ;;  %vm1325_vm13 = vweird.f32 %v1676_v43 }
 0x302   : > { %v1288_v31 = vsel %vm1287_vm9, %v1672_v34, %v1284_v49  ;;  %vm1326_vm15 = vmor %vm1324_vm14, %vm1325_vm13 }
 0x303   : > { %v1293_v54 = vsel %vm1290_vm11, %v1292_v50, %v1288_v31  ;;  %v1307_v55 = vsel %vm1306_vm10, %v1674_v20, %v1303_v51  ;;  %v1321_v56 = vsub.f32 1.0, %v1320_v52 }
 0x304   : > { %v1312_v57 = vsel %vm1309_vm12, %v1311_v38, %v1307_v55  ;;  %v1335_v58 = vmul.f32 %v1678_v46, %v1293_v54 }
 0x305   : > { %v1334_v59 = vmul.f32 %v1312_v57, %v2395_v63  ;;  %v1322_v60 = vmul.f32 %v1676_v43, %v1321_v56 }
 0x307   : > { %v1336_v21 = vadd.f32 %v1335_v58, %v1334_v59  ;;  %v1323_v61 = vadd.f32 %v1676_v43, %v1322_v60 }
 0x309   : > { %1342 = vst [vmem:[#allocation3] sm:$0xff] %v1336_v21  ;;  %1679 = vtanh.f32 %v1336_v21  ;;  %v1327_v15 = vsel %vm1326_vm15, %v1676_v43, %v1323_v61 }
 0x30a   : > { %v1332_v3 = vsel %vm1329_vm0, %v1331_v1, %v1327_v15 }
 0x30f   : > { %v1680_v2 = vpop.eup %1679 }
 0x310   : > { %v1338_v63 = vmul.f32 %v1680_v2, %v1332_v3 }
 0x312   : > { %1341 = vst [vmem:[#allocation2] sm:$0xff] %v1338_v63  ;;  %1392 = vmatmul.f32.gmra.mxu0 %v1338_v63 }
 0x38f   : > { %v1393_v4 = vpop.f32.mrf.mxu0 }
 0x390   : > { %v1394_v19 = vadd.f32 %v2406_v6, %v1393_v4 }
 0x392   : > { %1399 = vst [vmem:[%s1940_s16 + $0x18] sm:$0xff] %v1394_v19 }
 0x393   : > { %1768 = shalt.err (!%p1765_p9)
}
 0x394   : > { %s1820_s10 = smov 128   ;;  %s1821_s16 = smov 8  }
 0x395   : > { %1557 = dma.vmem_to_hbm [thread:$0]  (%p1895_p5), %s1414_s14, 512, %s1416_s17, %s1401_s18, %s1820_s10, %s1820_s10, %s1821_s16  }
 0x396 PF: > { %p1574_p10 = scmp.ge.s32.totalorder %s1811_s24, 2  ;;  %s1430_s11 = sand.u32 1, %s1799_s21  }
 0x397   : > { %s1431_s9 = scalar_lea.sflag [#allocation8], %s1430_s11 }
 0x398   : > { %p1567_p11 = pnand %p1574_p10, %p1899_p6 }
 0x39a   : > { %p1568_p12 = pneg %p1567_p11 }
 0x39c   : > { %1794 = dma.done.wait (%p1568_p12), %s1431_s9, 512  }
 0x39d   : > { %1796 = vsyncadd (%p1568_p12), %s1431_s9, 4294966784  ;;  %p18_p13 = scmp.ge.s32.totalorder %s1882_s27, 4   ;;  %s2469_s21 = smov %s1803_s22 }
 0x39e   : > { %s2470_s22 = smov %s1807_s23  ;;  %s2471_s23 = smov %s1893_s30 }
 0x39f   : > { %s2472_s24 = smov %s1882_s27  ;;  %20 = sbr.rel (!%p18_p13) target bundleno = 5 (0x5), region = 99 }
 0x3a4   :  { %1437 = vsyncpa [#allocation7], 1 }
 0x3a5   :  { %1439 = vsyncpa [#allocation7 + $0x1], 1 }
 0x3a6   :  { %1440 = vsyncpa [#allocation10], 1 }
 0x3a7   :  { %1441 = vsyncpa [#allocation8], 1 }
 0x3a8   :  { %1443 = vsyncpa [#allocation8 + $0x1], 1 }

// kernel: tpu_custom_call.1
= control target key start
LH: loop header
LB: loop body
LE: loop exit
PB: predicated region body
PF: predicated region fallthrough
CT: control target
= control target key end

     0   :  { %11 = vsyncpa [#allocation7], 0  ;;  %s2453_s0 = inlined_call_operand.vmem [shape: f32[64,16], index: 0, kind: input, shape index: {}]   ;;  %s2454_s1 = inlined_call_operand.vmem [shape: f32[16,512], index: 1, kind: input, shape index: {}]   ;;  %s2455_s2 = inlined_call_operand.hbm [shape: f32[128,512], index: 2, kind: input, shape index: {}]   ;;  %s2456_s3 = inlined_call_operand.vmem [shape: f32[1,512], index: 3, kind: input, shape index: {}]   ;;  %s2457_s4 = inlined_call_operand.hbm [shape: f32[128,128], index: 4, kind: input, shape index: {}]   ;;  %s2458_s5 = inlined_call_operand.vmem [shape: f32[1,128], index: 5, kind: input, shape index: {}]   ;;  %s2459_s6 = inlined_call_operand.hbm [shape: f32[64,128], index: 6, kind: output, shape index: {}]  }
   0x1   :  { %12 = vsyncpa [#allocation10], 0 }
   0x2   :  { %13 = vsyncpa [#allocation8], 0 }
   0x3   :  { %15 = vsyncpa [#allocation8 + $0x1], 0  ;;  %s1857_s21 = smov 0   ;;  %s1859_s22 = smov 0  }
   0x4   :  { %s1861_s23 = smov 0   ;;  %s1863_s24 = smov 0  }
   0x5 LB: > { %s1878_s25 = sadd.s32 4294967295, %s1811_s24   ;;  %s1503_s26 = sadd.s32 4294967294, %s1811_s24   ;;  %s1811_s24 = sphi %s1863_s24, %s2472_s24   ;;  %s1807_s23 = sphi %s1861_s23, %s2471_s23   ;;  %s1803_s22 = sphi %s1859_s22, %s2470_s22   ;;  %s1799_s21 = sphi %s1857_s21, %s2469_s21  }
   0x6   : > { %s1882_s27 = sadd.s32 1, %s1811_s24   ;;  %s159_s28 = sadd.s32 1, %s1807_s23 }
   0x7   : > { %s156_s29 = ssub.s32 %s1811_s24, %s1882_s27  ;;  %p169_p0 = scmp.ne.s32.totalorder %s1807_s23, %s1803_s22 }
   0x8   : > { %p157_p1 = scmp.eq.s32.totalorder %s156_s29, 0  ;;  %p170_p2 = scmp.eq.s32.totalorder %s1878_s25, 1 }
   0x9   : > { %p175_p3 = scmp.ne.s32.totalorder %s1803_s22, %s1799_s21  ;;  %p176_p4 = scmp.eq.s32.totalorder %s1503_s26, 1 }
   0xa   : > { %s1893_s30 = scalar_select %p157_p1, %s1807_s23, %s159_s28  }
   0xb   : > { %p1895_p5 = por %p170_p2, %p169_p0  ;;  %p1899_p6 = por %p176_p4, %p175_p3 }
   0xc   : > { %p1504_p7 = scmp.ge.s32.totalorder %s1811_s24, 1  ;;  %p183_p8 = scmp.lt.s32.totalorder %s1811_s24, 3 }
   0xd   : > { %p1505_p9 = scmp.ne.s32.totalorder %s1878_s25, 0  ;;  %p1570_p10 = scmp.eq.s32.totalorder %s1878_s25, 0 }
   0xe   : > { %p1907_p11 = pnand %p1504_p7, %p183_p8  ;;  %s197_s12 = sshll.u32 %s2455_s2, 4  ;;  %s198_s12 = int_to_ptr.hbm [resolvable:$true] %s197_s12 }
   0xf   : > { %s1813_s13 = smov [#allocation6]   ;;  %s214_s17 = sshll.u32 %s2457_s4, 4  ;;  %s215_s17 = int_to_ptr.hbm [resolvable:$true] %s214_s17 }
  0x10   : > { %p1559_p12 = pneg %p1907_p11  ;;  %s199_s14 = sshll.u32 %s1813_s13, 4  ;;  %s200_s14 = int_to_ptr.vmem [resolvable:$true] %s199_s14 }
  0x11   : > { %s1814_s18 = smov 512   ;;  %s1815_s19 = smov 32  }
  0x12   : > { %p1560_p13 = pnand %p1570_p10, %p1559_p12  ;;  %s1816_s20 = smov [#allocation9]  }
  0x13   : > { %s216_s26 = sshll.u32 %s1816_s20, 4  ;;  %s1817_s28 = smov 128   ;;  %s217_s26 = int_to_ptr.vmem [resolvable:$true] %s216_s26 }
  0x14   : > { %1562 = dma.hbm_to_vmem [thread:$0]  (!%p1560_p13), %s198_s12, 8192, %s200_s14, [#allocation7], %s1814_s18, %s1814_s18, %s1815_s19  }
  0x15   : > { %s1818_s29 = smov 8   ;;  %244 = sbr.rel (%p1907_p11) target bundleno = 918 (0x396), region = 44 }
  0x16   : > { %1565 = dma.hbm_to_vmem [thread:$0]  (!%p1560_p13), %s215_s17, 2048, %s217_s26, [#allocation10], %s1817_s28, %s1817_s28, %s1818_s29  }
  0x1a   : > { %1786 = dma.done.wait (%p1570_p10), [#allocation7], 8192  }
  0x1b   : > { %1788 = vsyncadd (%p1570_p10), [#allocation7], 4294959104 }
  0x1c   : > { %1790 = dma.done.wait (%p1570_p10), [#allocation10], 2048  }
  0x1d   : > { %1792 = vsyncadd (%p1570_p10), [#allocation10], 4294965248  ;;  %s277_s10 = sand.u32 1, %s1803_s22   ;;  %s1512_s11 = sshll.u32 %s1878_s25, 2 }
  0x1e   : > { %s1511_s9 = sshll.u32 %s277_s10, 5  ;;  %p281_p0 = scmp.lt.s32.totalorder %s1512_s11, 7 }
  0x1f   : > { %s1940_s16 = scalar_lea.vmem [#allocation11], %s1511_s9  ;;  %290 = sbr.rel (%p1505_p9) target bundleno = 39 (0x27), region = 56 }
  0x20   : > { %s2474_s11 = smov (!%p281_p0, %s1512_s11), 7 }
  0x21   : > { %s1513_s12 = sshll.u32 %s2474_s11, 3 }
  0x22   : > { %s1938_s15 = scalar_lea.vmem %s2453_s0, %s1513_s12 }
  0x24   : > { %v1819_v0 = vmov 0.0  }
  0x25   : > { %291 = vst [vmem:[#allocation2] sm:$0xff] %v1819_v0 }
  0x26   : > { %292 = vst [vmem:[#allocation3] sm:$0xff] %v1819_v0 }
  0x27 PF: > { %v302_v1 = vld [vmem:[%s2454_s1 + $0x28] sm:$0xff]  ;;  %v304_v2 = vld [vmem:[%s2454_s1 + $0x38] sm:$0xff]  ;;  %v1957_v5 = vld [vmem:[%s1938_s15] sm:$0xff]  ;;  %vm315_vm0 = vcmask 130048   ;;  %s1548_s11 = sshll.u32 %s1878_s25, 5  ;;  %s1413_s14 = sshll.u32 %s1940_s16, 4  ;;  %s1414_s14 = int_to_ptr.vmem [resolvable:$true] %s1413_s14 }
  0x28   : > { %v298_v3 = vld [vmem:[%s2454_s1 + $0x8] sm:$0xff]  ;;  %371 = vmatpush.msra.mxu1 %v302_v1  ;;  %429 = vmatpush.msra.mxu3 %v304_v2  ;;  %v300_v4 = vld [vmem:[%s2454_s1 + $0x18] sm:$0xff]  ;;  %v1959_v6 = vld [vmem:[#allocation6 + $0x1e0] sm:$0xff]  ;;  %s1412_s13 = scalar_lea.hbm %s2459_s6, %s1548_s11  ;;  %s1401_s18 = scalar_lea.sflag [#allocation8], %s277_s10 }
  0x29   : > { %v1961_v7 = vld [vmem:[#allocation6 + $0x1f8] sm:$0xff]  ;;  %v1967_v8 = vld [vmem:[#allocation6 + $0x1c0] sm:$0xff]  ;;  %v2010_v21 = vld [vmem:[#allocation6 + $0x1f0] sm:$0xff]  ;;  %s1415_s17 = sshll.u32 %s1412_s13, 4  ;;  %s1761_s26 = scalar_lea.hbm %s2459_s6, 64  ;;  %s1416_s17 = int_to_ptr.hbm [resolvable:$true] %s1415_s17 }
  0x2a   : > { %372 = vmatpush.msra.mxu1 %v298_v3  ;;  %430 = vmatpush.msra.mxu3 %v300_v4  ;;  %v1969_v9 = vld [vmem:[#allocation6 + $0x1d8] sm:$0xff]  ;;  %v1973_v10 = vld [vmem:[#allocation6 + $0x1a0] sm:$0xff]  ;;  %v301_v24 = vld [vmem:[%s2454_s1 + $0x20] sm:$0xff]  ;;  %s1755_s19 = sshra.s32 %s1416_s17, 4  ;;  %s1756_s19 = int_to_ptr.hbm [resolvable:$true] %s1755_s19 }
  0x2b   : > { %1519 = vmatmul.msk.f32.vlgmr.msra.gmra.mxu1 %vm315_vm0, %v1957_v5  ;;  %1527 = vmatmul.msk.f32.vlgmr.msra.gmra.mxu3 %vm315_vm0, %v1957_v5  ;;  %v1975_v11 = vld [vmem:[#allocation6 + $0x1b8] sm:$0xff]  ;;  %v303_v12 = vld [vmem:[%s2454_s1 + $0x30] sm:$0xff]  ;;  %v2023_v25 = vld [vmem:[#allocation6 + $0x1d0] sm:$0xff]  ;;  %s1757_s20 = scalar_lea.hbm %s1756_s19, 32  ;;  %p1762_p4 = scmp.lt.s32.totalorder %s1756_s19, %s2459_s6 }
  0x2c   : > { %533 = vmatpush.msrb.mxu1 %v1959_v6  ;;  %593 = vmatpush.msrb.mxu3 %v1961_v7  ;;  %v299_v13 = vld [vmem:[%s2454_s1 + $0x10] sm:$0xff]  ;;  %v1987_v15 = vld [vmem:[#allocation6 + $0x198] sm:$0xff]  ;;  %v297_v26 = vld [vmem:[%s2454_s1] sm:$0xff]  ;;  %p1758_p1 = scmp.ne.s32.totalorder %s1756_s19, %s1757_s20  ;;  %p1763_p7 = scmp.lt.s32.totalorder %s1761_s26, %s1757_s20 }
  0x2d   : > { %v1985_v14 = vld [vmem:[#allocation6 + $0x180] sm:$0xff]  ;;  %400 = vmatpush.msra.mxu2 %v303_v12  ;;  %v1992_v16 = vld [vmem:[%s1938_s15 + $0x8] sm:$0xff]  ;;  %342 = vmatpush.msra.mxu0 %v301_v24  ;;  %v2045_v32 = vld [vmem:[#allocation6 + $0x1b0] sm:$0xff] }
  0x2e   : > { %534 = vmatpush.msrb.mxu1 %v1967_v8  ;;  %594 = vmatpush.msrb.mxu3 %v1969_v9  ;;  %v1994_v17 = vld [vmem:[#allocation6 + $0x160] sm:$0xff]  ;;  %v1996_v18 = vld [vmem:[#allocation6 + $0x178] sm:$0xff]  ;;  %v2057_v35 = vld [vmem:[#allocation6 + $0x190] sm:$0xff]  ;;  %p1759_p2 = pnand %p1758_p1, %p1895_p5  ;;  %p1764_p8 = por %p1763_p7, %p1762_p4 }
  0x2f   : > { %401 = vmatpush.msra.mxu2 %v299_v13  ;;  %v2004_v19 = vld [vmem:[#allocation6 + $0x140] sm:$0xff]  ;;  %v2006_v20 = vld [vmem:[#allocation6 + $0x158] sm:$0xff]  ;;  %343 = vmatpush.msra.mxu0 %v297_v26  ;;  %v2077_v40 = vld [vmem:[%s1938_s15 + $0x18] sm:$0xff] }
  0x30   : > { %535 = vmatpush.msrb.mxu1 %v1973_v10  ;;  %595 = vmatpush.msrb.mxu3 %v1975_v11  ;;  %v2012_v22 = vld [vmem:[#allocation6 + $0x120] sm:$0xff]  ;;  %v2014_v23 = vld [vmem:[#allocation6 + $0x138] sm:$0xff]  ;;  %v2083_v42 = vld [vmem:[#allocation6 + $0x170] sm:$0xff]  ;;  %p1760_p3 = pneg %p1759_p2 }
  0x31   : > { %1523 = vmatmul.msk.f32.vlgmr.msra.gmra.mxu2 %vm315_vm0, %v1957_v5  ;;  %v2028_v27 = vld [vmem:[#allocation6 + $0x100] sm:$0xff]  ;;  %v2030_v28 = vld [vmem:[#allocation6 + $0x118] sm:$0xff]  ;;  %1515 = vmatmul.msk.f32.vlgmr.msra.gmra.mxu0 %vm315_vm0, %v1957_v5  ;;  %v2096_v45 = vld [vmem:[#allocation6 + $0x150] sm:$0xff] }
  0x32   : > { %536 = vmatpush.msrb.mxu1 %v1985_v14  ;;  %596 = vmatpush.msrb.mxu3 %v1987_v15  ;;  %v2036_v29 = vld [vmem:[%s1938_s15 + $0x10] sm:$0xff]  ;;  %v2040_v31 = vld [vmem:[#allocation6 + $0xf8] sm:$0xff]  ;;  %v2105_v48 = vld [vmem:[#allocation6 + $0x130] sm:$0xff]  ;;  %p1765_p9 = pnand %p1764_p8, %p1760_p3 }
  0x33   : > { %1520 = vmatmul.msk.f32.gmra.mxu1 %vm315_vm0, %v1992_v16  ;;  %1528 = vmatmul.msk.f32.gmra.mxu3 %vm315_vm0, %v1992_v16  ;;  %v2038_v30 = vld [vmem:[#allocation6 + $0xe0] sm:$0xff]  ;;  %2465 = vst [vmem:[#allocation15_spill] sm:$0xff] %v2040_v31  ;;  %v2053_v34 = vld [vmem:[#allocation6 + $0xd8] sm:$0xff]  ;;  %v2115_v51 = vld [vmem:[#allocation6 + $0x110] sm:$0xff] }
  0x34   : > { %537 = vmatpush.msrb.mxu1 %v1994_v17  ;;  %597 = vmatpush.msrb.mxu3 %v1996_v18  ;;  %v2051_v33 = vld [vmem:[#allocation6 + $0xc0] sm:$0xff]  ;;  %2466 = vst [vmem:[#allocation16_spill] sm:$0xff] %v2053_v34  ;;  %v2062_v37 = vld [vmem:[#allocation6 + $0xb8] sm:$0xff]  ;;  %v2120_v52 = vld [vmem:[#allocation6 + $0x1e8] sm:$0xff] }
  0x35   : > { %573 = vmatpush.msrb.mxu2 %v2010_v21  ;;  %v2059_v36 = vld [vmem:[#allocation6 + $0xa0] sm:$0xff]  ;;  %v2071_v39 = vld [vmem:[#allocation6 + $0x98] sm:$0xff]  ;;  %752 = vmatpush.msrb.mxu0 %v1959_v6  ;;  %v2127_v54 = vld [vmem:[#allocation2] sm:$0xff] }
  0x36   : > { %538 = vmatpush.msrb.mxu1 %v2004_v19  ;;  %598 = vmatpush.msrb.mxu3 %v2006_v20  ;;  %v2068_v38 = vld [vmem:[#allocation6 + $0x80] sm:$0xff]  ;;  %v2088_v43 = vld [vmem:[#allocation6 + $0x78] sm:$0xff]  ;;  %v2129_v55 = vld [vmem:[#allocation6 + $0xf0] sm:$0xff] }
  0x37   : > { %574 = vmatpush.msrb.mxu2 %v2023_v25  ;;  %v2081_v41 = vld [vmem:[#allocation6 + $0x60] sm:$0xff]  ;;  %753 = vmatpush.msrb.mxu0 %v1967_v8  ;;  %v2100_v46 = vld [vmem:[#allocation6 + $0x58] sm:$0xff]  ;;  %v2133_v56 = vld [vmem:[#allocation6 + $0x1c8] sm:$0xff] }
  0x38   : > { %539 = vmatpush.msrb.mxu1 %v2012_v22  ;;  %599 = vmatpush.msrb.mxu3 %v2014_v23  ;;  %v2094_v44 = vld [vmem:[#allocation6 + $0x40] sm:$0xff]  ;;  %v2110_v49 = vld [vmem:[#allocation6 + $0x38] sm:$0xff]  ;;  %v2137_v57 = vld [vmem:[#allocation6 + $0xd0] sm:$0xff] }
  0x39   : > { %575 = vmatpush.msrb.mxu2 %v2045_v32  ;;  %v2103_v47 = vld [vmem:[#allocation6 + $0x20] sm:$0xff]  ;;  %754 = vmatpush.msrb.mxu0 %v1973_v10  ;;  %v2122_v53 = vld [vmem:[#allocation6 + $0x18] sm:$0xff]  ;;  %v2141_v58 = vld [vmem:[#allocation6 + $0x1a8] sm:$0xff] }
  0x3a   : > { %540 = vmatpush.msrb.mxu1 %v2028_v27  ;;  %600 = vmatpush.msrb.mxu3 %v2030_v28  ;;  %v2113_v50 = vld [vmem:[#allocation6] sm:$0xff]  ;;  %v2145_v59 = vld [vmem:[#allocation6 + $0xb0] sm:$0xff]  ;;  %v2148_v60 = vld [vmem:[#allocation6 + $0x188] sm:$0xff] }
  0x3b   : > { %1521 = vmatmul.msk.f32.gmra.mxu1 %vm315_vm0, %v2036_v29  ;;  %1529 = vmatmul.msk.f32.gmra.mxu3 %vm315_vm0, %v2036_v29  ;;  %v2152_v61 = vld [vmem:[#allocation6 + $0x90] sm:$0xff]  ;;  %v2157_v62 = vld [vmem:[#allocation6 + $0x168] sm:$0xff] }
  0x3c   : > { %541 = vmatpush.msrb.mxu1 %v2038_v30  ;;  %601 = vmatpush.msrb.mxu3 %v2040_v31  ;;  %v2163_v63 = vld [vmem:[#allocation6 + $0x70] sm:$0xff]  ;;  %v2166_v0 = vld [vmem:[#allocation6 + $0x148] sm:$0xff] }
  0x3d   : > { %576 = vmatpush.msrb.mxu2 %v2057_v35  ;;  %755 = vmatpush.msrb.mxu0 %v1985_v14  ;;  %v2170_v1 = vld [vmem:[#allocation6 + $0x50] sm:$0xff]  ;;  %v2174_v2 = vld [vmem:[#allocation6 + $0x128] sm:$0xff] }
  0x3e   : > { %542 = vmatpush.msrb.mxu1 %v2051_v33  ;;  %602 = vmatpush.msrb.mxu3 %v2053_v34  ;;  %v2178_v3 = vld [vmem:[#allocation6 + $0x30] sm:$0xff]  ;;  %v2182_v4 = vld [vmem:[#allocation6 + $0x108] sm:$0xff] }
  0x3f   : > { %1524 = vmatmul.msk.f32.gmra.mxu2 %vm315_vm0, %v1992_v16  ;;  %1516 = vmatmul.msk.f32.gmra.mxu0 %vm315_vm0, %v1992_v16  ;;  %v2186_v5 = vld [vmem:[#allocation6 + $0x10] sm:$0xff]  ;;  %v2190_v12 = vld [vmem:[#allocation6 + $0xe8] sm:$0xff] }
  0x40   : > { %543 = vmatpush.msrb.mxu1 %v2059_v36  ;;  %603 = vmatpush.msrb.mxu3 %v2062_v37  ;;  %v2196_v13 = vld [vmem:[#allocation6 + $0xc8] sm:$0xff] }
  0x41   : > { %577 = vmatpush.msrb.mxu2 %v2083_v42  ;;  %756 = vmatpush.msrb.mxu0 %v1994_v17  ;;  %v2201_v16 = vld [vmem:[#allocation6 + $0xa8] sm:$0xff] }
  0x42   : > { %544 = vmatpush.msrb.mxu1 %v2068_v38  ;;  %604 = vmatpush.msrb.mxu3 %v2071_v39  ;;  %v2208_v24 = vld [vmem:[#allocation6 + $0x88] sm:$0xff] }
  0x43   : > { %1522 = vmatmul.msk.f32.gmra.mxu1 %vm315_vm0, %v2077_v40  ;;  %1530 = vmatmul.msk.f32.gmra.mxu3 %vm315_vm0, %v2077_v40  ;;  %v2214_v26 = vld [vmem:[#allocation6 + $0x68] sm:$0xff] }
  0x44   : > { %545 = vmatpush.msrb.mxu1 %v2081_v41  ;;  %605 = vmatpush.msrb.mxu3 %v2088_v43 }
  0x45   : > { %578 = vmatpush.msrb.mxu2 %v2096_v45  ;;  %757 = vmatpush.msrb.mxu0 %v2004_v19 }
  0x46   : > { %546 = vmatpush.msrb.mxu1 %v2094_v44  ;;  %606 = vmatpush.msrb.mxu3 %v2100_v46 }
  0x47   : > { %579 = vmatpush.msrb.mxu2 %v2105_v48  ;;  %758 = vmatpush.msrb.mxu0 %v2012_v22 }
  0x48   : > { %547 = vmatpush.msrb.mxu1 %v2103_v47  ;;  %607 = vmatpush.msrb.mxu3 %v2110_v49 }
  0x49   : > { %1525 = vmatmul.msk.f32.gmra.mxu2 %vm315_vm0, %v2036_v29  ;;  %759 = vmatpush.msrb.mxu0 %v2028_v27 }
  0x4a   : > { %548 = vmatpush.msrb.mxu1 %v2113_v50  ;;  %580 = vmatpush.msrb.mxu2 %v2115_v51 }
  0x4b   : > { %608 = vmatpush.msrb.mxu3 %v2122_v53  ;;  %549 = vmatmul.f32.vlgmr.msrb.gmra.mxu1 %v2127_v54 }
  0x4c   : > { %553 = vmatpush.msra.mxu1 %v2120_v52  ;;  %581 = vmatpush.msrb.mxu2 %v2129_v55 }
  0x4d   : > { %609 = vmatmul.f32.vlgmr.msrb.gmra.mxu3 %v2127_v54  ;;  %1517 = vmatmul.msk.f32.gmra.mxu0 %vm315_vm0, %v2036_v29  ;;  %v2220_v29 = vld [vmem:[#allocation6 + $0x48] sm:$0xff] }
  0x4e   : > { %554 = vmatpush.msra.mxu1 %v2133_v56  ;;  %582 = vmatpush.msrb.mxu2 %v2137_v57 }
  0x4f   : > { %812 = vmatpush.msra.mxu3 %v1961_v7  ;;  %760 = vmatpush.msrb.mxu0 %v2038_v30 }
  0x50   : > { %555 = vmatpush.msra.mxu1 %v2141_v58  ;;  %583 = vmatpush.msrb.mxu2 %v2145_v59 }
  0x51   : > { %813 = vmatpush.msra.mxu3 %v1969_v9  ;;  %1526 = vmatmul.msk.f32.gmra.mxu2 %vm315_vm0, %v2077_v40 }
  0x52   : > { %556 = vmatpush.msra.mxu1 %v2148_v60  ;;  %584 = vmatpush.msrb.mxu2 %v2152_v61 }
  0x53   : > { %814 = vmatpush.msra.mxu3 %v1975_v11  ;;  %761 = vmatpush.msrb.mxu0 %v2051_v33 }
  0x54   : > { %557 = vmatpush.msra.mxu1 %v2157_v62  ;;  %585 = vmatpush.msrb.mxu2 %v2163_v63 }
  0x55   : > { %815 = vmatpush.msra.mxu3 %v1987_v15  ;;  %762 = vmatpush.msrb.mxu0 %v2059_v36 }
  0x56   : > { %558 = vmatpush.msra.mxu1 %v2166_v0  ;;  %586 = vmatpush.msrb.mxu2 %v2170_v1 }
  0x57   : > { %816 = vmatpush.msra.mxu3 %v1996_v18  ;;  %763 = vmatpush.msrb.mxu0 %v2068_v38 }
  0x58   : > { %559 = vmatpush.msra.mxu1 %v2174_v2  ;;  %587 = vmatpush.msrb.mxu2 %v2178_v3 }
  0x59   : > { %817 = vmatpush.msra.mxu3 %v2006_v20  ;;  %1518 = vmatmul.msk.f32.gmra.mxu0 %vm315_vm0, %v2077_v40 }
  0x5a   : > { %560 = vmatpush.msra.mxu1 %v2182_v4  ;;  %588 = vmatpush.msrb.mxu2 %v2186_v5 }
  0x5b   : > { %818 = vmatpush.msra.mxu3 %v2014_v23  ;;  %589 = vmatmul.f32.vlgmr.msrb.gmra.mxu2 %v2127_v54 }
  0x5c   : > { %561 = vmatpush.msra.mxu1 %v2190_v12  ;;  %792 = vmatpush.msra.mxu2 %v2010_v21 }
  0x5d   : > { %819 = vmatpush.msra.mxu3 %v2030_v28  ;;  %764 = vmatpush.msrb.mxu0 %v2081_v41 }
  0x5e   : > { %562 = vmatpush.msra.mxu1 %v2196_v13  ;;  %793 = vmatpush.msra.mxu2 %v2023_v25 }
  0x5f   : > { %820 = vmatpush.msra.mxu3 %v2040_v31  ;;  %v2226_v31 = vld [vmem:[#allocation6 + $0x28] sm:$0xff]  ;;  %765 = vmatpush.msrb.mxu0 %v2094_v44 }
  0x60   : > { %563 = vmatpush.msra.mxu1 %v2201_v16  ;;  %794 = vmatpush.msra.mxu2 %v2045_v32 }
  0x61   : > { %821 = vmatpush.msra.mxu3 %v2053_v34  ;;  %v2232_v34 = vld [vmem:[#allocation6 + $0x8] sm:$0xff]  ;;  %766 = vmatpush.msrb.mxu0 %v2103_v47 }
  0x62   : > { %564 = vmatpush.msra.mxu1 %v2208_v24  ;;  %795 = vmatpush.msra.mxu2 %v2057_v35 }
  0x63   : > { %822 = vmatpush.msra.mxu3 %v2062_v37  ;;  %767 = vmatpush.msrb.mxu0 %v2113_v50 }
  0x64   : > { %565 = vmatpush.msra.mxu1 %v2214_v26  ;;  %796 = vmatpush.msra.mxu2 %v2083_v42 }
  0x65   : > { %823 = vmatpush.msra.mxu3 %v2071_v39  ;;  %972 = vmatpush.msra.mxu0 %v1959_v6  ;;  %v2467_v6 = vld [vmem:[#allocation15_spill] sm:$0xff] }
  0x66   : > { %566 = vmatpush.msra.mxu1 %v2220_v29  ;;  %797 = vmatpush.msra.mxu2 %v2096_v45 }
  0x67   : > { %824 = vmatpush.msra.mxu3 %v2088_v43  ;;  %973 = vmatpush.msra.mxu0 %v1967_v8 }
  0x68   : > { %567 = vmatpush.msra.mxu1 %v2226_v31  ;;  %798 = vmatpush.msra.mxu2 %v2105_v48 }
  0x69   : > { %825 = vmatpush.msra.mxu3 %v2100_v46  ;;  %974 = vmatpush.msra.mxu0 %v1973_v10 }
  0x6a   : > { %568 = vmatpush.msra.mxu1 %v2232_v34  ;;  %799 = vmatpush.msra.mxu2 %v2115_v51 }
  0x6b   : > { %569 = vmatmul.f32.vlgmr.msra.gmra.mxu1 %v2127_v54  ;;  %826 = vmatpush.msra.mxu3 %v2110_v49 }
  0x6c   : > { %772 = vmatpush.msrb.mxu1 %v2120_v52  ;;  %800 = vmatpush.msra.mxu2 %v2129_v55 }
  0x6d   : > { %827 = vmatpush.msra.mxu3 %v2122_v53  ;;  %975 = vmatpush.msra.mxu0 %v1985_v14 }
  0x6e   : > { %773 = vmatpush.msrb.mxu1 %v2133_v56  ;;  %801 = vmatpush.msra.mxu2 %v2137_v57 }
  0x6f   : > { %1032 = vmatpush.msrb.mxu3 %v1961_v7  ;;  %976 = vmatpush.msra.mxu0 %v1994_v17  ;;  %v2468_v7 = vld [vmem:[#allocation16_spill] sm:$0xff] }
  0x70   : > { %774 = vmatpush.msrb.mxu1 %v2141_v58  ;;  %802 = vmatpush.msra.mxu2 %v2145_v59 }
  0x71   : > { %1033 = vmatpush.msrb.mxu3 %v1969_v9  ;;  %977 = vmatpush.msra.mxu0 %v2004_v19  ;;  %v305_v9 = vld [vmem:[%s2456_s3] sm:$0xf] }
  0x72   : > { %775 = vmatpush.msrb.mxu1 %v2148_v60  ;;  %803 = vmatpush.msra.mxu2 %v2152_v61  ;;  %v310_v17 = vperm.slane %v305_v9, 3 }
  0x73   : > { %1034 = vmatpush.msrb.mxu3 %v1975_v11  ;;  %978 = vmatpush.msra.mxu0 %v2012_v22  ;;  %v308_v11 = vperm.slane %v305_v9, 1 }
  0x74   : > { %776 = vmatpush.msrb.mxu1 %v2157_v62  ;;  %804 = vmatpush.msra.mxu2 %v2163_v63 }
  0x75   : > { %1035 = vmatpush.msrb.mxu3 %v1987_v15  ;;  %979 = vmatpush.msra.mxu0 %v2028_v27 }
  0x76   : > { %777 = vmatpush.msrb.mxu1 %v2166_v0  ;;  %805 = vmatpush.msra.mxu2 %v2170_v1 }
  0x77   : > { %1036 = vmatpush.msrb.mxu3 %v1996_v18  ;;  %980 = vmatpush.msra.mxu0 %v2038_v30  ;;  %v309_v30 = vperm.slane %v305_v9, 2 }
  0x78   : > { %778 = vmatpush.msrb.mxu1 %v2174_v2  ;;  %806 = vmatpush.msra.mxu2 %v2178_v3 }
  0x79   : > { %1037 = vmatpush.msrb.mxu3 %v2006_v20  ;;  %981 = vmatpush.msra.mxu0 %v2051_v33 }
  0x7a   : > { %779 = vmatpush.msrb.mxu1 %v2182_v4  ;;  %807 = vmatpush.msra.mxu2 %v2186_v5 }
  0x7b   : > { %1038 = vmatpush.msrb.mxu3 %v2014_v23  ;;  %982 = vmatpush.msra.mxu0 %v2059_v36 }
  0x7c   : > { %780 = vmatpush.msrb.mxu1 %v2190_v12  ;;  %1012 = vmatpush.msrb.mxu2 %v2010_v21 }
  0x7d   : > { %1039 = vmatpush.msrb.mxu3 %v2030_v28  ;;  %983 = vmatpush.msra.mxu0 %v2068_v38 }
  0x7e   : > { %781 = vmatpush.msrb.mxu1 %v2196_v13  ;;  %1013 = vmatpush.msrb.mxu2 %v2023_v25 }
  0x7f   : > { %1040 = vmatpush.msrb.mxu3 %v2467_v6  ;;  %984 = vmatpush.msra.mxu0 %v2081_v41 }
  0x80   : > { %782 = vmatpush.msrb.mxu1 %v2201_v16  ;;  %1014 = vmatpush.msrb.mxu2 %v2045_v32 }
  0x81   : > { %1041 = vmatpush.msrb.mxu3 %v2468_v7  ;;  %985 = vmatpush.msra.mxu0 %v2094_v44 }
  0x82   : > { %783 = vmatpush.msrb.mxu1 %v2208_v24  ;;  %1015 = vmatpush.msrb.mxu2 %v2057_v35  ;;  %v2355_v35 = vperm.slane %v305_v9, 0 }
  0x83   : > { %1042 = vmatpush.msrb.mxu3 %v2062_v37  ;;  %986 = vmatpush.msra.mxu0 %v2103_v47 }
  0x84   : > { %784 = vmatpush.msrb.mxu1 %v2214_v26  ;;  %1016 = vmatpush.msrb.mxu2 %v2083_v42 }
  0x85   : > { %1043 = vmatpush.msrb.mxu3 %v2071_v39  ;;  %987 = vmatpush.msra.mxu0 %v2113_v50 }
  0x86   : > { %785 = vmatpush.msrb.mxu1 %v2220_v29  ;;  %1017 = vmatpush.msrb.mxu2 %v2096_v45 }
  0x87   : > { %1044 = vmatpush.msrb.mxu3 %v2088_v43 }
  0x88   : > { %786 = vmatpush.msrb.mxu1 %v2226_v31  ;;  %1018 = vmatpush.msrb.mxu2 %v2105_v48 }
  0x89   : > { %1045 = vmatpush.msrb.mxu3 %v2100_v46 }
  0x8a   : > { %787 = vmatpush.msrb.mxu1 %v2232_v34  ;;  %1019 = vmatpush.msrb.mxu2 %v2115_v51 }
  0x8b   : > { %1046 = vmatpush.msrb.mxu3 %v2110_v49 }
  0x8c   : > { %992 = vmatpush.msra.mxu1 %v2120_v52  ;;  %1020 = vmatpush.msrb.mxu2 %v2129_v55 }
  0x8d   : > { %1047 = vmatpush.msrb.mxu3 %v2122_v53 }
  0x8e   : > { %993 = vmatpush.msra.mxu1 %v2133_v56  ;;  %1021 = vmatpush.msrb.mxu2 %v2137_v57 }
  0x90   : > { %994 = vmatpush.msra.mxu1 %v2141_v58  ;;  %1022 = vmatpush.msrb.mxu2 %v2145_v59 }
  0x92   : > { %995 = vmatpush.msra.mxu1 %v2148_v60  ;;  %1023 = vmatpush.msrb.mxu2 %v2152_v61 }
  0x94   : > { %996 = vmatpush.msra.mxu1 %v2157_v62  ;;  %1024 = vmatpush.msrb.mxu2 %v2163_v63 }
  0x96   : > { %997 = vmatpush.msra.mxu1 %v2166_v0  ;;  %1025 = vmatpush.msrb.mxu2 %v2170_v1 }
  0x98   : > { %998 = vmatpush.msra.mxu1 %v2174_v2  ;;  %1026 = vmatpush.msrb.mxu2 %v2178_v3 }
  0x9a   : > { %999 = vmatpush.msra.mxu1 %v2182_v4  ;;  %1027 = vmatpush.msrb.mxu2 %v2186_v5 }
  0x9c   : > { %1000 = vmatpush.msra.mxu1 %v2190_v12 }
  0x9e   : > { %1001 = vmatpush.msra.mxu1 %v2196_v13 }
  0xa0   : > { %1002 = vmatpush.msra.mxu1 %v2201_v16 }
  0xa2   : > { %1003 = vmatpush.msra.mxu1 %v2208_v24 }
  0xa4   : > { %1004 = vmatpush.msra.mxu1 %v2214_v26 }
  0xa6   : > { %1005 = vmatpush.msra.mxu1 %v2220_v29 }
  0xa8   : > { %1006 = vmatpush.msra.mxu1 %v2226_v31  ;;  %v374_v8 = vpop.f32.mrf.mxu1 }
  0xa9   : > { %v375_v51 = vadd.f32 %v374_v8, %v308_v11 }
  0xaa   : > { %1007 = vmatpush.msra.mxu1 %v2232_v34 }
  0xae   : > { %v432_v10 = vpop.f32.mrf.mxu3  ;;  %v345_v36 = vpop.f32.mrf.mxu0 }
  0xaf   : > { %v346_v39 = vadd.f32 %v345_v36, %v2355_v35  ;;  %v433_v45 = vadd.f32 %v432_v10, %v310_v17 }
  0xb0   : > { %v377_v14 = vpop.f32.mrf.mxu1 }
  0xb1   : > { %v2341_v15 = vadd.f32 %v377_v14, %v308_v11 }
  0xb4   : > { %v403_v22 = vpop.f32.mrf.mxu2 }
  0xb5   : > { %v404_v62 = vadd.f32 %v403_v22, %v309_v30 }
  0xb6   : > { %v435_v18 = vpop.f32.mrf.mxu3 }
  0xb7   : > { %v2343_v19 = vadd.f32 %v435_v18, %v310_v17 }
  0xb8   : > { %v380_v20 = vpop.f32.mrf.mxu1 }
  0xb9   : > { %v2345_v21 = vadd.f32 %v380_v20, %v308_v11 }
  0xbe   : > { %v438_v23 = vpop.f32.mrf.mxu3 }
  0xbf   : > { %v2347_v25 = vadd.f32 %v438_v23, %v310_v17 }
  0xc0   : > { %v383_v27 = vpop.f32.mrf.mxu1 }
  0xc1   : > { %v2349_v28 = vadd.f32 %v383_v27, %v308_v11 }
  0xc2   : > { %v406_v31 = vpop.f32.mrf.mxu2 }
  0xc3   : > { %v2351_v32 = vadd.f32 %v406_v31, %v309_v30 }
  0xc6   : > { %v441_v33 = vpop.f32.mrf.mxu3 }
  0xc7   : > { %v2353_v34 = vadd.f32 %v441_v33, %v310_v17  ;;  %v461_v17 = vld [vmem:[#allocation3] sm:$0xff] }
  0xc8   : > { %v550_v40 = vpop.f32.mrf.mxu1 }
  0xc9   : > { %v613_v41 = vadd.f32 %v550_v40, %v346_v39 }
  0xcb   : > { %v1531_v44 = vmul.f32 -1.442695, %v613_v41 }
  0xcc   : > { %v409_v37 = vpop.f32.mrf.mxu2 }
  0xcd   : > { %v2357_v38 = vadd.f32 %v409_v37, %v309_v30  ;;  %1617 = vpow2.f32 %v1531_v44 }
  0xd0   : > { %v610_v46 = vpop.f32.mrf.mxu3 }
  0xd1   : > { %v616_v47 = vadd.f32 %v610_v46, %v433_v45  ;;  %v348_v45 = vpop.f32.mrf.mxu0 }
  0xd3   : > { %v1618_v48 = vpop.eup %1617  ;;  %v1533_v49 = vmul.f32 -1.442695, %v616_v47 }
  0xd4   : > { %v412_v42 = vpop.f32.mrf.mxu2  ;;  %v620_v50 = vadd.f32 1.0, %v1618_v48  ;;  %v349_v48 = vadd.f32 %v348_v45, %v2355_v35 }
  0xd5   : > { %v2360_v43 = vadd.f32 %v412_v42, %v309_v30  ;;  %1619 = vpow2.f32 %v1533_v49 }
  0xd6   : > { %1621 = vrcp.f32 %v620_v50  ;;  %vm626_vm1 = vweird.f32 %v620_v50  ;;  %v630_v4 = vand.u32 2147483647, %v620_v50  ;;  %v632_v5 = vand.u32 2147483648, %v620_v50 }
  0xd8   : > { %vm631_vm4 = vcmp.eq.f32.partialorder %v630_v4, 8.507059e+37  ;;  %v633_v26 = vor.u32 1.1754944e-38, %v632_v5  ;;  %v1172_v5 = vld [vmem:[#allocation6 + $0x160] sm:$0xff] }
  0xd9   : > { %v2371_v46 = vpop.f32.mrf.mxu0 }
  0xdb   : > { %v1620_v55 = vpop.eup %1619 }
  0xdc   : > { %v1622_v56 = vpop.eup %1621  ;;  %v659_v58 = vadd.f32 1.0, %v1620_v55 }
  0xdd   : > { %v622_v57 = vmul.f32 %v1622_v56, %v620_v50  ;;  %vm627_vm2 = vweird.f32 %v1622_v56 }
  0xde   : > { %v590_v63 = vpop.f32.mrf.mxu2  ;;  %vm628_vm3 = vmor %vm626_vm1, %vm627_vm2  ;;  %v671_v36 = vand.u32 2147483648, %v659_v58  ;;  %vm665_vm10 = vweird.f32 %v659_v58  ;;  %v669_v37 = vand.u32 2147483647, %v659_v58 }
  0xdf   : > { %v623_v61 = vsub.f32 1.0, %v622_v57  ;;  %v615_v1 = vadd.f32 %v590_v63, %v404_v62  ;;  %v1188_v62 = vld [vmem:[#allocation6 + $0x1e0] sm:$0xff] }
  0xe0   : > { %v672_v40 = vor.u32 1.1754944e-38, %v671_v36  ;;  %vm670_vm12 = vcmp.eq.f32.partialorder %v669_v37, 8.507059e+37  ;;  %v1184_v63 = vld [vmem:[#allocation6 + $0x1c0] sm:$0xff] }
  0xe1   : > { %v624_v0 = vmul.f32 %v1622_v56, %v623_v61  ;;  %v2373_v47 = vpop.f32.mrf.mxu0 }
  0xe3   : > { %v625_v12 = vadd.f32 %v1622_v56, %v624_v0  ;;  %v1180_v0 = vld [vmem:[#allocation6 + $0x1a0] sm:$0xff] }
  0xe5   : > { %v629_v6 = vsel %vm628_vm3, %v1622_v56, %v625_v12 }
  0xe6   : > { %v634_v14 = vsel %vm631_vm4, %v633_v26, %v629_v6 }
  0xe8   : > { %v570_v52 = vpop.f32.mrf.mxu1 }
  0xe9   : > { %v614_v53 = vadd.f32 %v570_v52, %v375_v51 }
  0xeb   : > { %v1532_v54 = vmul.f32 -1.442695, %v614_v53 }
  0xed   : > { %1623 = vpow2.f32 %v1532_v54 }
  0xee   : > { %1625 = vrcp.f32 %v659_v58 }
  0xf3   : > { %v1624_v59 = vpop.eup %1623 }
  0xf4   : > { %v639_v60 = vadd.f32 1.0, %v1624_v59  ;;  %v1626_v2 = vpop.eup %1625 }
  0xf5   : > { %v661_v16 = vmul.f32 %v1626_v2, %v659_v58  ;;  %vm666_vm9 = vweird.f32 %v1626_v2 }
  0xf6   : > { %1627 = vrcp.f32 %v639_v60  ;;  %v651_v29 = vand.u32 2147483648, %v639_v60  ;;  %v649_v8 = vand.u32 2147483647, %v639_v60  ;;  %vm645_vm6 = vweird.f32 %v639_v60  ;;  %vm667_vm11 = vmor %vm665_vm10, %vm666_vm9 }
  0xf7   : > { %1629 = vtanh.f32 %v615_v1  ;;  %v662_v9 = vsub.f32 1.0, %v661_v16 }
  0xf8   : > { %v652_v18 = vor.u32 1.1754944e-38, %v651_v29  ;;  %vm650_vm8 = vcmp.eq.f32.partialorder %v649_v8, 8.507059e+37 }
  0xf9   : > { %v663_v22 = vmul.f32 %v1626_v2, %v662_v9 }
  0xfb   : > { %v664_v33 = vadd.f32 %v1626_v2, %v663_v22 }
  0xfc   : > { %v1628_v3 = vpop.eup %1627 }
  0xfd   : > { %v641_v13 = vmul.f32 %v1628_v3, %v639_v60  ;;  %vm646_vm5 = vweird.f32 %v1628_v3  ;;  %v1630_v11 = vpop.eup %1629  ;;  %v668_v39 = vsel %vm667_vm11, %v1626_v2, %v664_v33  ;;  %v1176_v2 = vld [vmem:[#allocation6 + $0x180] sm:$0xff] }
  0xfe   : > { %vm647_vm7 = vmor %vm645_vm6, %vm646_vm5  ;;  %v676_v27 = vmul.f32 %v1630_v11, %v634_v14  ;;  %v673_v42 = vsel %vm670_vm12, %v672_v40, %v668_v39 }
  0xff   : > { %v642_v24 = vsub.f32 1.0, %v641_v13 }
 0x101   : > { %v643_v7 = vmul.f32 %v1628_v3, %v642_v24 }
 0x103   : > { %v644_v10 = vadd.f32 %v1628_v3, %v643_v7 }
 0x105   : > { %v648_v20 = vsel %vm647_vm7, %v1628_v3, %v644_v10 }
 0x106   : > { %v653_v23 = vsel %vm650_vm8, %v652_v18, %v648_v20 }
 0x107   : > { %v675_v30 = vmul.f32 %v653_v23, %v461_v17 }
 0x109   : > { %v2362_v31 = vadd.f32 %v676_v27, %v675_v30 }
 0x10b   : > { %1631 = vtanh.f32 %v2362_v31 }
 0x111   : > { %v1632_v41 = vpop.eup %1631 }
 0x112   : > { %v2365_v44 = vmul.f32 %v1632_v41, %v673_v42 }
 0x114   : > { %768 = vmatmul.f32.vlgmr.msrb.gmra.mxu0 %v2365_v44  ;;  %788 = vmatmul.f32.vlgmr.msrb.gmra.mxu1 %v2365_v44 }
 0x115   : > { %808 = vmatmul.f32.vlgmr.msra.gmra.mxu2 %v2365_v44  ;;  %828 = vmatmul.f32.vlgmr.msra.gmra.mxu3 %v2365_v44 }
 0x116   : > { %1192 = vmatpush.msrb.mxu0 %v1188_v62  ;;  %v1191_v62 = vld [vmem:[#allocation6 + $0x1f8] sm:$0xff] }
 0x117   : > { %1252 = vmatpush.msra.mxu3 %v1191_v62  ;;  %v1142_v62 = vld [vmem:[#allocation6 + $0x70] sm:$0xff] }
 0x118   : > { %1193 = vmatpush.msrb.mxu0 %v1184_v63  ;;  %v1140_v63 = vld [vmem:[#allocation6 + $0x60] sm:$0xff] }
 0x11a   : > { %1194 = vmatpush.msrb.mxu0 %v1180_v0  ;;  %v1185_v0 = vld [vmem:[#allocation6 + $0x1c8] sm:$0xff] }
 0x11c   : > { %1195 = vmatpush.msrb.mxu0 %v1176_v2  ;;  %v1136_v2 = vld [vmem:[#allocation6 + $0x40] sm:$0xff] }
 0x11e   : > { %1196 = vmatpush.msrb.mxu0 %v1172_v5  ;;  %v1132_v5 = vld [vmem:[#allocation6 + $0x20] sm:$0xff] }
 0x191   : > { %v769_v49 = vpop.f32.mrf.mxu0  ;;  %v789_v50 = vpop.f32.mrf.mxu1 }
 0x192   : > { %v832_v51 = vadd.f32 %v769_v49, %v349_v48  ;;  %v833_v52 = vadd.f32 %v789_v50, %v2341_v15 }
 0x194   : > { %v1534_v53 = vmul.f32 -1.442695, %v832_v51  ;;  %v1535_v54 = vmul.f32 -1.442695, %v833_v52 }
 0x196   : > { %1633 = vpow2.f32 %v1534_v53 }
 0x197   : > { %1635 = vpow2.f32 %v1535_v54  ;;  %v1164_v54 = vld [vmem:[#allocation6 + $0x120] sm:$0xff] }
 0x198   : > { %v829_v55 = vpop.f32.mrf.mxu3  ;;  %v809_v15 = vpop.f32.mrf.mxu2 }
 0x199   : > { %v835_v56 = vadd.f32 %v829_v55, %v2343_v19  ;;  %v834_v19 = vadd.f32 %v809_v15, %v2351_v32  ;;  %v1160_v55 = vld [vmem:[#allocation6 + $0x100] sm:$0xff]  ;;  %v1186_v15 = vld [vmem:[#allocation6 + $0x1d0] sm:$0xff] }
 0x19b   : > { %v1536_v57 = vmul.f32 -1.442695, %v835_v56  ;;  %v1156_v56 = vld [vmem:[#allocation6 + $0xe0] sm:$0xff] }
 0x19c   : > { %v1634_v58 = vpop.eup %1633 }
 0x19d   : > { %v1636_v59 = vpop.eup %1635  ;;  %v839_v60 = vadd.f32 1.0, %v1634_v58  ;;  %1637 = vpow2.f32 %v1536_v57  ;;  %v1152_v57 = vld [vmem:[#allocation6 + $0xc0] sm:$0xff] }
 0x19e   : > { %v858_v61 = vadd.f32 1.0, %v1636_v59  ;;  %v1148_v58 = vld [vmem:[#allocation6 + $0xa0] sm:$0xff] }
 0x19f   : > { %1639 = vrcp.f32 %v839_v60  ;;  %v851_v29 = vand.u32 2147483648, %v839_v60  ;;  %v849_v8 = vand.u32 2147483647, %v839_v60  ;;  %vm845_vm15 = vweird.f32 %v839_v60  ;;  %v1144_v59 = vld [vmem:[#allocation6 + $0x80] sm:$0xff] }
 0x1a0   : > { %1641 = vrcp.f32 %v858_v61  ;;  %v870_v6 = vand.u32 2147483648, %v858_v61  ;;  %v868_v10 = vand.u32 2147483647, %v858_v61  ;;  %vm864_vm0 = vweird.f32 %v858_v61 }
 0x1a1   : > { %v852_v14 = vor.u32 1.1754944e-38, %v851_v29  ;;  %vm850_vm3 = vcmp.eq.f32.partialorder %v849_v8, 8.507059e+37  ;;  %v1174_v29 = vld [vmem:[#allocation6 + $0x170] sm:$0xff]  ;;  %v1169_v8 = vld [vmem:[#allocation6 + $0x148] sm:$0xff] }
 0x1a2   : > { %v871_v20 = vor.u32 1.1754944e-38, %v870_v6  ;;  %vm869_vm4 = vcmp.eq.f32.partialorder %v868_v10, 8.507059e+37  ;;  %v1175_v6 = vld [vmem:[#allocation6 + $0x178] sm:$0xff] }
 0x1a3   : > { %v1638_v1 = vpop.eup %1637  ;;  %v1171_v10 = vld [vmem:[#allocation6 + $0x158] sm:$0xff] }
 0x1a4   : > { %v878_v3 = vadd.f32 1.0, %v1638_v1  ;;  %v1187_v1 = vld [vmem:[#allocation6 + $0x1d8] sm:$0xff] }
 0x1a5   : > { %v1640_v4 = vpop.eup %1639  ;;  %1253 = vmatpush.msra.mxu3 %v1187_v1 }
 0x1a6   : > { %v1642_v12 = vpop.eup %1641  ;;  %v841_v13 = vmul.f32 %v1640_v4, %v839_v60  ;;  %1643 = vrcp.f32 %v878_v3  ;;  %vm846_vm13 = vweird.f32 %v1640_v4  ;;  %v890_v45 = vand.u32 2147483648, %v878_v3  ;;  %v1189_v60 = vld [vmem:[#allocation6 + $0x1e8] sm:$0xff] }
 0x1a7   : > { %v860_v16 = vmul.f32 %v1642_v12, %v858_v61  ;;  %1645 = vtanh.f32 %v834_v19  ;;  %vm865_vm14 = vweird.f32 %v1642_v12  ;;  %vm847_vm1 = vmor %vm845_vm15, %vm846_vm13  ;;  %vm884_vm6 = vweird.f32 %v878_v3  ;;  %v1190_v61 = vld [vmem:[#allocation6 + $0x1f0] sm:$0xff]  ;;  %1212 = vmatpush.msrb.mxu1 %v1189_v60  ;;  %v1183_v19 = vld [vmem:[#allocation6 + $0x1b8] sm:$0xff] }
 0x1a8   : > { %v842_v24 = vsub.f32 1.0, %v841_v13  ;;  %vm866_vm2 = vmor %vm864_vm0, %vm865_vm14  ;;  %v888_v48 = vand.u32 2147483647, %v878_v3  ;;  %v891_v50 = vor.u32 1.1754944e-38, %v890_v45  ;;  %1232 = vmatpush.msra.mxu2 %v1190_v61  ;;  %1254 = vmatpush.msra.mxu3 %v1183_v19  ;;  %v1178_v13 = vld [vmem:[#allocation6 + $0x190] sm:$0xff]  ;;  %v1153_v45 = vld [vmem:[#allocation6 + $0xc8] sm:$0xff] }
 0x1a9   : > { %v861_v26 = vsub.f32 1.0, %v860_v16  ;;  %1213 = vmatpush.msrb.mxu1 %v1185_v0  ;;  %v1179_v16 = vld [vmem:[#allocation6 + $0x198] sm:$0xff]  ;;  %v1141_v61 = vld [vmem:[#allocation6 + $0x68] sm:$0xff] }
 0x1aa   : > { %v843_v7 = vmul.f32 %v1640_v4, %v842_v24  ;;  %vm889_vm8 = vcmp.eq.f32.partialorder %v888_v48, 8.507059e+37  ;;  %1233 = vmatpush.msra.mxu2 %v1186_v15  ;;  %v1128_v24 = vld [vmem:[#allocation6] sm:$0xff]  ;;  %1255 = vmatpush.msra.mxu3 %v1179_v16  ;;  %v1154_v48 = vld [vmem:[#allocation6 + $0xd0] sm:$0xff]  ;;  %v1147_v60 = vld [vmem:[#allocation6 + $0x98] sm:$0xff] }
 0x1ab   : > { %v862_v9 = vmul.f32 %v1642_v12, %v861_v26  ;;  %v1173_v26 = vld [vmem:[#allocation6 + $0x168] sm:$0xff]  ;;  %v1354_v0 = vld [vmem:[#allocation9 + $0x38] sm:$0xff] }
 0x1ac   : > { %v1644_v11 = vpop.eup %1643  ;;  %v844_v32 = vadd.f32 %v1640_v4, %v843_v7  ;;  %v1362_v7 = vld [vmem:[#allocation9 + $0x78] sm:$0xff]  ;;  %1256 = vmatpush.msra.mxu3 %v1175_v6  ;;  %v1137_v15 = vld [vmem:[#allocation6 + $0x48] sm:$0xff] }
 0x1ad   : > { %v863_v17 = vadd.f32 %v1642_v12, %v862_v9  ;;  %v880_v18 = vmul.f32 %v1644_v11, %v878_v3  ;;  %v1646_v23 = vpop.eup %1645  ;;  %vm885_vm5 = vweird.f32 %v1644_v11  ;;  %v1181_v3 = vld [vmem:[#allocation6 + $0x1a8] sm:$0xff]  ;;  %v1170_v9 = vld [vmem:[#allocation6 + $0x150] sm:$0xff] }
 0x1ae   : > { %v848_v22 = vsel %vm847_vm1, %v1640_v4, %v844_v32  ;;  %vm886_vm7 = vmor %vm884_vm6, %vm885_vm5  ;;  %v1182_v4 = vld [vmem:[#allocation6 + $0x1b0] sm:$0xff]  ;;  %1214 = vmatpush.msrb.mxu1 %v1181_v3  ;;  %1257 = vmatpush.msra.mxu3 %v1171_v10  ;;  %v1165_v32 = vld [vmem:[#allocation6 + $0x128] sm:$0xff] }
 0x1af   : > { %v853_v27 = vsel %vm850_vm3, %v852_v14, %v848_v22  ;;  %v867_v30 = vsel %vm866_vm2, %v1642_v12, %v863_v17  ;;  %v881_v33 = vsub.f32 1.0, %v880_v18  ;;  %1234 = vmatpush.msra.mxu2 %v1182_v4  ;;  %v1177_v12 = vld [vmem:[#allocation6 + $0x188] sm:$0xff]  ;;  %v1166_v14 = vld [vmem:[#allocation6 + $0x130] sm:$0xff]  ;;  %v1167_v17 = vld [vmem:[#allocation6 + $0x138] sm:$0xff] }
 0x1b0   : > { %v872_v36 = vsel %vm869_vm4, %v871_v20, %v867_v30  ;;  %v895_v37 = vmul.f32 %v1646_v23, %v853_v27  ;;  %1215 = vmatpush.msrb.mxu1 %v1177_v12  ;;  %v1360_v18 = vld [vmem:[#allocation9 + $0x68] sm:$0xff]  ;;  %1258 = vmatpush.msra.mxu3 %v1167_v17  ;;  %v1162_v22 = vld [vmem:[#allocation6 + $0x110] sm:$0xff]  ;;  %v1163_v23 = vld [vmem:[#allocation6 + $0x118] sm:$0xff] }
 0x1b1   : > { %v894_v39 = vmul.f32 %v872_v36, %v2362_v31  ;;  %v882_v40 = vmul.f32 %v1644_v11, %v881_v33  ;;  %v1168_v31 = vld [vmem:[#allocation6 + $0x140] sm:$0xff]  ;;  %1235 = vmatpush.msra.mxu2 %v1178_v13  ;;  %v1161_v20 = vld [vmem:[#allocation6 + $0x108] sm:$0xff]  ;;  %v1158_v33 = vld [vmem:[#allocation6 + $0xf0] sm:$0xff] }
 0x1b2   : > { %1197 = vmatpush.msrb.mxu0 %v1168_v31  ;;  %1216 = vmatpush.msrb.mxu1 %v1173_v26  ;;  %v1359_v27 = vld [vmem:[#allocation9 + $0x60] sm:$0xff]  ;;  %v1157_v30 = vld [vmem:[#allocation6 + $0xe8] sm:$0xff]  ;;  %v1159_v36 = vld [vmem:[#allocation6 + $0xf8] sm:$0xff] }
 0x1b3   : > { %v2380_v41 = vadd.f32 %v895_v37, %v894_v39  ;;  %v883_v42 = vadd.f32 %v1644_v11, %v882_v40  ;;  %1236 = vmatpush.msra.mxu2 %v1174_v29  ;;  %1259 = vmatpush.msra.mxu3 %v1163_v23  ;;  %v352_v37 = vadd.f32 %v2371_v46, %v2355_v35  ;;  %v1358_v39 = vld [vmem:[#allocation9 + $0x58] sm:$0xff]  ;;  %v1149_v31 = vld [vmem:[#allocation6 + $0xa8] sm:$0xff]  ;;  %v1150_v46 = vld [vmem:[#allocation6 + $0xb0] sm:$0xff] }
 0x1b4   : > { %1198 = vmatpush.msrb.mxu0 %v1164_v54  ;;  %1217 = vmatpush.msrb.mxu1 %v1169_v8  ;;  %v1151_v54 = vld [vmem:[#allocation6 + $0xb8] sm:$0xff]  ;;  %v1353_v4 = vld [vmem:[#allocation9 + $0x30] sm:$0xff]  ;;  %v1352_v16 = vld [vmem:[#allocation9 + $0x28] sm:$0xff] }
 0x1b5   : > { %1647 = vtanh.f32 %v2380_v41  ;;  %v887_v49 = vsel %vm886_vm7, %v1644_v11, %v883_v42  ;;  %1237 = vmatpush.msra.mxu2 %v1170_v9  ;;  %v1361_v11 = vld [vmem:[#allocation9 + $0x70] sm:$0xff]  ;;  %1260 = vmatpush.msra.mxu3 %v1159_v36  ;;  %v1139_v3 = vld [vmem:[#allocation6 + $0x58] sm:$0xff]  ;;  %v1129_v26 = vld [vmem:[#allocation6 + $0x8] sm:$0xff] }
 0x1b6   : > { %v892_v52 = vsel %vm889_vm8, %v891_v50, %v887_v49  ;;  %1199 = vmatpush.msrb.mxu0 %v1160_v55  ;;  %1218 = vmatpush.msrb.mxu1 %v1165_v32  ;;  %v1155_v49 = vld [vmem:[#allocation6 + $0xd8] sm:$0xff]  ;;  %v1134_v12 = vld [vmem:[#allocation6 + $0x30] sm:$0xff]  ;;  %v1351_v8 = vld [vmem:[#allocation9 + $0x20] sm:$0xff] }
 0x1b7   : > { %1238 = vmatpush.msra.mxu2 %v1166_v14  ;;  %1261 = vmatpush.msra.mxu3 %v1155_v49  ;;  %v1135_v13 = vld [vmem:[#allocation6 + $0x38] sm:$0xff]  ;;  %v1130_v29 = vld [vmem:[#allocation6 + $0x10] sm:$0xff]  ;;  %v1348_v17 = vld [vmem:[#allocation9 + $0x8] sm:$0xff] }
 0x1b8   : > { %1200 = vmatpush.msrb.mxu0 %v1156_v56  ;;  %1219 = vmatpush.msrb.mxu1 %v1161_v20  ;;  %v1349_v32 = vld [vmem:[#allocation9 + $0x10] sm:$0xff] }
 0x1b9   : > { %1239 = vmatpush.msra.mxu2 %v1162_v22  ;;  %1262 = vmatpush.msra.mxu3 %v1151_v54  ;;  %v1347_v22 = vld [vmem:[#allocation9] sm:$0xff] }
 0x1ba   : > { %1201 = vmatpush.msrb.mxu0 %v1152_v57  ;;  %1220 = vmatpush.msrb.mxu1 %v1157_v30  ;;  %v1356_v57 = vld [vmem:[#allocation9 + $0x48] sm:$0xff] }
 0x1bb   : > { %v1648_v51 = vpop.eup %1647  ;;  %1240 = vmatpush.msra.mxu2 %v1158_v33  ;;  %1263 = vmatpush.msra.mxu3 %v1147_v60 }
 0x1bc   : > { %v2383_v53 = vmul.f32 %v1648_v51, %v892_v52  ;;  %1202 = vmatpush.msrb.mxu0 %v1148_v58  ;;  %1221 = vmatpush.msrb.mxu1 %v1153_v45  ;;  %v1357_v52 = vld [vmem:[#allocation9 + $0x50] sm:$0xff]  ;;  %v1145_v58 = vld [vmem:[#allocation6 + $0x88] sm:$0xff] }
 0x1bd   : > { %1241 = vmatpush.msra.mxu2 %v1154_v48 }
 0x1be   : > { %988 = vmatmul.f32.vlgmr.msra.gmra.mxu0 %v2383_v53  ;;  %1008 = vmatmul.f32.vlgmr.msra.gmra.mxu1 %v2383_v53 }
 0x1bf   : > { %1028 = vmatmul.f32.vlgmr.msrb.gmra.mxu2 %v2383_v53  ;;  %1048 = vmatmul.f32.vlgmr.msrb.gmra.mxu3 %v2383_v53 }
 0x1c0   : > { %1203 = vmatpush.msrb.mxu0 %v1144_v59  ;;  %1222 = vmatpush.msrb.mxu1 %v1149_v31  ;;  %v1146_v59 = vld [vmem:[#allocation6 + $0x90] sm:$0xff] }
 0x1c1   : > { %1242 = vmatpush.msra.mxu2 %v1150_v46 }
 0x1c2   : > { %1204 = vmatpush.msrb.mxu0 %v1140_v63  ;;  %1223 = vmatpush.msrb.mxu1 %v1145_v58  ;;  %v1143_v63 = vld [vmem:[#allocation6 + $0x78] sm:$0xff] }
 0x1c3   : > { %1243 = vmatpush.msra.mxu2 %v1146_v59  ;;  %1264 = vmatpush.msra.mxu3 %v1143_v63 }
 0x1c4   : > { %1205 = vmatpush.msrb.mxu0 %v1136_v2  ;;  %1224 = vmatpush.msrb.mxu1 %v1141_v61  ;;  %v1138_v2 = vld [vmem:[#allocation6 + $0x50] sm:$0xff] }
 0x1c5   : > { %1244 = vmatpush.msra.mxu2 %v1142_v62  ;;  %1265 = vmatpush.msra.mxu3 %v1139_v3 }
 0x1c6   : > { %1206 = vmatpush.msrb.mxu0 %v1132_v5  ;;  %v1133_v5 = vld [vmem:[#allocation6 + $0x28] sm:$0xff]  ;;  %1225 = vmatpush.msrb.mxu1 %v1137_v15 }
 0x1c7   : > { %1245 = vmatpush.msra.mxu2 %v1138_v2  ;;  %1266 = vmatpush.msra.mxu3 %v1135_v13 }
 0x1c8   : > { %1207 = vmatpush.msrb.mxu0 %v1128_v24  ;;  %1226 = vmatpush.msrb.mxu1 %v1133_v5 }
 0x1c9   : > { %1246 = vmatpush.msra.mxu2 %v1134_v12 }
 0x1ca   : > { %1367 = vmatpush.msra.mxu0 %v1362_v7  ;;  %v1131_v7 = vld [vmem:[#allocation6 + $0x18] sm:$0xff]  ;;  %1227 = vmatpush.msrb.mxu1 %v1129_v26 }
 0x1cb   : > { %1247 = vmatpush.msra.mxu2 %v1130_v29  ;;  %1267 = vmatpush.msra.mxu3 %v1131_v7 }
 0x1cc   : > { %1368 = vmatpush.msra.mxu0 %v1361_v11  ;;  %v1350_v11 = vld [vmem:[#allocation9 + $0x18] sm:$0xff] }
 0x1ce   : > { %1369 = vmatpush.msra.mxu0 %v1360_v18 }
 0x1d0   : > { %1370 = vmatpush.msra.mxu0 %v1359_v27 }
 0x1d2   : > { %1371 = vmatpush.msra.mxu0 %v1358_v39 }
 0x1d4   : > { %1372 = vmatpush.msra.mxu0 %v1357_v52 }
 0x1d6   : > { %1373 = vmatpush.msra.mxu0 %v1356_v57 }
 0x23b   : > { %v989_v40 = vpop.f32.mrf.mxu0  ;;  %v1009_v42 = vpop.f32.mrf.mxu1 }
 0x23c   : > { %v1052_v50 = vadd.f32 %v989_v40, %v352_v37  ;;  %v1053_v51 = vadd.f32 %v1009_v42, %v2345_v21  ;;  %v1355_v21 = vld [vmem:[#allocation9 + $0x40] sm:$0xff] }
 0x23d   : > { %1374 = vmatpush.msra.mxu0 %v1355_v21 }
 0x23e   : > { %v1537_v55 = vmul.f32 -1.442695, %v1052_v50  ;;  %v1538_v56 = vmul.f32 -1.442695, %v1053_v51 }
 0x23f   : > { %1375 = vmatpush.msra.mxu0 %v1354_v0 }
 0x240   : > { %1649 = vpow2.f32 %v1537_v55 }
 0x241   : > { %1651 = vpow2.f32 %v1538_v56  ;;  %1376 = vmatpush.msra.mxu0 %v1353_v4 }
 0x242   : > { %v1049_v1 = vpop.f32.mrf.mxu3  ;;  %v1029_v14 = vpop.f32.mrf.mxu2 }
 0x243   : > { %v1055_v19 = vadd.f32 %v1049_v1, %v2347_v25  ;;  %1377 = vmatpush.msra.mxu0 %v1352_v16  ;;  %v1054_v27 = vadd.f32 %v1029_v14, %v2357_v38 }
 0x245   : > { %v1539_v24 = vmul.f32 -1.442695, %v1055_v19  ;;  %1378 = vmatpush.msra.mxu0 %v1351_v8 }
 0x246   : > { %v1650_v6 = vpop.eup %1649 }
 0x247   : > { %v1652_v9 = vpop.eup %1651  ;;  %v1059_v25 = vadd.f32 1.0, %v1650_v6  ;;  %1653 = vpow2.f32 %v1539_v24  ;;  %1379 = vmatpush.msra.mxu0 %v1350_v11  ;;  %v2406_v6 = vld [vmem:[%s2458_s5] ss:$0 sm:$0xff] }
 0x248   : > { %v1078_v10 = vadd.f32 1.0, %v1652_v9 }
 0x249   : > { %1655 = vrcp.f32 %v1059_v25  ;;  %1380 = vmatpush.msra.mxu0 %v1349_v32  ;;  %v1071_v40 = vand.u32 2147483648, %v1059_v25  ;;  %v1069_v48 = vand.u32 2147483647, %v1059_v25  ;;  %vm1065_vm11 = vweird.f32 %v1059_v25 }
 0x24a   : > { %1657 = vrcp.f32 %v1078_v10  ;;  %v1090_v42 = vand.u32 2147483648, %v1078_v10  ;;  %v1088_v50 = vand.u32 2147483647, %v1078_v10  ;;  %vm1084_vm12 = vweird.f32 %v1078_v10 }
 0x24b   : > { %1381 = vmatpush.msra.mxu0 %v1348_v17  ;;  %v1072_v38 = vor.u32 1.1754944e-38, %v1071_v40  ;;  %vm1070_vm15 = vcmp.eq.f32.partialorder %v1069_v48, 8.507059e+37 }
 0x24c   : > { %v1091_v54 = vor.u32 1.1754944e-38, %v1090_v42  ;;  %vm1089_vm0 = vcmp.eq.f32.partialorder %v1088_v50, 8.507059e+37 }
 0x24d   : > { %v1654_v18 = vpop.eup %1653  ;;  %1382 = vmatpush.msra.mxu0 %v1347_v22 }
 0x24e   : > { %v1098_v20 = vadd.f32 1.0, %v1654_v18 }
 0x24f   : > { %v1656_v23 = vpop.eup %1655 }
 0x250   : > { %v1658_v30 = vpop.eup %1657  ;;  %v1061_v33 = vmul.f32 %v1656_v23, %v1059_v25  ;;  %1659 = vrcp.f32 %v1098_v20  ;;  %vm1066_vm9 = vweird.f32 %v1656_v23  ;;  %v1110_v15 = vand.u32 2147483648, %v1098_v20 }
 0x251   : > { %v1080_v36 = vmul.f32 %v1658_v30, %v1078_v10  ;;  %1661 = vtanh.f32 %v1054_v27  ;;  %vm1085_vm10 = vweird.f32 %v1658_v30  ;;  %vm1067_vm13 = vmor %vm1065_vm11, %vm1066_vm9  ;;  %vm1104_vm2 = vweird.f32 %v1098_v20 }
 0x252   : > { %v1062_v37 = vsub.f32 1.0, %v1061_v33  ;;  %vm1086_vm14 = vmor %vm1084_vm12, %vm1085_vm10  ;;  %v1108_v1 = vand.u32 2147483647, %v1098_v20  ;;  %v1111_v3 = vor.u32 1.1754944e-38, %v1110_v15 }
 0x253   : > { %v1081_v39 = vsub.f32 1.0, %v1080_v36 }
 0x254   : > { %v1063_v45 = vmul.f32 %v1656_v23, %v1062_v37  ;;  %vm1109_vm4 = vcmp.eq.f32.partialorder %v1108_v1, 8.507059e+37 }
 0x255   : > { %v1082_v49 = vmul.f32 %v1658_v30, %v1081_v39 }
 0x256   : > { %v1660_v51 = vpop.eup %1659  ;;  %v1064_v52 = vadd.f32 %v1656_v23, %v1063_v45 }
 0x257   : > { %v1083_v31 = vadd.f32 %v1658_v30, %v1082_v49  ;;  %v1100_v46 = vmul.f32 %v1660_v51, %v1098_v20  ;;  %v1662_v56 = vpop.eup %1661  ;;  %vm1105_vm1 = vweird.f32 %v1660_v51 }
 0x258   : > { %v1068_v55 = vsel %vm1067_vm13, %v1656_v23, %v1064_v52  ;;  %vm1106_vm3 = vmor %vm1104_vm2, %vm1105_vm1 }
 0x259   : > { %v1073_v57 = vsel %vm1070_vm15, %v1072_v38, %v1068_v55  ;;  %v1087_v58 = vsel %vm1086_vm14, %v1658_v30, %v1083_v31  ;;  %v1101_v59 = vsub.f32 1.0, %v1100_v46 }
 0x25a   : > { %v1092_v60 = vsel %vm1089_vm0, %v1091_v54, %v1087_v58  ;;  %v1115_v21 = vmul.f32 %v1662_v56, %v1073_v57 }
 0x25b   : > { %v1114_v61 = vmul.f32 %v1092_v60, %v2380_v41  ;;  %v1102_v62 = vmul.f32 %v1660_v51, %v1101_v59  ;;  %v355_v41 = vadd.f32 %v2373_v47, %v2355_v35 }
 0x25d   : > { %v2395_v63 = vadd.f32 %v1115_v21, %v1114_v61  ;;  %v1103_v0 = vadd.f32 %v1660_v51, %v1102_v62 }
 0x25f   : > { %1663 = vtanh.f32 %v2395_v63  ;;  %v1107_v2 = vsel %vm1106_vm3, %v1660_v51, %v1103_v0 }
 0x260   : > { %v1112_v19 = vsel %vm1109_vm4, %v1111_v3, %v1107_v2 }
 0x265   : > { %v1664_v4 = vpop.eup %1663 }
 0x266   : > { %v1118_v5 = vmul.f32 %v1664_v4, %v1112_v19 }
 0x268   : > { %1208 = vmatmul.f32.vlgmr.msrb.gmra.mxu0 %v1118_v5  ;;  %1228 = vmatmul.f32.vlgmr.msrb.gmra.mxu1 %v1118_v5 }
 0x269   : > { %1248 = vmatmul.f32.vlgmr.msra.gmra.mxu2 %v1118_v5  ;;  %1268 = vmatmul.f32.vlgmr.msra.gmra.mxu3 %v1118_v5 }
 0x270   : > { %1383 = vmatmul.f32.vlgmr.msra.gmra.mxu0 %v2365_v44 }
 0x278   : > { %1386 = vmatmul.f32.gmra.mxu0 %v2383_v53 }
 0x280   : > { %1389 = vmatmul.f32.gmra.mxu0 %v1118_v5 }
 0x2e5   : > { %v1209_v12 = vpop.f32.mrf.mxu0  ;;  %v1229_v13 = vpop.f32.mrf.mxu1 }
 0x2e6   : > { %v1272_v16 = vadd.f32 %v1209_v12, %v355_v41  ;;  %v1273_v24 = vadd.f32 %v1229_v13, %v2349_v28 }
 0x2e8   : > { %v1540_v26 = vmul.f32 -1.442695, %v1272_v16  ;;  %v1541_v29 = vmul.f32 -1.442695, %v1273_v24 }
 0x2ea   : > { %1665 = vpow2.f32 %v1540_v26 }
 0x2eb   : > { %1667 = vpow2.f32 %v1541_v29 }
 0x2ec   : > { %v1269_v44 = vpop.f32.mrf.mxu3  ;;  %v1249_v11 = vpop.f32.mrf.mxu2 }
 0x2ed   : > { %v1275_v53 = vadd.f32 %v1269_v44, %v2353_v34  ;;  %v1384_v7 = vpop.f32.mrf.mxu0  ;;  %v1274_v18 = vadd.f32 %v1249_v11, %v2360_v43 }
 0x2ee   : > { %v1385_v35 = vadd.f32 %v2406_v6, %v1384_v7 }
 0x2ef   : > { %v1542_v47 = vmul.f32 -1.442695, %v1275_v53 }
 0x2f0   : > { %v1666_v8 = vpop.eup %1665  ;;  %1396 = vst [vmem:[%s1940_s16] sm:$0xff] %v1385_v35 }
 0x2f1   : > { %v1668_v28 = vpop.eup %1667  ;;  %v1279_v9 = vadd.f32 1.0, %v1666_v8  ;;  %1669 = vpow2.f32 %v1542_v47 }
 0x2f2   : > { %v1298_v25 = vadd.f32 1.0, %v1668_v28 }
 0x2f3   : > { %1671 = vrcp.f32 %v1279_v9  ;;  %v1289_v33 = vand.u32 2147483647, %v1279_v9  ;;  %v1291_v36 = vand.u32 2147483648, %v1279_v9  ;;  %vm1285_vm7 = vweird.f32 %v1279_v9 }
 0x2f4   : > { %1673 = vrcp.f32 %v1298_v25  ;;  %v1310_v39 = vand.u32 2147483648, %v1298_v25  ;;  %v1308_v48 = vand.u32 2147483647, %v1298_v25  ;;  %vm1304_vm8 = vweird.f32 %v1298_v25 }
 0x2f5   : > { %v1387_v10 = vpop.f32.mrf.mxu0  ;;  %v1292_v50 = vor.u32 1.1754944e-38, %v1291_v36  ;;  %vm1290_vm11 = vcmp.eq.f32.partialorder %v1289_v33, 8.507059e+37 }
 0x2f6   : > { %v1388_v32 = vadd.f32 %v2406_v6, %v1387_v10  ;;  %v1311_v38 = vor.u32 1.1754944e-38, %v1310_v39  ;;  %vm1309_vm12 = vcmp.eq.f32.partialorder %v1308_v48, 8.507059e+37 }
 0x2f7   : > { %v1670_v14 = vpop.eup %1669 }
 0x2f8   : > { %v1318_v17 = vadd.f32 1.0, %v1670_v14  ;;  %1397 = vst [vmem:[%s1940_s16 + $0x8] sm:$0xff] %v1388_v32 }
 0x2f9   : > { %v1672_v34 = vpop.eup %1671 }
 0x2fa   : > { %v1674_v20 = vpop.eup %1673  ;;  %v1281_v22 = vmul.f32 %v1672_v34, %v1279_v9  ;;  %1675 = vrcp.f32 %v1318_v17  ;;  %vm1286_vm5 = vweird.f32 %v1672_v34  ;;  %v1330_v62 = vand.u32 2147483648, %v1318_v17 }
 0x2fb   : > { %v1300_v23 = vmul.f32 %v1674_v20, %v1298_v25  ;;  %1677 = vtanh.f32 %v1274_v18  ;;  %vm1305_vm6 = vweird.f32 %v1674_v20  ;;  %vm1287_vm9 = vmor %vm1285_vm7, %vm1286_vm5  ;;  %vm1324_vm14 = vweird.f32 %v1318_v17 }
 0x2fc   : > { %v1282_v27 = vsub.f32 1.0, %v1281_v22  ;;  %vm1306_vm10 = vmor %vm1304_vm8, %vm1305_vm6  ;;  %v1328_v0 = vand.u32 2147483647, %v1318_v17  ;;  %v1331_v1 = vor.u32 1.1754944e-38, %v1330_v62 }
 0x2fd   : > { %v1301_v30 = vsub.f32 1.0, %v1300_v23  ;;  %v1390_v37 = vpop.f32.mrf.mxu0 }
 0x2fe   : > { %v1283_v40 = vmul.f32 %v1672_v34, %v1282_v27  ;;  %v1391_v42 = vadd.f32 %v2406_v6, %v1390_v37  ;;  %vm1329_vm0 = vcmp.eq.f32.partialorder %v1328_v0, 8.507059e+37 }
 0x2ff   : > { %v1302_v45 = vmul.f32 %v1674_v20, %v1301_v30 }
 0x300   : > { %v1676_v43 = vpop.eup %1675  ;;  %v1284_v49 = vadd.f32 %v1672_v34, %v1283_v40  ;;  %1398 = vst [vmem:[%s1940_s16 + $0x10] sm:$0xff] %v1391_v42 }
 0x301   : > { %v1303_v51 = vadd.f32 %v1674_v20, %v1302_v45  ;;  %v1320_v52 = vmul.f32 %v1676_v43, %v1318_v17  ;;  %v1678_v46 = vpop.eup %1677  ;;  %vm1325_vm13 = vweird.f32 %v1676_v43 }
 0x302   : > { %v1288_v31 = vsel %vm1287_vm9, %v1672_v34, %v1284_v49  ;;  %vm1326_vm15 = vmor %vm1324_vm14, %vm1325_vm13 }
 0x303   : > { %v1293_v54 = vsel %vm1290_vm11, %v1292_v50, %v1288_v31  ;;  %v1307_v55 = vsel %vm1306_vm10, %v1674_v20, %v1303_v51  ;;  %v1321_v56 = vsub.f32 1.0, %v1320_v52 }
 0x304   : > { %v1312_v57 = vsel %vm1309_vm12, %v1311_v38, %v1307_v55  ;;  %v1335_v58 = vmul.f32 %v1678_v46, %v1293_v54 }
 0x305   : > { %v1334_v59 = vmul.f32 %v1312_v57, %v2395_v63  ;;  %v1322_v60 = vmul.f32 %v1676_v43, %v1321_v56 }
 0x307   : > { %v1336_v21 = vadd.f32 %v1335_v58, %v1334_v59  ;;  %v1323_v61 = vadd.f32 %v1676_v43, %v1322_v60 }
 0x309   : > { %1342 = vst [vmem:[#allocation3] sm:$0xff] %v1336_v21  ;;  %1679 = vtanh.f32 %v1336_v21  ;;  %v1327_v15 = vsel %vm1326_vm15, %v1676_v43, %v1323_v61 }
 0x30a   : > { %v1332_v3 = vsel %vm1329_vm0, %v1331_v1, %v1327_v15 }
 0x30f   : > { %v1680_v2 = vpop.eup %1679 }
 0x310   : > { %v1338_v63 = vmul.f32 %v1680_v2, %v1332_v3 }
 0x312   : > { %1341 = vst [vmem:[#allocation2] sm:$0xff] %v1338_v63  ;;  %1392 = vmatmul.f32.gmra.mxu0 %v1338_v63 }
 0x38f   : > { %v1393_v4 = vpop.f32.mrf.mxu0 }
 0x390   : > { %v1394_v19 = vadd.f32 %v2406_v6, %v1393_v4 }
 0x392   : > { %1399 = vst [vmem:[%s1940_s16 + $0x18] sm:$0xff] %v1394_v19 }
 0x393   : > { %1768 = shalt.err (!%p1765_p9)
}
 0x394   : > { %s1820_s10 = smov 128   ;;  %s1821_s16 = smov 8  }
 0x395   : > { %1557 = dma.vmem_to_hbm [thread:$0]  (%p1895_p5), %s1414_s14, 512, %s1416_s17, %s1401_s18, %s1820_s10, %s1820_s10, %s1821_s16  }
 0x396 PF: > { %p1574_p10 = scmp.ge.s32.totalorder %s1811_s24, 2  ;;  %s1430_s11 = sand.u32 1, %s1799_s21  }
 0x397   : > { %s1431_s9 = scalar_lea.sflag [#allocation8], %s1430_s11 }
 0x398   : > { %p1567_p11 = pnand %p1574_p10, %p1899_p6 }
 0x39a   : > { %p1568_p12 = pneg %p1567_p11 }
 0x39c   : > { %1794 = dma.done.wait (%p1568_p12), %s1431_s9, 512  }
 0x39d   : > { %1796 = vsyncadd (%p1568_p12), %s1431_s9, 4294966784  ;;  %p18_p13 = scmp.ge.s32.totalorder %s1882_s27, 4   ;;  %s2469_s21 = smov %s1803_s22 }
 0x39e   : > { %s2470_s22 = smov %s1807_s23  ;;  %s2471_s23 = smov %s1893_s30 }
 0x39f   : > { %s2472_s24 = smov %s1882_s27  ;;  %20 = sbr.rel (!%p18_p13) target bundleno = 5 (0x5), region = 99 }
 0x3a4   :  { %1437 = vsyncpa [#allocation7], 1 }
 0x3a5   :  { %1439 = vsyncpa [#allocation7 + $0x1], 1 }
 0x3a6   :  { %1440 = vsyncpa [#allocation10], 1 }
 0x3a7   :  { %1441 = vsyncpa [#allocation8], 1 }
 0x3a8   :  { %1443 = vsyncpa [#allocation8 + $0x1], 1 }

</bundles_post_ra>
